<compile_context>
chip_gen: v7x
topology: tpu7x:2x2x1
jax: 0.10.0
libtpu: 0.0.40
codegen_flags: <defaults>
</compile_context>

<pallas_src>
import functools

import jax
import jax.numpy as jnp
from jax import lax
from jax.experimental import pallas as pl
from jax.experimental.pallas import tpu as pltpu


# ----------------------------------------------------------------------------
# Fused bridge kernel (single pallas_call, no grid, everything VMEM-resident)
# ----------------------------------------------------------------------------
def make_bridge_kernel(*, T, B, L_dec, L_enc, mxu_dtype=jnp.float32):
    """Build the fused Seq2SeqBridge kernel.

    Ref order (all VMEM, f32):
      inputs : bos (B,E), h0_dec (L_dec,B,Hdec), c0_dec (L_dec,B,Hdec),
               per decoder layer [Wih(In,4H), Whh(H,4H), b(1,4H)],
               per encoder layer fwd [Wih,Whh,b] then bwd [Wih,Whh,b].
      outputs: out (B,T,Henc), hT (B,Henc), cT (B,Henc).
    """
    n_in = 3 + 3 * L_dec + 6 * L_enc

    def mm(a, w):
        # MXU matmul; optionally bf16 operands (v6e/v7x), always f32 accumulate.
        return jnp.dot(a.astype(mxu_dtype), w.astype(mxu_dtype),
                       preferred_element_type=jnp.float32)

    def lstm_step(gx, h, c, whh):
        # gx = x_t @ W_ih + b (hoisted).  One packed (B,H)x(H,4H) dot per step.
        H = h.shape[-1]
        g = gx + mm(h, whh)                       # (B, 4H)
        i = jax.nn.sigmoid(g[:, 0 * H:1 * H])
        f = jax.nn.sigmoid(g[:, 1 * H:2 * H])
        gg = jnp.tanh(g[:, 2 * H:3 * H])
        o = jax.nn.sigmoid(g[:, 3 * H:4 * H])
        c2 = f * c + i * gg
        h2 = o * jnp.tanh(c2)
        return h2, c2

    def run_dir(gx_list, h, c, whh, reverse=False):
        # Fully unrolled time loop (T is small & static); outs[t] matches the
        # original time position even for the reversed (backward) direction.
        outs = [None] * T
        order = range(T - 1, -1, -1) if reverse else range(T)
        for t in order:
            h, c = lstm_step(gx_list[t], h, c, whh)
            outs[t] = h
        return outs, h, c

    def hoist_proj(x_list, wih_ref, b_ref):
        # One batched (T*B,In)x(In,4H) input projection for the whole sequence.
        flat = jnp.concatenate(x_list, axis=0)            # (T*B, In)
        gflat = mm(flat, wih_ref[...]) + b_ref[...]       # (T*B, 4H)
        return [gflat[t * B:(t + 1) * B, :] for t in range(T)]

    def kernel(*refs):
        bos_ref, h0_ref, c0_ref = refs[0:3]
        pos = 3
        dec_w = []
        for _ in range(L_dec):
            dec_w.append(refs[pos:pos + 3]); pos += 3
        enc_w = []
        for _ in range(L_enc):
            enc_w.append((refs[pos:pos + 3], refs[pos + 3:pos + 6])); pos += 6
        out_ref, hT_ref, cT_ref = refs[pos:pos + 3]

        # ---- decoder: BOS embedding fed at every step ----
        wih0, whh0, b0 = dec_w[0]
        gx0 = mm(bos_ref[...], wih0[...]) + b0[...]       # computed once
        seq, _, _ = run_dir([gx0] * T, h0_ref[0], c0_ref[0], whh0[...])
        for l in range(1, L_dec):
            wih, whh, b = dec_w[l]
            gx = hoist_proj(seq, wih, b)
            seq, _, _ = run_dir(gx, h0_ref[l], c0_ref[l], whh[...])

        # ---- encoder: bidirectional, zero initial state ----
        hf = cf = hb = cb = None
        for l in range(L_enc):
            (wih_f, whh_f, b_f), (wih_b, whh_b, b_b) = enc_w[l]
            Hd = whh_f.shape[0]
            gf = hoist_proj(seq, wih_f, b_f)
            gb = hoist_proj(seq, wih_b, b_b)
            z = jnp.zeros((B, Hd), jnp.float32)
            f_outs, hf, cf = run_dir(gf, z, z, whh_f[...])
            b_outs, hb, cb = run_dir(gb, z, z, whh_b[...], reverse=True)
            seq = [jnp.concatenate([f_outs[t], b_outs[t]], axis=-1)
                   for t in range(T)]

        # ---- outputs: batch-first store (transpose folded into the writes) ----
        for t in range(T):
            out_ref[:, t:t + 1, :] = jnp.expand_dims(seq[t], 1)
        hT_ref[...] = jnp.concatenate([hf, hb], axis=-1)
        cT_ref[...] = jnp.concatenate([cf, cb], axis=-1)

    return kernel, n_in


# ----------------------------------------------------------------------------
# Seq2SeqBridge.forward wrapper (only glue lives outside the kernel)
# ----------------------------------------------------------------------------
def seq2seq_bridge_forward(params, enc_outs, enc_hids, max_len, bos_idx,
                           mxu_dtype=jnp.float32):
    cfg = params["cfg"]
    B = enc_outs.shape[0]
    h0_dec, c0_dec = enc_hids                       # (L_dec, B, H_dec) each
    assert B == h0_dec.shape[1] == c0_dec.shape[1]
    T = int(max_len)
    H_enc = cfg["hid_enc"]

    # single-row embedding gather is plain-JAX glue
    bos = jnp.broadcast_to(params["dec_emb"][bos_idx],
                           (B, cfg["emb_dec"])).astype(jnp.float32)

    inputs = [bos, h0_dec.astype(jnp.float32), c0_dec.astype(jnp.float32)]
    for wih, whh, b in params["dec_lstm"]:
        inputs += [wih, whh, b]
    for fwd, bwd in params["enc_lstm"]:
        inputs += list(fwd) + list(bwd)

    kernel, n_in = make_bridge_kernel(T=T, B=B, L_dec=cfg["layers_dec"],
                                      L_enc=cfg["layers_enc"],
                                      mxu_dtype=mxu_dtype)
    assert n_in == len(inputs)

    def vmem():
        return pl.BlockSpec(memory_space=pltpu.MemorySpace.VMEM)

    outputs, hT, cT = pl.pallas_call(
        kernel,
        out_shape=(jax.ShapeDtypeStruct((B, T, H_enc), jnp.float32),
                   jax.ShapeDtypeStruct((B, H_enc), jnp.float32),
                   jax.ShapeDtypeStruct((B, H_enc), jnp.float32)),
        in_specs=[vmem() for _ in inputs],
        out_specs=(vmem(), vmem(), vmem()),
    )(*inputs)

    L_enc = cfg["layers_enc"]
    dec_h = jnp.broadcast_to(hT, (L_enc,) + hT.shape)   # expand (no copy in torch)
    dec_c = jnp.broadcast_to(cT, (L_enc,) + cT.shape)
    return outputs, (dec_h, dec_c)


# ----------------------------------------------------------------------------
# Pure-JAX reference (same packed-weight layout), for correctness checking
# ----------------------------------------------------------------------------
def seq2seq_bridge_ref(params, enc_outs, enc_hids, max_len, bos_idx):
    cfg = params["cfg"]
    B = enc_outs.shape[0]
    h0_dec, c0_dec = enc_hids
    T = int(max_len)
    dot = functools.partial(jnp.dot, precision=lax.Precision.HIGHEST)

    def step(x_t, h, c, wih, whh, b):
        H = h.shape[-1]
        g = dot(x_t, wih) + dot(h, whh) + b[0]
        i = jax.nn.sigmoid(g[:, 0 * H:1 * H])
        f = jax.nn.sigmoid(g[:, 1 * H:2 * H])
        gg = jnp.tanh(g[:, 2 * H:3 * H])
        o = jax.nn.sigmoid(g[:, 3 * H:4 * H])
        c2 = f * c + i * gg
        return o * jnp.tanh(c2), c2

    def run(x_tbf, h, c, wih, whh, b, reverse=False):
        def body(carry, x_t):
            h, c = carry
            h, c = step(x_t, h, c, wih, whh, b)
            return (h, c), h
        (h, c), ys = lax.scan(body, (h, c), x_tbf, reverse=reverse)
        return ys, h, c

    bos = jnp.broadcast_to(params["dec_emb"][bos_idx], (B, cfg["emb_dec"]))
    x = jnp.broadcast_to(bos, (T, B, cfg["emb_dec"])).astype(jnp.float32)
    for l, (wih, whh, b) in enumerate(params["dec_lstm"]):
        x, _, _ = run(x, h0_dec[l], c0_dec[l], wih, whh, b)

    Hd = cfg["hid_enc"] // 2
    hf = hb = cf = cb = None
    for (wih_f, whh_f, b_f), (wih_b, whh_b, b_b) in params["enc_lstm"]:
        z = jnp.zeros((B, Hd), jnp.float32)
        yf, hf, cf = run(x, z, z, wih_f, whh_f, b_f)
        yb, hb, cb = run(x, z, z, wih_b, whh_b, b_b, reverse=True)
        x = jnp.concatenate([yf, yb], axis=-1)

    outputs = jnp.transpose(x, (1, 0, 2))
    hT = jnp.concatenate([hf, hb], axis=1)
    cT = jnp.concatenate([cf, cb], axis=1)
    L_enc = cfg["layers_enc"]
    return outputs, (jnp.broadcast_to(hT, (L_enc,) + hT.shape),
                     jnp.broadcast_to(cT, (L_enc,) + cT.shape))


# ----------------------------------------------------------------------------
# Deterministic synthetic parameters (packed gate layout [i|f|g|o])
# ----------------------------------------------------------------------------
def init_params(key, *, vocab_dec, emb_dec, hid_dec, layers_dec,
                hid_enc, layers_enc):
    assert hid_enc % 2 == 0
    cfg = dict(vocab_dec=vocab_dec, emb_dec=emb_dec, hid_dec=hid_dec,
               layers_dec=layers_dec, hid_enc=hid_enc, layers_enc=layers_enc)
    keys = iter(jax.random.split(key, 64))

    def uni(shape, bound):
        return jax.random.uniform(next(keys), shape, jnp.float32, -bound, bound)

    params = {"cfg": cfg, "dec_emb": uni((vocab_dec, emb_dec), 1.0)}

    kd = 1.0 / float(hid_dec) ** 0.5
    dec = []
    for l in range(layers_dec):
        In = emb_dec if l == 0 else hid_dec
        dec.append((uni((In, 4 * hid_dec), kd),
                    uni((hid_dec, 4 * hid_dec), kd),
                    uni((1, 4 * hid_dec), kd)))          # b_ih + b_hh combined
    params["dec_lstm"] = dec

    Hd = hid_enc // 2
    ke = 1.0 / float(Hd) ** 0.5
    enc = []
    for l in range(layers_enc):
        In = hid_dec if l == 0 else hid_enc              # enc.emb_size == dec.hid_size
        fwd = (uni((In, 4 * Hd), ke), uni((Hd, 4 * Hd), ke), uni((1, 4 * Hd), ke))
        bwd = (uni((In, 4 * Hd), ke), uni((Hd, 4 * Hd), ke), uni((1, 4 * Hd), ke))
        enc.append((fwd, bwd))
    params["enc_lstm"] = enc
    return params


if __name__ == "__main__":
    key = jax.random.PRNGKey(0)
    k_param, k_outs, k_h, k_c = jax.random.split(key, 4)

    B = 2            # batch
    SRC_LEN = 5      # source length of enc_outs (only used for batch check)
    EMB_DEC = 32     # decoder embedding size
    HID_DEC = 32     # decoder hidden == encoder emb size
    HID_ENC = 32     # encoder hidden (bidirectional -> 16 per direction)
    L_DEC = 2
    L_ENC = 2
    MAX_LEN = 8
    BOS_IDX = 1

    params = init_params(k_param, vocab_dec=16, emb_dec=EMB_DEC,
                         hid_dec=HID_DEC, layers_dec=L_DEC,
                         hid_enc=HID_ENC, layers_enc=L_ENC)

    enc_outs = jax.random.normal(k_outs, (B, SRC_LEN, HID_DEC), jnp.float32)
    enc_hids = (jax.random.normal(k_h, (L_DEC, B, HID_DEC), jnp.float32),
                jax.random.normal(k_c, (L_DEC, B, HID_DEC), jnp.float32))

    # --- f32 MXU path (works on v5e / v6e / v7x) ---
    out, (dh, dc) = seq2seq_bridge_forward(params, enc_outs, enc_hids,
                                           MAX_LEN, BOS_IDX)
    jax.block_until_ready((out, dh, dc))

    out_r, (dh_r, dc_r) = seq2seq_bridge_ref(params, enc_outs, enc_hids,
                                             MAX_LEN, BOS_IDX)
    assert out.shape == (B, MAX_LEN, HID_ENC)
    assert dh.shape == (L_ENC, B, HID_ENC) and dc.shape == (L_ENC, B, HID_ENC)
    # f32 vs f32 reference: tight tolerance (observed diffs are ~1e-6 level;
    # small headroom kept for transcendental/precision-mode implementation gaps)
    TOL = 5e-4
    assert float(jnp.max(jnp.abs(out - out_r))) < TOL
    assert float(jnp.max(jnp.abs(dh - dh_r))) < TOL
    assert float(jnp.max(jnp.abs(dc - dc_r))) < TOL

    # --- bf16-MXU variant (v6e/v7x oriented): bf16 matmul inputs, f32
    #     accumulation, f32 element-wise gate math.  Loose sanity bound only.
    out_b, (dh_b, dc_b) = seq2seq_bridge_forward(params, enc_outs, enc_hids,
                                                 MAX_LEN, BOS_IDX,
                                                 mxu_dtype=jnp.bfloat16)
    jax.block_until_ready((out_b, dh_b, dc_b))
    assert float(jnp.max(jnp.abs(out_b - out_r))) < 1e-1
    assert float(jnp.max(jnp.abs(dh_b - dh_r))) < 1e-1

    print("KERNEL_OK")
</pallas_src>

<mosaic_0001>
module attributes {stable_mosaic.version = 11 : i64} {
  func.func @kernel(%arg0: memref<2x32xf32, #tpu.memory_space<vmem>>, %arg1: memref<2x2x32xf32, #tpu.memory_space<vmem>>, %arg2: memref<2x2x32xf32, #tpu.memory_space<vmem>>, %arg3: memref<32x128xf32, #tpu.memory_space<vmem>>, %arg4: memref<32x128xf32, #tpu.memory_space<vmem>>, %arg5: memref<1x128xf32, #tpu.memory_space<vmem>>, %arg6: memref<32x128xf32, #tpu.memory_space<vmem>>, %arg7: memref<32x128xf32, #tpu.memory_space<vmem>>, %arg8: memref<1x128xf32, #tpu.memory_space<vmem>>, %arg9: memref<32x64xf32, #tpu.memory_space<vmem>>, %arg10: memref<16x64xf32, #tpu.memory_space<vmem>>, %arg11: memref<1x64xf32, #tpu.memory_space<vmem>>, %arg12: memref<32x64xf32, #tpu.memory_space<vmem>>, %arg13: memref<16x64xf32, #tpu.memory_space<vmem>>, %arg14: memref<1x64xf32, #tpu.memory_space<vmem>>, %arg15: memref<32x64xf32, #tpu.memory_space<vmem>>, %arg16: memref<16x64xf32, #tpu.memory_space<vmem>>, %arg17: memref<1x64xf32, #tpu.memory_space<vmem>>, %arg18: memref<32x64xf32, #tpu.memory_space<vmem>>, %arg19: memref<16x64xf32, #tpu.memory_space<vmem>>, %arg20: memref<1x64xf32, #tpu.memory_space<vmem>>, %arg21: memref<2x8x32xf32, #tpu.memory_space<vmem>>, %arg22: memref<2x32xf32, #tpu.memory_space<vmem>>, %arg23: memref<2x32xf32, #tpu.memory_space<vmem>>) attributes {dimension_semantics = [], scalar_prefetch = 0 : i64, scratch_operands = 0 : i64, tpu.core_type = #tpu.core_type<tc>} {
    %c0 = arith.constant 0 : index
    %c0_0 = arith.constant 0 : index
    %0 = vector.load %arg0[%c0, %c0_0] : memref<2x32xf32, #tpu.memory_space<vmem>>, vector<2x32xf32>
    %c0_1 = arith.constant 0 : index
    %c0_2 = arith.constant 0 : index
    %1 = vector.load %arg3[%c0_1, %c0_2] : memref<32x128xf32, #tpu.memory_space<vmem>>, vector<32x128xf32>
    %cst = arith.constant dense<0.000000e+00> : vector<2x128xf32>
    %2 = tpu.matmul %0, %1, %cst {dimension_numbers = #tpu.dot_dimension_numbers<[1], [0], [0], [1], [0, 0, 1, 1], [], []>} : vector<2x32xf32>, vector<32x128xf32>, vector<2x128xf32> -> vector<2x128xf32>
    %c0_3 = arith.constant 0 : index
    %c0_4 = arith.constant 0 : index
    %3 = vector.load %arg5[%c0_3, %c0_4] : memref<1x128xf32, #tpu.memory_space<vmem>>, vector<1x128xf32>
    %4 = vector.broadcast %3 : vector<1x128xf32> to vector<2x128xf32>
    %5 = arith.addf %2, %4 : vector<2x128xf32>
    %c0_5 = arith.constant 0 : index
    %c0_6 = arith.constant 0 : index
    %c0_7 = arith.constant 0 : index
    %6 = vector.load %arg1[%c0_5, %c0_6, %c0_7] : memref<2x2x32xf32, #tpu.memory_space<vmem>>, vector<1x2x32xf32>
    %7 = vector.shape_cast %6 : vector<1x2x32xf32> to vector<2x32xf32>
    %c0_8 = arith.constant 0 : index
    %c0_9 = arith.constant 0 : index
    %c0_10 = arith.constant 0 : index
    %8 = vector.load %arg2[%c0_8, %c0_9, %c0_10] : memref<2x2x32xf32, #tpu.memory_space<vmem>>, vector<1x2x32xf32>
    %9 = vector.shape_cast %8 : vector<1x2x32xf32> to vector<2x32xf32>
    %c0_11 = arith.constant 0 : index
    %c0_12 = arith.constant 0 : index
    %10 = vector.load %arg4[%c0_11, %c0_12] : memref<32x128xf32, #tpu.memory_space<vmem>>, vector<32x128xf32>
    %cst_13 = arith.constant dense<0.000000e+00> : vector<2x128xf32>
    %11 = tpu.matmul %7, %10, %cst_13 {dimension_numbers = #tpu.dot_dimension_numbers<[1], [0], [0], [1], [0, 0, 1, 1], [], []>} : vector<2x32xf32>, vector<32x128xf32>, vector<2x128xf32> -> vector<2x128xf32>
    %12 = arith.addf %5, %11 : vector<2x128xf32>
    %13 = vector.extract_strided_slice %12 {offsets = [0, 0], sizes = [2, 32], strides = [1, 1]} : vector<2x128xf32> to vector<2x32xf32>
    %14 = arith.negf %13 : vector<2x32xf32>
    %15 = math.exp %14 : vector<2x32xf32>
    %cst_14 = arith.constant 1.000000e+00 : f32
    %16 = vector.broadcast %cst_14 : f32 to vector<2x32xf32>
    %17 = arith.addf %16, %15 : vector<2x32xf32>
    %18 = arith.divf %16, %17 : vector<2x32xf32>
    %19 = vector.extract_strided_slice %12 {offsets = [0, 32], sizes = [2, 32], strides = [1, 1]} : vector<2x128xf32> to vector<2x32xf32>
    %20 = arith.negf %19 : vector<2x32xf32>
    %21 = math.exp %20 : vector<2x32xf32>
    %cst_15 = arith.constant 1.000000e+00 : f32
    %22 = vector.broadcast %cst_15 : f32 to vector<2x32xf32>
    %23 = arith.addf %22, %21 : vector<2x32xf32>
    %24 = arith.divf %22, %23 : vector<2x32xf32>
    %25 = vector.extract_strided_slice %12 {offsets = [0, 64], sizes = [2, 32], strides = [1, 1]} : vector<2x128xf32> to vector<2x32xf32>
    %26 = math.tanh %25 : vector<2x32xf32>
    %27 = vector.extract_strided_slice %12 {offsets = [0, 96], sizes = [2, 32], strides = [1, 1]} : vector<2x128xf32> to vector<2x32xf32>
    %28 = arith.negf %27 : vector<2x32xf32>
    %29 = math.exp %28 : vector<2x32xf32>
    %cst_16 = arith.constant 1.000000e+00 : f32
    %30 = vector.broadcast %cst_16 : f32 to vector<2x32xf32>
    %31 = arith.addf %30, %29 : vector<2x32xf32>
    %32 = arith.divf %30, %31 : vector<2x32xf32>
    %33 = arith.mulf %24, %9 : vector<2x32xf32>
    %34 = arith.mulf %18, %26 : vector<2x32xf32>
    %35 = arith.addf %33, %34 : vector<2x32xf32>
    %36 = math.tanh %35 : vector<2x32xf32>
    %37 = arith.mulf %32, %36 : vector<2x32xf32>
    %cst_17 = arith.constant dense<0.000000e+00> : vector<2x128xf32>
    %38 = tpu.matmul %37, %10, %cst_17 {dimension_numbers = #tpu.dot_dimension_numbers<[1], [0], [0], [1], [0, 0, 1, 1], [], []>} : vector<2x32xf32>, vector<32x128xf32>, vector<2x128xf32> -> vector<2x128xf32>
    %39 = arith.addf %5, %38 : vector<2x128xf32>
    %40 = vector.extract_strided_slice %39 {offsets = [0, 0], sizes = [2, 32], strides = [1, 1]} : vector<2x128xf32> to vector<2x32xf32>
    %41 = arith.negf %40 : vector<2x32xf32>
    %42 = math.exp %41 : vector<2x32xf32>
    %cst_18 = arith.constant 1.000000e+00 : f32
    %43 = vector.broadcast %cst_18 : f32 to vector<2x32xf32>
    %44 = arith.addf %43, %42 : vector<2x32xf32>
    %45 = arith.divf %43, %44 : vector<2x32xf32>
    %46 = vector.extract_strided_slice %39 {offsets = [0, 32], sizes = [2, 32], strides = [1, 1]} : vector<2x128xf32> to vector<2x32xf32>
    %47 = arith.negf %46 : vector<2x32xf32>
    %48 = math.exp %47 : vector<2x32xf32>
    %cst_19 = arith.constant 1.000000e+00 : f32
    %49 = vector.broadcast %cst_19 : f32 to vector<2x32xf32>
    %50 = arith.addf %49, %48 : vector<2x32xf32>
    %51 = arith.divf %49, %50 : vector<2x32xf32>
    %52 = vector.extract_strided_slice %39 {offsets = [0, 64], sizes = [2, 32], strides = [1, 1]} : vector<2x128xf32> to vector<2x32xf32>
    %53 = math.tanh %52 : vector<2x32xf32>
    %54 = vector.extract_strided_slice %39 {offsets = [0, 96], sizes = [2, 32], strides = [1, 1]} : vector<2x128xf32> to vector<2x32xf32>
    %55 = arith.negf %54 : vector<2x32xf32>
    %56 = math.exp %55 : vector<2x32xf32>
    %cst_20 = arith.constant 1.000000e+00 : f32
    %57 = vector.broadcast %cst_20 : f32 to vector<2x32xf32>
    %58 = arith.addf %57, %56 : vector<2x32xf32>
    %59 = arith.divf %57, %58 : vector<2x32xf32>
    %60 = arith.mulf %51, %35 : vector<2x32xf32>
    %61 = arith.mulf %45, %53 : vector<2x32xf32>
    %62 = arith.addf %60, %61 : vector<2x32xf32>
    %63 = math.tanh %62 : vector<2x32xf32>
    %64 = arith.mulf %59, %63 : vector<2x32xf32>
    %cst_21 = arith.constant dense<0.000000e+00> : vector<2x128xf32>
    %65 = tpu.matmul %64, %10, %cst_21 {dimension_numbers = #tpu.dot_dimension_numbers<[1], [0], [0], [1], [0, 0, 1, 1], [], []>} : vector<2x32xf32>, vector<32x128xf32>, vector<2x128xf32> -> vector<2x128xf32>
    %66 = arith.addf %5, %65 : vector<2x128xf32>
    %67 = vector.extract_strided_slice %66 {offsets = [0, 0], sizes = [2, 32], strides = [1, 1]} : vector<2x128xf32> to vector<2x32xf32>
    %68 = arith.negf %67 : vector<2x32xf32>
    %69 = math.exp %68 : vector<2x32xf32>
    %cst_22 = arith.constant 1.000000e+00 : f32
    %70 = vector.broadcast %cst_22 : f32 to vector<2x32xf32>
    %71 = arith.addf %70, %69 : vector<2x32xf32>
    %72 = arith.divf %70, %71 : vector<2x32xf32>
    %73 = vector.extract_strided_slice %66 {offsets = [0, 32], sizes = [2, 32], strides = [1, 1]} : vector<2x128xf32> to vector<2x32xf32>
    %74 = arith.negf %73 : vector<2x32xf32>
    %75 = math.exp %74 : vector<2x32xf32>
    %cst_23 = arith.constant 1.000000e+00 : f32
    %76 = vector.broadcast %cst_23 : f32 to vector<2x32xf32>
    %77 = arith.addf %76, %75 : vector<2x32xf32>
    %78 = arith.divf %76, %77 : vector<2x32xf32>
    %79 = vector.extract_strided_slice %66 {offsets = [0, 64], sizes = [2, 32], strides = [1, 1]} : vector<2x128xf32> to vector<2x32xf32>
    %80 = math.tanh %79 : vector<2x32xf32>
    %81 = vector.extract_strided_slice %66 {offsets = [0, 96], sizes = [2, 32], strides = [1, 1]} : vector<2x128xf32> to vector<2x32xf32>
    %82 = arith.negf %81 : vector<2x32xf32>
    %83 = math.exp %82 : vector<2x32xf32>
    %cst_24 = arith.constant 1.000000e+00 : f32
    %84 = vector.broadcast %cst_24 : f32 to vector<2x32xf32>
    %85 = arith.addf %84, %83 : vector<2x32xf32>
    %86 = arith.divf %84, %85 : vector<2x32xf32>
    %87 = arith.mulf %78, %62 : vector<2x32xf32>
    %88 = arith.mulf %72, %80 : vector<2x32xf32>
    %89 = arith.addf %87, %88 : vector<2x32xf32>
    %90 = math.tanh %89 : vector<2x32xf32>
    %91 = arith.mulf %86, %90 : vector<2x32xf32>
    %cst_25 = arith.constant dense<0.000000e+00> : vector<2x128xf32>
    %92 = tpu.matmul %91, %10, %cst_25 {dimension_numbers = #tpu.dot_dimension_numbers<[1], [0], [0], [1], [0, 0, 1, 1], [], []>} : vector<2x32xf32>, vector<32x128xf32>, vector<2x128xf32> -> vector<2x128xf32>
    %93 = arith.addf %5, %92 : vector<2x128xf32>
    %94 = vector.extract_strided_slice %93 {offsets = [0, 0], sizes = [2, 32], strides = [1, 1]} : vector<2x128xf32> to vector<2x32xf32>
    %95 = arith.negf %94 : vector<2x32xf32>
    %96 = math.exp %95 : vector<2x32xf32>
    %cst_26 = arith.constant 1.000000e+00 : f32
    %97 = vector.broadcast %cst_26 : f32 to vector<2x32xf32>
    %98 = arith.addf %97, %96 : vector<2x32xf32>
    %99 = arith.divf %97, %98 : vector<2x32xf32>
    %100 = vector.extract_strided_slice %93 {offsets = [0, 32], sizes = [2, 32], strides = [1, 1]} : vector<2x128xf32> to vector<2x32xf32>
    %101 = arith.negf %100 : vector<2x32xf32>
    %102 = math.exp %101 : vector<2x32xf32>
    %cst_27 = arith.constant 1.000000e+00 : f32
    %103 = vector.broadcast %cst_27 : f32 to vector<2x32xf32>
    %104 = arith.addf %103, %102 : vector<2x32xf32>
    %105 = arith.divf %103, %104 : vector<2x32xf32>
    %106 = vector.extract_strided_slice %93 {offsets = [0, 64], sizes = [2, 32], strides = [1, 1]} : vector<2x128xf32> to vector<2x32xf32>
    %107 = math.tanh %106 : vector<2x32xf32>
    %108 = vector.extract_strided_slice %93 {offsets = [0, 96], sizes = [2, 32], strides = [1, 1]} : vector<2x128xf32> to vector<2x32xf32>
    %109 = arith.negf %108 : vector<2x32xf32>
    %110 = math.exp %109 : vector<2x32xf32>
    %cst_28 = arith.constant 1.000000e+00 : f32
    %111 = vector.broadcast %cst_28 : f32 to vector<2x32xf32>
    %112 = arith.addf %111, %110 : vector<2x32xf32>
    %113 = arith.divf %111, %112 : vector<2x32xf32>
    %114 = arith.mulf %105, %89 : vector<2x32xf32>
    %115 = arith.mulf %99, %107 : vector<2x32xf32>
    %116 = arith.addf %114, %115 : vector<2x32xf32>
    %117 = math.tanh %116 : vector<2x32xf32>
    %118 = arith.mulf %113, %117 : vector<2x32xf32>
    %cst_29 = arith.constant dense<0.000000e+00> : vector<2x128xf32>
    %119 = tpu.matmul %118, %10, %cst_29 {dimension_numbers = #tpu.dot_dimension_numbers<[1], [0], [0], [1], [0, 0, 1, 1], [], []>} : vector<2x32xf32>, vector<32x128xf32>, vector<2x128xf32> -> vector<2x128xf32>
    %120 = arith.addf %5, %119 : vector<2x128xf32>
    %121 = vector.extract_strided_slice %120 {offsets = [0, 0], sizes = [2, 32], strides = [1, 1]} : vector<2x128xf32> to vector<2x32xf32>
    %122 = arith.negf %121 : vector<2x32xf32>
    %123 = math.exp %122 : vector<2x32xf32>
    %cst_30 = arith.constant 1.000000e+00 : f32
    %124 = vector.broadcast %cst_30 : f32 to vector<2x32xf32>
    %125 = arith.addf %124, %123 : vector<2x32xf32>
    %126 = arith.divf %124, %125 : vector<2x32xf32>
    %127 = vector.extract_strided_slice %120 {offsets = [0, 32], sizes = [2, 32], strides = [1, 1]} : vector<2x128xf32> to vector<2x32xf32>
    %128 = arith.negf %127 : vector<2x32xf32>
    %129 = math.exp %128 : vector<2x32xf32>
    %cst_31 = arith.constant 1.000000e+00 : f32
    %130 = vector.broadcast %cst_31 : f32 to vector<2x32xf32>
    %131 = arith.addf %130, %129 : vector<2x32xf32>
    %132 = arith.divf %130, %131 : vector<2x32xf32>
    %133 = vector.extract_strided_slice %120 {offsets = [0, 64], sizes = [2, 32], strides = [1, 1]} : vector<2x128xf32> to vector<2x32xf32>
    %134 = math.tanh %133 : vector<2x32xf32>
    %135 = vector.extract_strided_slice %120 {offsets = [0, 96], sizes = [2, 32], strides = [1, 1]} : vector<2x128xf32> to vector<2x32xf32>
    %136 = arith.negf %135 : vector<2x32xf32>
    %137 = math.exp %136 : vector<2x32xf32>
    %cst_32 = arith.constant 1.000000e+00 : f32
    %138 = vector.broadcast %cst_32 : f32 to vector<2x32xf32>
    %139 = arith.addf %138, %137 : vector<2x32xf32>
    %140 = arith.divf %138, %139 : vector<2x32xf32>
    %141 = arith.mulf %132, %116 : vector<2x32xf32>
    %142 = arith.mulf %126, %134 : vector<2x32xf32>
    %143 = arith.addf %141, %142 : vector<2x32xf32>
    %144 = math.tanh %143 : vector<2x32xf32>
    %145 = arith.mulf %140, %144 : vector<2x32xf32>
    %cst_33 = arith.constant dense<0.000000e+00> : vector<2x128xf32>
    %146 = tpu.matmul %145, %10, %cst_33 {dimension_numbers = #tpu.dot_dimension_numbers<[1], [0], [0], [1], [0, 0, 1, 1], [], []>} : vector<2x32xf32>, vector<32x128xf32>, vector<2x128xf32> -> vector<2x128xf32>
    %147 = arith.addf %5, %146 : vector<2x128xf32>
    %148 = vector.extract_strided_slice %147 {offsets = [0, 0], sizes = [2, 32], strides = [1, 1]} : vector<2x128xf32> to vector<2x32xf32>
    %149 = arith.negf %148 : vector<2x32xf32>
    %150 = math.exp %149 : vector<2x32xf32>
    %cst_34 = arith.constant 1.000000e+00 : f32
    %151 = vector.broadcast %cst_34 : f32 to vector<2x32xf32>
    %152 = arith.addf %151, %150 : vector<2x32xf32>
    %153 = arith.divf %151, %152 : vector<2x32xf32>
    %154 = vector.extract_strided_slice %147 {offsets = [0, 32], sizes = [2, 32], strides = [1, 1]} : vector<2x128xf32> to vector<2x32xf32>
    %155 = arith.negf %154 : vector<2x32xf32>
    %156 = math.exp %155 : vector<2x32xf32>
    %cst_35 = arith.constant 1.000000e+00 : f32
    %157 = vector.broadcast %cst_35 : f32 to vector<2x32xf32>
    %158 = arith.addf %157, %156 : vector<2x32xf32>
    %159 = arith.divf %157, %158 : vector<2x32xf32>
    %160 = vector.extract_strided_slice %147 {offsets = [0, 64], sizes = [2, 32], strides = [1, 1]} : vector<2x128xf32> to vector<2x32xf32>
    %161 = math.tanh %160 : vector<2x32xf32>
    %162 = vector.extract_strided_slice %147 {offsets = [0, 96], sizes = [2, 32], strides = [1, 1]} : vector<2x128xf32> to vector<2x32xf32>
    %163 = arith.negf %162 : vector<2x32xf32>
    %164 = math.exp %163 : vector<2x32xf32>
    %cst_36 = arith.constant 1.000000e+00 : f32
    %165 = vector.broadcast %cst_36 : f32 to vector<2x32xf32>
    %166 = arith.addf %165, %164 : vector<2x32xf32>
    %167 = arith.divf %165, %166 : vector<2x32xf32>
    %168 = arith.mulf %159, %143 : vector<2x32xf32>
    %169 = arith.mulf %153, %161 : vector<2x32xf32>
    %170 = arith.addf %168, %169 : vector<2x32xf32>
    %171 = math.tanh %170 : vector<2x32xf32>
    %172 = arith.mulf %167, %171 : vector<2x32xf32>
    %cst_37 = arith.constant dense<0.000000e+00> : vector<2x128xf32>
    %173 = tpu.matmul %172, %10, %cst_37 {dimension_numbers = #tpu.dot_dimension_numbers<[1], [0], [0], [1], [0, 0, 1, 1], [], []>} : vector<2x32xf32>, vector<32x128xf32>, vector<2x128xf32> -> vector<2x128xf32>
    %174 = arith.addf %5, %173 : vector<2x128xf32>
    %175 = vector.extract_strided_slice %174 {offsets = [0, 0], sizes = [2, 32], strides = [1, 1]} : vector<2x128xf32> to vector<2x32xf32>
    %176 = arith.negf %175 : vector<2x32xf32>
    %177 = math.exp %176 : vector<2x32xf32>
    %cst_38 = arith.constant 1.000000e+00 : f32
    %178 = vector.broadcast %cst_38 : f32 to vector<2x32xf32>
    %179 = arith.addf %178, %177 : vector<2x32xf32>
    %180 = arith.divf %178, %179 : vector<2x32xf32>
    %181 = vector.extract_strided_slice %174 {offsets = [0, 32], sizes = [2, 32], strides = [1, 1]} : vector<2x128xf32> to vector<2x32xf32>
    %182 = arith.negf %181 : vector<2x32xf32>
    %183 = math.exp %182 : vector<2x32xf32>
    %cst_39 = arith.constant 1.000000e+00 : f32
    %184 = vector.broadcast %cst_39 : f32 to vector<2x32xf32>
    %185 = arith.addf %184, %183 : vector<2x32xf32>
    %186 = arith.divf %184, %185 : vector<2x32xf32>
    %187 = vector.extract_strided_slice %174 {offsets = [0, 64], sizes = [2, 32], strides = [1, 1]} : vector<2x128xf32> to vector<2x32xf32>
    %188 = math.tanh %187 : vector<2x32xf32>
    %189 = vector.extract_strided_slice %174 {offsets = [0, 96], sizes = [2, 32], strides = [1, 1]} : vector<2x128xf32> to vector<2x32xf32>
    %190 = arith.negf %189 : vector<2x32xf32>
    %191 = math.exp %190 : vector<2x32xf32>
    %cst_40 = arith.constant 1.000000e+00 : f32
    %192 = vector.broadcast %cst_40 : f32 to vector<2x32xf32>
    %193 = arith.addf %192, %191 : vector<2x32xf32>
    %194 = arith.divf %192, %193 : vector<2x32xf32>
    %195 = arith.mulf %186, %170 : vector<2x32xf32>
    %196 = arith.mulf %180, %188 : vector<2x32xf32>
    %197 = arith.addf %195, %196 : vector<2x32xf32>
    %198 = math.tanh %197 : vector<2x32xf32>
    %199 = arith.mulf %194, %198 : vector<2x32xf32>
    %cst_41 = arith.constant dense<0.000000e+00> : vector<2x128xf32>
    %200 = tpu.matmul %199, %10, %cst_41 {dimension_numbers = #tpu.dot_dimension_numbers<[1], [0], [0], [1], [0, 0, 1, 1], [], []>} : vector<2x32xf32>, vector<32x128xf32>, vector<2x128xf32> -> vector<2x128xf32>
    %201 = arith.addf %5, %200 : vector<2x128xf32>
    %202 = vector.extract_strided_slice %201 {offsets = [0, 0], sizes = [2, 32], strides = [1, 1]} : vector<2x128xf32> to vector<2x32xf32>
    %203 = arith.negf %202 : vector<2x32xf32>
    %204 = math.exp %203 : vector<2x32xf32>
    %cst_42 = arith.constant 1.000000e+00 : f32
    %205 = vector.broadcast %cst_42 : f32 to vector<2x32xf32>
    %206 = arith.addf %205, %204 : vector<2x32xf32>
    %207 = arith.divf %205, %206 : vector<2x32xf32>
    %208 = vector.extract_strided_slice %201 {offsets = [0, 32], sizes = [2, 32], strides = [1, 1]} : vector<2x128xf32> to vector<2x32xf32>
    %209 = arith.negf %208 : vector<2x32xf32>
    %210 = math.exp %209 : vector<2x32xf32>
    %cst_43 = arith.constant 1.000000e+00 : f32
    %211 = vector.broadcast %cst_43 : f32 to vector<2x32xf32>
    %212 = arith.addf %211, %210 : vector<2x32xf32>
    %213 = arith.divf %211, %212 : vector<2x32xf32>
    %214 = vector.extract_strided_slice %201 {offsets = [0, 64], sizes = [2, 32], strides = [1, 1]} : vector<2x128xf32> to vector<2x32xf32>
    %215 = math.tanh %214 : vector<2x32xf32>
    %216 = vector.extract_strided_slice %201 {offsets = [0, 96], sizes = [2, 32], strides = [1, 1]} : vector<2x128xf32> to vector<2x32xf32>
    %217 = arith.negf %216 : vector<2x32xf32>
    %218 = math.exp %217 : vector<2x32xf32>
    %cst_44 = arith.constant 1.000000e+00 : f32
    %219 = vector.broadcast %cst_44 : f32 to vector<2x32xf32>
    %220 = arith.addf %219, %218 : vector<2x32xf32>
    %221 = arith.divf %219, %220 : vector<2x32xf32>
    %222 = arith.mulf %213, %197 : vector<2x32xf32>
    %223 = arith.mulf %207, %215 : vector<2x32xf32>
    %224 = arith.addf %222, %223 : vector<2x32xf32>
    %225 = math.tanh %224 : vector<2x32xf32>
    %226 = arith.mulf %221, %225 : vector<2x32xf32>
    %227 = tpu.concatenate %37, %64, %91, %118, %145, %172, %199, %226 in 0 : vector<2x32xf32>, vector<2x32xf32>, vector<2x32xf32>, vector<2x32xf32>, vector<2x32xf32>, vector<2x32xf32>, vector<2x32xf32>, vector<2x32xf32> -> vector<16x32xf32>
    %c0_45 = arith.constant 0 : index
    %c0_46 = arith.constant 0 : index
    %228 = vector.load %arg6[%c0_45, %c0_46] : memref<32x128xf32, #tpu.memory_space<vmem>>, vector<32x128xf32>
    %cst_47 = arith.constant dense<0.000000e+00> : vector<16x128xf32>
    %229 = tpu.matmul %227, %228, %cst_47 {dimension_numbers = #tpu.dot_dimension_numbers<[1], [0], [0], [1], [0, 0, 1, 1], [], []>} : vector<16x32xf32>, vector<32x128xf32>, vector<16x128xf32> -> vector<16x128xf32>
    %c0_48 = arith.constant 0 : index
    %c0_49 = arith.constant 0 : index
    %230 = vector.load %arg8[%c0_48, %c0_49] : memref<1x128xf32, #tpu.memory_space<vmem>>, vector<1x128xf32>
    %231 = vector.broadcast %230 : vector<1x128xf32> to vector<16x128xf32>
    %232 = arith.addf %229, %231 : vector<16x128xf32>
    %233 = vector.extract_strided_slice %232 {offsets = [0, 0], sizes = [2, 128], strides = [1, 1]} : vector<16x128xf32> to vector<2x128xf32>
    %234 = vector.extract_strided_slice %232 {offsets = [2, 0], sizes = [2, 128], strides = [1, 1]} : vector<16x128xf32> to vector<2x128xf32>
    %235 = vector.extract_strided_slice %232 {offsets = [4, 0], sizes = [2, 128], strides = [1, 1]} : vector<16x128xf32> to vector<2x128xf32>
    %236 = vector.extract_strided_slice %232 {offsets = [6, 0], sizes = [2, 128], strides = [1, 1]} : vector<16x128xf32> to vector<2x128xf32>
    %237 = vector.extract_strided_slice %232 {offsets = [8, 0], sizes = [2, 128], strides = [1, 1]} : vector<16x128xf32> to vector<2x128xf32>
    %238 = vector.extract_strided_slice %232 {offsets = [10, 0], sizes = [2, 128], strides = [1, 1]} : vector<16x128xf32> to vector<2x128xf32>
    %239 = vector.extract_strided_slice %232 {offsets = [12, 0], sizes = [2, 128], strides = [1, 1]} : vector<16x128xf32> to vector<2x128xf32>
    %240 = vector.extract_strided_slice %232 {offsets = [14, 0], sizes = [2, 128], strides = [1, 1]} : vector<16x128xf32> to vector<2x128xf32>
    %c1 = arith.constant 1 : index
    %c0_50 = arith.constant 0 : index
    %c0_51 = arith.constant 0 : index
    %241 = vector.load %arg1[%c1, %c0_50, %c0_51] : memref<2x2x32xf32, #tpu.memory_space<vmem>>, vector<1x2x32xf32>
    %242 = vector.shape_cast %241 : vector<1x2x32xf32> to vector<2x32xf32>
    %c1_52 = arith.constant 1 : index
    %c0_53 = arith.constant 0 : index
    %c0_54 = arith.constant 0 : index
    %243 = vector.load %arg2[%c1_52, %c0_53, %c0_54] : memref<2x2x32xf32, #tpu.memory_space<vmem>>, vector<1x2x32xf32>
    %244 = vector.shape_cast %243 : vector<1x2x32xf32> to vector<2x32xf32>
    %c0_55 = arith.constant 0 : index
    %c0_56 = arith.constant 0 : index
    %245 = vector.load %arg7[%c0_55, %c0_56] : memref<32x128xf32, #tpu.memory_space<vmem>>, vector<32x128xf32>
    %cst_57 = arith.constant dense<0.000000e+00> : vector<2x128xf32>
    %246 = tpu.matmul %242, %245, %cst_57 {dimension_numbers = #tpu.dot_dimension_numbers<[1], [0], [0], [1], [0, 0, 1, 1], [], []>} : vector<2x32xf32>, vector<32x128xf32>, vector<2x128xf32> -> vector<2x128xf32>
    %247 = arith.addf %233, %246 : vector<2x128xf32>
    %248 = vector.extract_strided_slice %247 {offsets = [0, 0], sizes = [2, 32], strides = [1, 1]} : vector<2x128xf32> to vector<2x32xf32>
    %249 = arith.negf %248 : vector<2x32xf32>
    %250 = math.exp %249 : vector<2x32xf32>
    %cst_58 = arith.constant 1.000000e+00 : f32
    %251 = vector.broadcast %cst_58 : f32 to vector<2x32xf32>
    %252 = arith.addf %251, %250 : vector<2x32xf32>
    %253 = arith.divf %251, %252 : vector<2x32xf32>
    %254 = vector.extract_strided_slice %247 {offsets = [0, 32], sizes = [2, 32], strides = [1, 1]} : vector<2x128xf32> to vector<2x32xf32>
    %255 = arith.negf %254 : vector<2x32xf32>
    %256 = math.exp %255 : vector<2x32xf32>
    %cst_59 = arith.constant 1.000000e+00 : f32
    %257 = vector.broadcast %cst_59 : f32 to vector<2x32xf32>
    %258 = arith.addf %257, %256 : vector<2x32xf32>
    %259 = arith.divf %257, %258 : vector<2x32xf32>
    %260 = vector.extract_strided_slice %247 {offsets = [0, 64], sizes = [2, 32], strides = [1, 1]} : vector<2x128xf32> to vector<2x32xf32>
    %261 = math.tanh %260 : vector<2x32xf32>
    %262 = vector.extract_strided_slice %247 {offsets = [0, 96], sizes = [2, 32], strides = [1, 1]} : vector<2x128xf32> to vector<2x32xf32>
    %263 = arith.negf %262 : vector<2x32xf32>
    %264 = math.exp %263 : vector<2x32xf32>
    %cst_60 = arith.constant 1.000000e+00 : f32
    %265 = vector.broadcast %cst_60 : f32 to vector<2x32xf32>
    %266 = arith.addf %265, %264 : vector<2x32xf32>
    %267 = arith.divf %265, %266 : vector<2x32xf32>
    %268 = arith.mulf %259, %244 : vector<2x32xf32>
    %269 = arith.mulf %253, %261 : vector<2x32xf32>
    %270 = arith.addf %268, %269 : vector<2x32xf32>
    %271 = math.tanh %270 : vector<2x32xf32>
    %272 = arith.mulf %267, %271 : vector<2x32xf32>
    %cst_61 = arith.constant dense<0.000000e+00> : vector<2x128xf32>
    %273 = tpu.matmul %272, %245, %cst_61 {dimension_numbers = #tpu.dot_dimension_numbers<[1], [0], [0], [1], [0, 0, 1, 1], [], []>} : vector<2x32xf32>, vector<32x128xf32>, vector<2x128xf32> -> vector<2x128xf32>
    %274 = arith.addf %234, %273 : vector<2x128xf32>
    %275 = vector.extract_strided_slice %274 {offsets = [0, 0], sizes = [2, 32], strides = [1, 1]} : vector<2x128xf32> to vector<2x32xf32>
    %276 = arith.negf %275 : vector<2x32xf32>
    %277 = math.exp %276 : vector<2x32xf32>
    %cst_62 = arith.constant 1.000000e+00 : f32
    %278 = vector.broadcast %cst_62 : f32 to vector<2x32xf32>
    %279 = arith.addf %278, %277 : vector<2x32xf32>
    %280 = arith.divf %278, %279 : vector<2x32xf32>
    %281 = vector.extract_strided_slice %274 {offsets = [0, 32], sizes = [2, 32], strides = [1, 1]} : vector<2x128xf32> to vector<2x32xf32>
    %282 = arith.negf %281 : vector<2x32xf32>
    %283 = math.exp %282 : vector<2x32xf32>
    %cst_63 = arith.constant 1.000000e+00 : f32
    %284 = vector.broadcast %cst_63 : f32 to vector<2x32xf32>
    %285 = arith.addf %284, %283 : vector<2x32xf32>
    %286 = arith.divf %284, %285 : vector<2x32xf32>
    %287 = vector.extract_strided_slice %274 {offsets = [0, 64], sizes = [2, 32], strides = [1, 1]} : vector<2x128xf32> to vector<2x32xf32>
    %288 = math.tanh %287 : vector<2x32xf32>
    %289 = vector.extract_strided_slice %274 {offsets = [0, 96], sizes = [2, 32], strides = [1, 1]} : vector<2x128xf32> to vector<2x32xf32>
    %290 = arith.negf %289 : vector<2x32xf32>
    %291 = math.exp %290 : vector<2x32xf32>
    %cst_64 = arith.constant 1.000000e+00 : f32
    %292 = vector.broadcast %cst_64 : f32 to vector<2x32xf32>
    %293 = arith.addf %292, %291 : vector<2x32xf32>
    %294 = arith.divf %292, %293 : vector<2x32xf32>
    %295 = arith.mulf %286, %270 : vector<2x32xf32>
    %296 = arith.mulf %280, %288 : vector<2x32xf32>
    %297 = arith.addf %295, %296 : vector<2x32xf32>
    %298 = math.tanh %297 : vector<2x32xf32>
    %299 = arith.mulf %294, %298 : vector<2x32xf32>
    %cst_65 = arith.constant dense<0.000000e+00> : vector<2x128xf32>
    %300 = tpu.matmul %299, %245, %cst_65 {dimension_numbers = #tpu.dot_dimension_numbers<[1], [0], [0], [1], [0, 0, 1, 1], [], []>} : vector<2x32xf32>, vector<32x128xf32>, vector<2x128xf32> -> vector<2x128xf32>
    %301 = arith.addf %235, %300 : vector<2x128xf32>
    %302 = vector.extract_strided_slice %301 {offsets = [0, 0], sizes = [2, 32], strides = [1, 1]} : vector<2x128xf32> to vector<2x32xf32>
    %303 = arith.negf %302 : vector<2x32xf32>
    %304 = math.exp %303 : vector<2x32xf32>
    %cst_66 = arith.constant 1.000000e+00 : f32
    %305 = vector.broadcast %cst_66 : f32 to vector<2x32xf32>
    %306 = arith.addf %305, %304 : vector<2x32xf32>
    %307 = arith.divf %305, %306 : vector<2x32xf32>
    %308 = vector.extract_strided_slice %301 {offsets = [0, 32], sizes = [2, 32], strides = [1, 1]} : vector<2x128xf32> to vector<2x32xf32>
    %309 = arith.negf %308 : vector<2x32xf32>
    %310 = math.exp %309 : vector<2x32xf32>
    %cst_67 = arith.constant 1.000000e+00 : f32
    %311 = vector.broadcast %cst_67 : f32 to vector<2x32xf32>
    %312 = arith.addf %311, %310 : vector<2x32xf32>
    %313 = arith.divf %311, %312 : vector<2x32xf32>
    %314 = vector.extract_strided_slice %301 {offsets = [0, 64], sizes = [2, 32], strides = [1, 1]} : vector<2x128xf32> to vector<2x32xf32>
    %315 = math.tanh %314 : vector<2x32xf32>
    %316 = vector.extract_strided_slice %301 {offsets = [0, 96], sizes = [2, 32], strides = [1, 1]} : vector<2x128xf32> to vector<2x32xf32>
    %317 = arith.negf %316 : vector<2x32xf32>
    %318 = math.exp %317 : vector<2x32xf32>
    %cst_68 = arith.constant 1.000000e+00 : f32
    %319 = vector.broadcast %cst_68 : f32 to vector<2x32xf32>
    %320 = arith.addf %319, %318 : vector<2x32xf32>
    %321 = arith.divf %319, %320 : vector<2x32xf32>
    %322 = arith.mulf %313, %297 : vector<2x32xf32>
    %323 = arith.mulf %307, %315 : vector<2x32xf32>
    %324 = arith.addf %322, %323 : vector<2x32xf32>
    %325 = math.tanh %324 : vector<2x32xf32>
    %326 = arith.mulf %321, %325 : vector<2x32xf32>
    %cst_69 = arith.constant dense<0.000000e+00> : vector<2x128xf32>
    %327 = tpu.matmul %326, %245, %cst_69 {dimension_numbers = #tpu.dot_dimension_numbers<[1], [0], [0], [1], [0, 0, 1, 1], [], []>} : vector<2x32xf32>, vector<32x128xf32>, vector<2x128xf32> -> vector<2x128xf32>
    %328 = arith.addf %236, %327 : vector<2x128xf32>
    %329 = vector.extract_strided_slice %328 {offsets = [0, 0], sizes = [2, 32], strides = [1, 1]} : vector<2x128xf32> to vector<2x32xf32>
    %330 = arith.negf %329 : vector<2x32xf32>
    %331 = math.exp %330 : vector<2x32xf32>
    %cst_70 = arith.constant 1.000000e+00 : f32
    %332 = vector.broadcast %cst_70 : f32 to vector<2x32xf32>
    %333 = arith.addf %332, %331 : vector<2x32xf32>
    %334 = arith.divf %332, %333 : vector<2x32xf32>
    %335 = vector.extract_strided_slice %328 {offsets = [0, 32], sizes = [2, 32], strides = [1, 1]} : vector<2x128xf32> to vector<2x32xf32>
    %336 = arith.negf %335 : vector<2x32xf32>
    %337 = math.exp %336 : vector<2x32xf32>
    %cst_71 = arith.constant 1.000000e+00 : f32
    %338 = vector.broadcast %cst_71 : f32 to vector<2x32xf32>
    %339 = arith.addf %338, %337 : vector<2x32xf32>
    %340 = arith.divf %338, %339 : vector<2x32xf32>
    %341 = vector.extract_strided_slice %328 {offsets = [0, 64], sizes = [2, 32], strides = [1, 1]} : vector<2x128xf32> to vector<2x32xf32>
    %342 = math.tanh %341 : vector<2x32xf32>
    %343 = vector.extract_strided_slice %328 {offsets = [0, 96], sizes = [2, 32], strides = [1, 1]} : vector<2x128xf32> to vector<2x32xf32>
    %344 = arith.negf %343 : vector<2x32xf32>
    %345 = math.exp %344 : vector<2x32xf32>
    %cst_72 = arith.constant 1.000000e+00 : f32
    %346 = vector.broadcast %cst_72 : f32 to vector<2x32xf32>
    %347 = arith.addf %346, %345 : vector<2x32xf32>
    %348 = arith.divf %346, %347 : vector<2x32xf32>
    %349 = arith.mulf %340, %324 : vector<2x32xf32>
    %350 = arith.mulf %334, %342 : vector<2x32xf32>
    %351 = arith.addf %349, %350 : vector<2x32xf32>
    %352 = math.tanh %351 : vector<2x32xf32>
    %353 = arith.mulf %348, %352 : vector<2x32xf32>
    %cst_73 = arith.constant dense<0.000000e+00> : vector<2x128xf32>
    %354 = tpu.matmul %353, %245, %cst_73 {dimension_numbers = #tpu.dot_dimension_numbers<[1], [0], [0], [1], [0, 0, 1, 1], [], []>} : vector<2x32xf32>, vector<32x128xf32>, vector<2x128xf32> -> vector<2x128xf32>
    %355 = arith.addf %237, %354 : vector<2x128xf32>
    %356 = vector.extract_strided_slice %355 {offsets = [0, 0], sizes = [2, 32], strides = [1, 1]} : vector<2x128xf32> to vector<2x32xf32>
    %357 = arith.negf %356 : vector<2x32xf32>
    %358 = math.exp %357 : vector<2x32xf32>
    %cst_74 = arith.constant 1.000000e+00 : f32
    %359 = vector.broadcast %cst_74 : f32 to vector<2x32xf32>
    %360 = arith.addf %359, %358 : vector<2x32xf32>
    %361 = arith.divf %359, %360 : vector<2x32xf32>
    %362 = vector.extract_strided_slice %355 {offsets = [0, 32], sizes = [2, 32], strides = [1, 1]} : vector<2x128xf32> to vector<2x32xf32>
    %363 = arith.negf %362 : vector<2x32xf32>
    %364 = math.exp %363 : vector<2x32xf32>
    %cst_75 = arith.constant 1.000000e+00 : f32
    %365 = vector.broadcast %cst_75 : f32 to vector<2x32xf32>
    %366 = arith.addf %365, %364 : vector<2x32xf32>
    %367 = arith.divf %365, %366 : vector<2x32xf32>
    %368 = vector.extract_strided_slice %355 {offsets = [0, 64], sizes = [2, 32], strides = [1, 1]} : vector<2x128xf32> to vector<2x32xf32>
    %369 = math.tanh %368 : vector<2x32xf32>
    %370 = vector.extract_strided_slice %355 {offsets = [0, 96], sizes = [2, 32], strides = [1, 1]} : vector<2x128xf32> to vector<2x32xf32>
    %371 = arith.negf %370 : vector<2x32xf32>
    %372 = math.exp %371 : vector<2x32xf32>
    %cst_76 = arith.constant 1.000000e+00 : f32
    %373 = vector.broadcast %cst_76 : f32 to vector<2x32xf32>
    %374 = arith.addf %373, %372 : vector<2x32xf32>
    %375 = arith.divf %373, %374 : vector<2x32xf32>
    %376 = arith.mulf %367, %351 : vector<2x32xf32>
    %377 = arith.mulf %361, %369 : vector<2x32xf32>
    %378 = arith.addf %376, %377 : vector<2x32xf32>
    %379 = math.tanh %378 : vector<2x32xf32>
    %380 = arith.mulf %375, %379 : vector<2x32xf32>
    %cst_77 = arith.constant dense<0.000000e+00> : vector<2x128xf32>
    %381 = tpu.matmul %380, %245, %cst_77 {dimension_numbers = #tpu.dot_dimension_numbers<[1], [0], [0], [1], [0, 0, 1, 1], [], []>} : vector<2x32xf32>, vector<32x128xf32>, vector<2x128xf32> -> vector<2x128xf32>
    %382 = arith.addf %238, %381 : vector<2x128xf32>
    %383 = vector.extract_strided_slice %382 {offsets = [0, 0], sizes = [2, 32], strides = [1, 1]} : vector<2x128xf32> to vector<2x32xf32>
    %384 = arith.negf %383 : vector<2x32xf32>
    %385 = math.exp %384 : vector<2x32xf32>
    %cst_78 = arith.constant 1.000000e+00 : f32
    %386 = vector.broadcast %cst_78 : f32 to vector<2x32xf32>
    %387 = arith.addf %386, %385 : vector<2x32xf32>
    %388 = arith.divf %386, %387 : vector<2x32xf32>
    %389 = vector.extract_strided_slice %382 {offsets = [0, 32], sizes = [2, 32], strides = [1, 1]} : vector<2x128xf32> to vector<2x32xf32>
    %390 = arith.negf %389 : vector<2x32xf32>
    %391 = math.exp %390 : vector<2x32xf32>
    %cst_79 = arith.constant 1.000000e+00 : f32
    %392 = vector.broadcast %cst_79 : f32 to vector<2x32xf32>
    %393 = arith.addf %392, %391 : vector<2x32xf32>
    %394 = arith.divf %392, %393 : vector<2x32xf32>
    %395 = vector.extract_strided_slice %382 {offsets = [0, 64], sizes = [2, 32], strides = [1, 1]} : vector<2x128xf32> to vector<2x32xf32>
    %396 = math.tanh %395 : vector<2x32xf32>
    %397 = vector.extract_strided_slice %382 {offsets = [0, 96], sizes = [2, 32], strides = [1, 1]} : vector<2x128xf32> to vector<2x32xf32>
    %398 = arith.negf %397 : vector<2x32xf32>
    %399 = math.exp %398 : vector<2x32xf32>
    %cst_80 = arith.constant 1.000000e+00 : f32
    %400 = vector.broadcast %cst_80 : f32 to vector<2x32xf32>
    %401 = arith.addf %400, %399 : vector<2x32xf32>
    %402 = arith.divf %400, %401 : vector<2x32xf32>
    %403 = arith.mulf %394, %378 : vector<2x32xf32>
    %404 = arith.mulf %388, %396 : vector<2x32xf32>
    %405 = arith.addf %403, %404 : vector<2x32xf32>
    %406 = math.tanh %405 : vector<2x32xf32>
    %407 = arith.mulf %402, %406 : vector<2x32xf32>
    %cst_81 = arith.constant dense<0.000000e+00> : vector<2x128xf32>
    %408 = tpu.matmul %407, %245, %cst_81 {dimension_numbers = #tpu.dot_dimension_numbers<[1], [0], [0], [1], [0, 0, 1, 1], [], []>} : vector<2x32xf32>, vector<32x128xf32>, vector<2x128xf32> -> vector<2x128xf32>
    %409 = arith.addf %239, %408 : vector<2x128xf32>
    %410 = vector.extract_strided_slice %409 {offsets = [0, 0], sizes = [2, 32], strides = [1, 1]} : vector<2x128xf32> to vector<2x32xf32>
    %411 = arith.negf %410 : vector<2x32xf32>
    %412 = math.exp %411 : vector<2x32xf32>
    %cst_82 = arith.constant 1.000000e+00 : f32
    %413 = vector.broadcast %cst_82 : f32 to vector<2x32xf32>
    %414 = arith.addf %413, %412 : vector<2x32xf32>
    %415 = arith.divf %413, %414 : vector<2x32xf32>
    %416 = vector.extract_strided_slice %409 {offsets = [0, 32], sizes = [2, 32], strides = [1, 1]} : vector<2x128xf32> to vector<2x32xf32>
    %417 = arith.negf %416 : vector<2x32xf32>
    %418 = math.exp %417 : vector<2x32xf32>
    %cst_83 = arith.constant 1.000000e+00 : f32
    %419 = vector.broadcast %cst_83 : f32 to vector<2x32xf32>
    %420 = arith.addf %419, %418 : vector<2x32xf32>
    %421 = arith.divf %419, %420 : vector<2x32xf32>
    %422 = vector.extract_strided_slice %409 {offsets = [0, 64], sizes = [2, 32], strides = [1, 1]} : vector<2x128xf32> to vector<2x32xf32>
    %423 = math.tanh %422 : vector<2x32xf32>
    %424 = vector.extract_strided_slice %409 {offsets = [0, 96], sizes = [2, 32], strides = [1, 1]} : vector<2x128xf32> to vector<2x32xf32>
    %425 = arith.negf %424 : vector<2x32xf32>
    %426 = math.exp %425 : vector<2x32xf32>
    %cst_84 = arith.constant 1.000000e+00 : f32
    %427 = vector.broadcast %cst_84 : f32 to vector<2x32xf32>
    %428 = arith.addf %427, %426 : vector<2x32xf32>
    %429 = arith.divf %427, %428 : vector<2x32xf32>
    %430 = arith.mulf %421, %405 : vector<2x32xf32>
    %431 = arith.mulf %415, %423 : vector<2x32xf32>
    %432 = arith.addf %430, %431 : vector<2x32xf32>
    %433 = math.tanh %432 : vector<2x32xf32>
    %434 = arith.mulf %429, %433 : vector<2x32xf32>
    %cst_85 = arith.constant dense<0.000000e+00> : vector<2x128xf32>
    %435 = tpu.matmul %434, %245, %cst_85 {dimension_numbers = #tpu.dot_dimension_numbers<[1], [0], [0], [1], [0, 0, 1, 1], [], []>} : vector<2x32xf32>, vector<32x128xf32>, vector<2x128xf32> -> vector<2x128xf32>
    %436 = arith.addf %240, %435 : vector<2x128xf32>
    %437 = vector.extract_strided_slice %436 {offsets = [0, 0], sizes = [2, 32], strides = [1, 1]} : vector<2x128xf32> to vector<2x32xf32>
    %438 = arith.negf %437 : vector<2x32xf32>
    %439 = math.exp %438 : vector<2x32xf32>
    %cst_86 = arith.constant 1.000000e+00 : f32
    %440 = vector.broadcast %cst_86 : f32 to vector<2x32xf32>
    %441 = arith.addf %440, %439 : vector<2x32xf32>
    %442 = arith.divf %440, %441 : vector<2x32xf32>
    %443 = vector.extract_strided_slice %436 {offsets = [0, 32], sizes = [2, 32], strides = [1, 1]} : vector<2x128xf32> to vector<2x32xf32>
    %444 = arith.negf %443 : vector<2x32xf32>
    %445 = math.exp %444 : vector<2x32xf32>
    %cst_87 = arith.constant 1.000000e+00 : f32
    %446 = vector.broadcast %cst_87 : f32 to vector<2x32xf32>
    %447 = arith.addf %446, %445 : vector<2x32xf32>
    %448 = arith.divf %446, %447 : vector<2x32xf32>
    %449 = vector.extract_strided_slice %436 {offsets = [0, 64], sizes = [2, 32], strides = [1, 1]} : vector<2x128xf32> to vector<2x32xf32>
    %450 = math.tanh %449 : vector<2x32xf32>
    %451 = vector.extract_strided_slice %436 {offsets = [0, 96], sizes = [2, 32], strides = [1, 1]} : vector<2x128xf32> to vector<2x32xf32>
    %452 = arith.negf %451 : vector<2x32xf32>
    %453 = math.exp %452 : vector<2x32xf32>
    %cst_88 = arith.constant 1.000000e+00 : f32
    %454 = vector.broadcast %cst_88 : f32 to vector<2x32xf32>
    %455 = arith.addf %454, %453 : vector<2x32xf32>
    %456 = arith.divf %454, %455 : vector<2x32xf32>
    %457 = arith.mulf %448, %432 : vector<2x32xf32>
    %458 = arith.mulf %442, %450 : vector<2x32xf32>
    %459 = arith.addf %457, %458 : vector<2x32xf32>
    %460 = math.tanh %459 : vector<2x32xf32>
    %461 = arith.mulf %456, %460 : vector<2x32xf32>
    %462 = tpu.concatenate %272, %299, %326, %353, %380, %407, %434, %461 in 0 : vector<2x32xf32>, vector<2x32xf32>, vector<2x32xf32>, vector<2x32xf32>, vector<2x32xf32>, vector<2x32xf32>, vector<2x32xf32>, vector<2x32xf32> -> vector<16x32xf32>
    %c0_89 = arith.constant 0 : index
    %c0_90 = arith.constant 0 : index
    %463 = vector.load %arg9[%c0_89, %c0_90] : memref<32x64xf32, #tpu.memory_space<vmem>>, vector<32x64xf32>
    %cst_91 = arith.constant dense<0.000000e+00> : vector<16x64xf32>
    %464 = tpu.matmul %462, %463, %cst_91 {dimension_numbers = #tpu.dot_dimension_numbers<[1], [0], [0], [1], [0, 0, 1, 1], [], []>} : vector<16x32xf32>, vector<32x64xf32>, vector<16x64xf32> -> vector<16x64xf32>
    %c0_92 = arith.constant 0 : index
    %c0_93 = arith.constant 0 : index
    %465 = vector.load %arg11[%c0_92, %c0_93] : memref<1x64xf32, #tpu.memory_space<vmem>>, vector<1x64xf32>
    %466 = vector.broadcast %465 : vector<1x64xf32> to vector<16x64xf32>
    %467 = arith.addf %464, %466 : vector<16x64xf32>
    %468 = vector.extract_strided_slice %467 {offsets = [0, 0], sizes = [2, 64], strides = [1, 1]} : vector<16x64xf32> to vector<2x64xf32>
    %469 = vector.extract_strided_slice %467 {offsets = [2, 0], sizes = [2, 64], strides = [1, 1]} : vector<16x64xf32> to vector<2x64xf32>
    %470 = vector.extract_strided_slice %467 {offsets = [4, 0], sizes = [2, 64], strides = [1, 1]} : vector<16x64xf32> to vector<2x64xf32>
    %471 = vector.extract_strided_slice %467 {offsets = [6, 0], sizes = [2, 64], strides = [1, 1]} : vector<16x64xf32> to vector<2x64xf32>
    %472 = vector.extract_strided_slice %467 {offsets = [8, 0], sizes = [2, 64], strides = [1, 1]} : vector<16x64xf32> to vector<2x64xf32>
    %473 = vector.extract_strided_slice %467 {offsets = [10, 0], sizes = [2, 64], strides = [1, 1]} : vector<16x64xf32> to vector<2x64xf32>
    %474 = vector.extract_strided_slice %467 {offsets = [12, 0], sizes = [2, 64], strides = [1, 1]} : vector<16x64xf32> to vector<2x64xf32>
    %475 = vector.extract_strided_slice %467 {offsets = [14, 0], sizes = [2, 64], strides = [1, 1]} : vector<16x64xf32> to vector<2x64xf32>
    %476 = tpu.concatenate %272, %299, %326, %353, %380, %407, %434, %461 in 0 : vector<2x32xf32>, vector<2x32xf32>, vector<2x32xf32>, vector<2x32xf32>, vector<2x32xf32>, vector<2x32xf32>, vector<2x32xf32>, vector<2x32xf32> -> vector<16x32xf32>
    %c0_94 = arith.constant 0 : index
    %c0_95 = arith.constant 0 : index
    %477 = vector.load %arg12[%c0_94, %c0_95] : memref<32x64xf32, #tpu.memory_space<vmem>>, vector<32x64xf32>
    %cst_96 = arith.constant dense<0.000000e+00> : vector<16x64xf32>
    %478 = tpu.matmul %476, %477, %cst_96 {dimension_numbers = #tpu.dot_dimension_numbers<[1], [0], [0], [1], [0, 0, 1, 1], [], []>} : vector<16x32xf32>, vector<32x64xf32>, vector<16x64xf32> -> vector<16x64xf32>
    %c0_97 = arith.constant 0 : index
    %c0_98 = arith.constant 0 : index
    %479 = vector.load %arg14[%c0_97, %c0_98] : memref<1x64xf32, #tpu.memory_space<vmem>>, vector<1x64xf32>
    %480 = vector.broadcast %479 : vector<1x64xf32> to vector<16x64xf32>
    %481 = arith.addf %478, %480 : vector<16x64xf32>
    %482 = vector.extract_strided_slice %481 {offsets = [0, 0], sizes = [2, 64], strides = [1, 1]} : vector<16x64xf32> to vector<2x64xf32>
    %483 = vector.extract_strided_slice %481 {offsets = [2, 0], sizes = [2, 64], strides = [1, 1]} : vector<16x64xf32> to vector<2x64xf32>
    %484 = vector.extract_strided_slice %481 {offsets = [4, 0], sizes = [2, 64], strides = [1, 1]} : vector<16x64xf32> to vector<2x64xf32>
    %485 = vector.extract_strided_slice %481 {offsets = [6, 0], sizes = [2, 64], strides = [1, 1]} : vector<16x64xf32> to vector<2x64xf32>
    %486 = vector.extract_strided_slice %481 {offsets = [8, 0], sizes = [2, 64], strides = [1, 1]} : vector<16x64xf32> to vector<2x64xf32>
    %487 = vector.extract_strided_slice %481 {offsets = [10, 0], sizes = [2, 64], strides = [1, 1]} : vector<16x64xf32> to vector<2x64xf32>
    %488 = vector.extract_strided_slice %481 {offsets = [12, 0], sizes = [2, 64], strides = [1, 1]} : vector<16x64xf32> to vector<2x64xf32>
    %489 = vector.extract_strided_slice %481 {offsets = [14, 0], sizes = [2, 64], strides = [1, 1]} : vector<16x64xf32> to vector<2x64xf32>
    %cst_99 = arith.constant 0.000000e+00 : f32
    %490 = vector.broadcast %cst_99 : f32 to vector<2x16xf32>
    %c0_100 = arith.constant 0 : index
    %c0_101 = arith.constant 0 : index
    %491 = vector.load %arg10[%c0_100, %c0_101] : memref<16x64xf32, #tpu.memory_space<vmem>>, vector<16x64xf32>
    %cst_102 = arith.constant dense<0.000000e+00> : vector<2x64xf32>
    %492 = tpu.matmul %490, %491, %cst_102 {dimension_numbers = #tpu.dot_dimension_numbers<[1], [0], [0], [1], [0, 0, 1, 1], [], []>} : vector<2x16xf32>, vector<16x64xf32>, vector<2x64xf32> -> vector<2x64xf32>
    %493 = arith.addf %468, %492 : vector<2x64xf32>
    %494 = vector.extract_strided_slice %493 {offsets = [0, 0], sizes = [2, 16], strides = [1, 1]} : vector<2x64xf32> to vector<2x16xf32>
    %495 = arith.negf %494 : vector<2x16xf32>
    %496 = math.exp %495 : vector<2x16xf32>
    %cst_103 = arith.constant 1.000000e+00 : f32
    %497 = vector.broadcast %cst_103 : f32 to vector<2x16xf32>
    %498 = arith.addf %497, %496 : vector<2x16xf32>
    %499 = arith.divf %497, %498 : vector<2x16xf32>
    %500 = vector.extract_strided_slice %493 {offsets = [0, 16], sizes = [2, 16], strides = [1, 1]} : vector<2x64xf32> to vector<2x16xf32>
    %501 = arith.negf %500 : vector<2x16xf32>
    %502 = math.exp %501 : vector<2x16xf32>
    %cst_104 = arith.constant 1.000000e+00 : f32
    %503 = vector.broadcast %cst_104 : f32 to vector<2x16xf32>
    %504 = arith.addf %503, %502 : vector<2x16xf32>
    %505 = arith.divf %503, %504 : vector<2x16xf32>
    %506 = vector.extract_strided_slice %493 {offsets = [0, 32], sizes = [2, 16], strides = [1, 1]} : vector<2x64xf32> to vector<2x16xf32>
    %507 = math.tanh %506 : vector<2x16xf32>
    %508 = vector.extract_strided_slice %493 {offsets = [0, 48], sizes = [2, 16], strides = [1, 1]} : vector<2x64xf32> to vector<2x16xf32>
    %509 = arith.negf %508 : vector<2x16xf32>
    %510 = math.exp %509 : vector<2x16xf32>
    %cst_105 = arith.constant 1.000000e+00 : f32
    %511 = vector.broadcast %cst_105 : f32 to vector<2x16xf32>
    %512 = arith.addf %511, %510 : vector<2x16xf32>
    %513 = arith.divf %511, %512 : vector<2x16xf32>
    %514 = arith.mulf %505, %490 : vector<2x16xf32>
    %515 = arith.mulf %499, %507 : vector<2x16xf32>
    %516 = arith.addf %514, %515 : vector<2x16xf32>
    %517 = math.tanh %516 : vector<2x16xf32>
    %518 = arith.mulf %513, %517 : vector<2x16xf32>
    %cst_106 = arith.constant dense<0.000000e+00> : vector<2x64xf32>
    %519 = tpu.matmul %518, %491, %cst_106 {dimension_numbers = #tpu.dot_dimension_numbers<[1], [0], [0], [1], [0, 0, 1, 1], [], []>} : vector<2x16xf32>, vector<16x64xf32>, vector<2x64xf32> -> vector<2x64xf32>
    %520 = arith.addf %469, %519 : vector<2x64xf32>
    %521 = vector.extract_strided_slice %520 {offsets = [0, 0], sizes = [2, 16], strides = [1, 1]} : vector<2x64xf32> to vector<2x16xf32>
    %522 = arith.negf %521 : vector<2x16xf32>
    %523 = math.exp %522 : vector<2x16xf32>
    %cst_107 = arith.constant 1.000000e+00 : f32
    %524 = vector.broadcast %cst_107 : f32 to vector<2x16xf32>
    %525 = arith.addf %524, %523 : vector<2x16xf32>
    %526 = arith.divf %524, %525 : vector<2x16xf32>
    %527 = vector.extract_strided_slice %520 {offsets = [0, 16], sizes = [2, 16], strides = [1, 1]} : vector<2x64xf32> to vector<2x16xf32>
    %528 = arith.negf %527 : vector<2x16xf32>
    %529 = math.exp %528 : vector<2x16xf32>
    %cst_108 = arith.constant 1.000000e+00 : f32
    %530 = vector.broadcast %cst_108 : f32 to vector<2x16xf32>
    %531 = arith.addf %530, %529 : vector<2x16xf32>
    %532 = arith.divf %530, %531 : vector<2x16xf32>
    %533 = vector.extract_strided_slice %520 {offsets = [0, 32], sizes = [2, 16], strides = [1, 1]} : vector<2x64xf32> to vector<2x16xf32>
    %534 = math.tanh %533 : vector<2x16xf32>
    %535 = vector.extract_strided_slice %520 {offsets = [0, 48], sizes = [2, 16], strides = [1, 1]} : vector<2x64xf32> to vector<2x16xf32>
    %536 = arith.negf %535 : vector<2x16xf32>
    %537 = math.exp %536 : vector<2x16xf32>
    %cst_109 = arith.constant 1.000000e+00 : f32
    %538 = vector.broadcast %cst_109 : f32 to vector<2x16xf32>
    %539 = arith.addf %538, %537 : vector<2x16xf32>
    %540 = arith.divf %538, %539 : vector<2x16xf32>
    %541 = arith.mulf %532, %516 : vector<2x16xf32>
    %542 = arith.mulf %526, %534 : vector<2x16xf32>
    %543 = arith.addf %541, %542 : vector<2x16xf32>
    %544 = math.tanh %543 : vector<2x16xf32>
    %545 = arith.mulf %540, %544 : vector<2x16xf32>
    %cst_110 = arith.constant dense<0.000000e+00> : vector<2x64xf32>
    %546 = tpu.matmul %545, %491, %cst_110 {dimension_numbers = #tpu.dot_dimension_numbers<[1], [0], [0], [1], [0, 0, 1, 1], [], []>} : vector<2x16xf32>, vector<16x64xf32>, vector<2x64xf32> -> vector<2x64xf32>
    %547 = arith.addf %470, %546 : vector<2x64xf32>
    %548 = vector.extract_strided_slice %547 {offsets = [0, 0], sizes = [2, 16], strides = [1, 1]} : vector<2x64xf32> to vector<2x16xf32>
    %549 = arith.negf %548 : vector<2x16xf32>
    %550 = math.exp %549 : vector<2x16xf32>
    %cst_111 = arith.constant 1.000000e+00 : f32
    %551 = vector.broadcast %cst_111 : f32 to vector<2x16xf32>
    %552 = arith.addf %551, %550 : vector<2x16xf32>
    %553 = arith.divf %551, %552 : vector<2x16xf32>
    %554 = vector.extract_strided_slice %547 {offsets = [0, 16], sizes = [2, 16], strides = [1, 1]} : vector<2x64xf32> to vector<2x16xf32>
    %555 = arith.negf %554 : vector<2x16xf32>
    %556 = math.exp %555 : vector<2x16xf32>
    %cst_112 = arith.constant 1.000000e+00 : f32
    %557 = vector.broadcast %cst_112 : f32 to vector<2x16xf32>
    %558 = arith.addf %557, %556 : vector<2x16xf32>
    %559 = arith.divf %557, %558 : vector<2x16xf32>
    %560 = vector.extract_strided_slice %547 {offsets = [0, 32], sizes = [2, 16], strides = [1, 1]} : vector<2x64xf32> to vector<2x16xf32>
    %561 = math.tanh %560 : vector<2x16xf32>
    %562 = vector.extract_strided_slice %547 {offsets = [0, 48], sizes = [2, 16], strides = [1, 1]} : vector<2x64xf32> to vector<2x16xf32>
    %563 = arith.negf %562 : vector<2x16xf32>
    %564 = math.exp %563 : vector<2x16xf32>
    %cst_113 = arith.constant 1.000000e+00 : f32
    %565 = vector.broadcast %cst_113 : f32 to vector<2x16xf32>
    %566 = arith.addf %565, %564 : vector<2x16xf32>
    %567 = arith.divf %565, %566 : vector<2x16xf32>
    %568 = arith.mulf %559, %543 : vector<2x16xf32>
    %569 = arith.mulf %553, %561 : vector<2x16xf32>
    %570 = arith.addf %568, %569 : vector<2x16xf32>
    %571 = math.tanh %570 : vector<2x16xf32>
    %572 = arith.mulf %567, %571 : vector<2x16xf32>
    %cst_114 = arith.constant dense<0.000000e+00> : vector<2x64xf32>
    %573 = tpu.matmul %572, %491, %cst_114 {dimension_numbers = #tpu.dot_dimension_numbers<[1], [0], [0], [1], [0, 0, 1, 1], [], []>} : vector<2x16xf32>, vector<16x64xf32>, vector<2x64xf32> -> vector<2x64xf32>
    %574 = arith.addf %471, %573 : vector<2x64xf32>
    %575 = vector.extract_strided_slice %574 {offsets = [0, 0], sizes = [2, 16], strides = [1, 1]} : vector<2x64xf32> to vector<2x16xf32>
    %576 = arith.negf %575 : vector<2x16xf32>
    %577 = math.exp %576 : vector<2x16xf32>
    %cst_115 = arith.constant 1.000000e+00 : f32
    %578 = vector.broadcast %cst_115 : f32 to vector<2x16xf32>
    %579 = arith.addf %578, %577 : vector<2x16xf32>
    %580 = arith.divf %578, %579 : vector<2x16xf32>
    %581 = vector.extract_strided_slice %574 {offsets = [0, 16], sizes = [2, 16], strides = [1, 1]} : vector<2x64xf32> to vector<2x16xf32>
    %582 = arith.negf %581 : vector<2x16xf32>
    %583 = math.exp %582 : vector<2x16xf32>
    %cst_116 = arith.constant 1.000000e+00 : f32
    %584 = vector.broadcast %cst_116 : f32 to vector<2x16xf32>
    %585 = arith.addf %584, %583 : vector<2x16xf32>
    %586 = arith.divf %584, %585 : vector<2x16xf32>
    %587 = vector.extract_strided_slice %574 {offsets = [0, 32], sizes = [2, 16], strides = [1, 1]} : vector<2x64xf32> to vector<2x16xf32>
    %588 = math.tanh %587 : vector<2x16xf32>
    %589 = vector.extract_strided_slice %574 {offsets = [0, 48], sizes = [2, 16], strides = [1, 1]} : vector<2x64xf32> to vector<2x16xf32>
    %590 = arith.negf %589 : vector<2x16xf32>
    %591 = math.exp %590 : vector<2x16xf32>
    %cst_117 = arith.constant 1.000000e+00 : f32
    %592 = vector.broadcast %cst_117 : f32 to vector<2x16xf32>
    %593 = arith.addf %592, %591 : vector<2x16xf32>
    %594 = arith.divf %592, %593 : vector<2x16xf32>
    %595 = arith.mulf %586, %570 : vector<2x16xf32>
    %596 = arith.mulf %580, %588 : vector<2x16xf32>
    %597 = arith.addf %595, %596 : vector<2x16xf32>
    %598 = math.tanh %597 : vector<2x16xf32>
    %599 = arith.mulf %594, %598 : vector<2x16xf32>
    %cst_118 = arith.constant dense<0.000000e+00> : vector<2x64xf32>
    %600 = tpu.matmul %599, %491, %cst_118 {dimension_numbers = #tpu.dot_dimension_numbers<[1], [0], [0], [1], [0, 0, 1, 1], [], []>} : vector<2x16xf32>, vector<16x64xf32>, vector<2x64xf32> -> vector<2x64xf32>
    %601 = arith.addf %472, %600 : vector<2x64xf32>
    %602 = vector.extract_strided_slice %601 {offsets = [0, 0], sizes = [2, 16], strides = [1, 1]} : vector<2x64xf32> to vector<2x16xf32>
    %603 = arith.negf %602 : vector<2x16xf32>
    %604 = math.exp %603 : vector<2x16xf32>
    %cst_119 = arith.constant 1.000000e+00 : f32
    %605 = vector.broadcast %cst_119 : f32 to vector<2x16xf32>
    %606 = arith.addf %605, %604 : vector<2x16xf32>
    %607 = arith.divf %605, %606 : vector<2x16xf32>
    %608 = vector.extract_strided_slice %601 {offsets = [0, 16], sizes = [2, 16], strides = [1, 1]} : vector<2x64xf32> to vector<2x16xf32>
    %609 = arith.negf %608 : vector<2x16xf32>
    %610 = math.exp %609 : vector<2x16xf32>
    %cst_120 = arith.constant 1.000000e+00 : f32
    %611 = vector.broadcast %cst_120 : f32 to vector<2x16xf32>
    %612 = arith.addf %611, %610 : vector<2x16xf32>
    %613 = arith.divf %611, %612 : vector<2x16xf32>
    %614 = vector.extract_strided_slice %601 {offsets = [0, 32], sizes = [2, 16], strides = [1, 1]} : vector<2x64xf32> to vector<2x16xf32>
    %615 = math.tanh %614 : vector<2x16xf32>
    %616 = vector.extract_strided_slice %601 {offsets = [0, 48], sizes = [2, 16], strides = [1, 1]} : vector<2x64xf32> to vector<2x16xf32>
    %617 = arith.negf %616 : vector<2x16xf32>
    %618 = math.exp %617 : vector<2x16xf32>
    %cst_121 = arith.constant 1.000000e+00 : f32
    %619 = vector.broadcast %cst_121 : f32 to vector<2x16xf32>
    %620 = arith.addf %619, %618 : vector<2x16xf32>
    %621 = arith.divf %619, %620 : vector<2x16xf32>
    %622 = arith.mulf %613, %597 : vector<2x16xf32>
    %623 = arith.mulf %607, %615 : vector<2x16xf32>
    %624 = arith.addf %622, %623 : vector<2x16xf32>
    %625 = math.tanh %624 : vector<2x16xf32>
    %626 = arith.mulf %621, %625 : vector<2x16xf32>
    %cst_122 = arith.constant dense<0.000000e+00> : vector<2x64xf32>
    %627 = tpu.matmul %626, %491, %cst_122 {dimension_numbers = #tpu.dot_dimension_numbers<[1], [0], [0], [1], [0, 0, 1, 1], [], []>} : vector<2x16xf32>, vector<16x64xf32>, vector<2x64xf32> -> vector<2x64xf32>
    %628 = arith.addf %473, %627 : vector<2x64xf32>
    %629 = vector.extract_strided_slice %628 {offsets = [0, 0], sizes = [2, 16], strides = [1, 1]} : vector<2x64xf32> to vector<2x16xf32>
    %630 = arith.negf %629 : vector<2x16xf32>
    %631 = math.exp %630 : vector<2x16xf32>
    %cst_123 = arith.constant 1.000000e+00 : f32
    %632 = vector.broadcast %cst_123 : f32 to vector<2x16xf32>
    %633 = arith.addf %632, %631 : vector<2x16xf32>
    %634 = arith.divf %632, %633 : vector<2x16xf32>
    %635 = vector.extract_strided_slice %628 {offsets = [0, 16], sizes = [2, 16], strides = [1, 1]} : vector<2x64xf32> to vector<2x16xf32>
    %636 = arith.negf %635 : vector<2x16xf32>
    %637 = math.exp %636 : vector<2x16xf32>
    %cst_124 = arith.constant 1.000000e+00 : f32
    %638 = vector.broadcast %cst_124 : f32 to vector<2x16xf32>
    %639 = arith.addf %638, %637 : vector<2x16xf32>
    %640 = arith.divf %638, %639 : vector<2x16xf32>
    %641 = vector.extract_strided_slice %628 {offsets = [0, 32], sizes = [2, 16], strides = [1, 1]} : vector<2x64xf32> to vector<2x16xf32>
    %642 = math.tanh %641 : vector<2x16xf32>
    %643 = vector.extract_strided_slice %628 {offsets = [0, 48], sizes = [2, 16], strides = [1, 1]} : vector<2x64xf32> to vector<2x16xf32>
    %644 = arith.negf %643 : vector<2x16xf32>
    %645 = math.exp %644 : vector<2x16xf32>
    %cst_125 = arith.constant 1.000000e+00 : f32
    %646 = vector.broadcast %cst_125 : f32 to vector<2x16xf32>
    %647 = arith.addf %646, %645 : vector<2x16xf32>
    %648 = arith.divf %646, %647 : vector<2x16xf32>
    %649 = arith.mulf %640, %624 : vector<2x16xf32>
    %650 = arith.mulf %634, %642 : vector<2x16xf32>
    %651 = arith.addf %649, %650 : vector<2x16xf32>
    %652 = math.tanh %651 : vector<2x16xf32>
    %653 = arith.mulf %648, %652 : vector<2x16xf32>
    %cst_126 = arith.constant dense<0.000000e+00> : vector<2x64xf32>
    %654 = tpu.matmul %653, %491, %cst_126 {dimension_numbers = #tpu.dot_dimension_numbers<[1], [0], [0], [1], [0, 0, 1, 1], [], []>} : vector<2x16xf32>, vector<16x64xf32>, vector<2x64xf32> -> vector<2x64xf32>
    %655 = arith.addf %474, %654 : vector<2x64xf32>
    %656 = vector.extract_strided_slice %655 {offsets = [0, 0], sizes = [2, 16], strides = [1, 1]} : vector<2x64xf32> to vector<2x16xf32>
    %657 = arith.negf %656 : vector<2x16xf32>
    %658 = math.exp %657 : vector<2x16xf32>
    %cst_127 = arith.constant 1.000000e+00 : f32
    %659 = vector.broadcast %cst_127 : f32 to vector<2x16xf32>
    %660 = arith.addf %659, %658 : vector<2x16xf32>
    %661 = arith.divf %659, %660 : vector<2x16xf32>
    %662 = vector.extract_strided_slice %655 {offsets = [0, 16], sizes = [2, 16], strides = [1, 1]} : vector<2x64xf32> to vector<2x16xf32>
    %663 = arith.negf %662 : vector<2x16xf32>
    %664 = math.exp %663 : vector<2x16xf32>
    %cst_128 = arith.constant 1.000000e+00 : f32
    %665 = vector.broadcast %cst_128 : f32 to vector<2x16xf32>
    %666 = arith.addf %665, %664 : vector<2x16xf32>
    %667 = arith.divf %665, %666 : vector<2x16xf32>
    %668 = vector.extract_strided_slice %655 {offsets = [0, 32], sizes = [2, 16], strides = [1, 1]} : vector<2x64xf32> to vector<2x16xf32>
    %669 = math.tanh %668 : vector<2x16xf32>
    %670 = vector.extract_strided_slice %655 {offsets = [0, 48], sizes = [2, 16], strides = [1, 1]} : vector<2x64xf32> to vector<2x16xf32>
    %671 = arith.negf %670 : vector<2x16xf32>
    %672 = math.exp %671 : vector<2x16xf32>
    %cst_129 = arith.constant 1.000000e+00 : f32
    %673 = vector.broadcast %cst_129 : f32 to vector<2x16xf32>
    %674 = arith.addf %673, %672 : vector<2x16xf32>
    %675 = arith.divf %673, %674 : vector<2x16xf32>
    %676 = arith.mulf %667, %651 : vector<2x16xf32>
    %677 = arith.mulf %661, %669 : vector<2x16xf32>
    %678 = arith.addf %676, %677 : vector<2x16xf32>
    %679 = math.tanh %678 : vector<2x16xf32>
    %680 = arith.mulf %675, %679 : vector<2x16xf32>
    %cst_130 = arith.constant dense<0.000000e+00> : vector<2x64xf32>
    %681 = tpu.matmul %680, %491, %cst_130 {dimension_numbers = #tpu.dot_dimension_numbers<[1], [0], [0], [1], [0, 0, 1, 1], [], []>} : vector<2x16xf32>, vector<16x64xf32>, vector<2x64xf32> -> vector<2x64xf32>
    %682 = arith.addf %475, %681 : vector<2x64xf32>
    %683 = vector.extract_strided_slice %682 {offsets = [0, 0], sizes = [2, 16], strides = [1, 1]} : vector<2x64xf32> to vector<2x16xf32>
    %684 = arith.negf %683 : vector<2x16xf32>
    %685 = math.exp %684 : vector<2x16xf32>
    %cst_131 = arith.constant 1.000000e+00 : f32
    %686 = vector.broadcast %cst_131 : f32 to vector<2x16xf32>
    %687 = arith.addf %686, %685 : vector<2x16xf32>
    %688 = arith.divf %686, %687 : vector<2x16xf32>
    %689 = vector.extract_strided_slice %682 {offsets = [0, 16], sizes = [2, 16], strides = [1, 1]} : vector<2x64xf32> to vector<2x16xf32>
    %690 = arith.negf %689 : vector<2x16xf32>
    %691 = math.exp %690 : vector<2x16xf32>
    %cst_132 = arith.constant 1.000000e+00 : f32
    %692 = vector.broadcast %cst_132 : f32 to vector<2x16xf32>
    %693 = arith.addf %692, %691 : vector<2x16xf32>
    %694 = arith.divf %692, %693 : vector<2x16xf32>
    %695 = vector.extract_strided_slice %682 {offsets = [0, 32], sizes = [2, 16], strides = [1, 1]} : vector<2x64xf32> to vector<2x16xf32>
    %696 = math.tanh %695 : vector<2x16xf32>
    %697 = vector.extract_strided_slice %682 {offsets = [0, 48], sizes = [2, 16], strides = [1, 1]} : vector<2x64xf32> to vector<2x16xf32>
    %698 = arith.negf %697 : vector<2x16xf32>
    %699 = math.exp %698 : vector<2x16xf32>
    %cst_133 = arith.constant 1.000000e+00 : f32
    %700 = vector.broadcast %cst_133 : f32 to vector<2x16xf32>
    %701 = arith.addf %700, %699 : vector<2x16xf32>
    %702 = arith.divf %700, %701 : vector<2x16xf32>
    %703 = arith.mulf %694, %678 : vector<2x16xf32>
    %704 = arith.mulf %688, %696 : vector<2x16xf32>
    %705 = arith.addf %703, %704 : vector<2x16xf32>
    %706 = math.tanh %705 : vector<2x16xf32>
    %707 = arith.mulf %702, %706 : vector<2x16xf32>
    %c0_134 = arith.constant 0 : index
    %c0_135 = arith.constant 0 : index
    %708 = vector.load %arg13[%c0_134, %c0_135] : memref<16x64xf32, #tpu.memory_space<vmem>>, vector<16x64xf32>
    %cst_136 = arith.constant dense<0.000000e+00> : vector<2x64xf32>
    %709 = tpu.matmul %490, %708, %cst_136 {dimension_numbers = #tpu.dot_dimension_numbers<[1], [0], [0], [1], [0, 0, 1, 1], [], []>} : vector<2x16xf32>, vector<16x64xf32>, vector<2x64xf32> -> vector<2x64xf32>
    %710 = arith.addf %489, %709 : vector<2x64xf32>
    %711 = vector.extract_strided_slice %710 {offsets = [0, 0], sizes = [2, 16], strides = [1, 1]} : vector<2x64xf32> to vector<2x16xf32>
    %712 = arith.negf %711 : vector<2x16xf32>
    %713 = math.exp %712 : vector<2x16xf32>
    %cst_137 = arith.constant 1.000000e+00 : f32
    %714 = vector.broadcast %cst_137 : f32 to vector<2x16xf32>
    %715 = arith.addf %714, %713 : vector<2x16xf32>
    %716 = arith.divf %714, %715 : vector<2x16xf32>
    %717 = vector.extract_strided_slice %710 {offsets = [0, 16], sizes = [2, 16], strides = [1, 1]} : vector<2x64xf32> to vector<2x16xf32>
    %718 = arith.negf %717 : vector<2x16xf32>
    %719 = math.exp %718 : vector<2x16xf32>
    %cst_138 = arith.constant 1.000000e+00 : f32
    %720 = vector.broadcast %cst_138 : f32 to vector<2x16xf32>
    %721 = arith.addf %720, %719 : vector<2x16xf32>
    %722 = arith.divf %720, %721 : vector<2x16xf32>
    %723 = vector.extract_strided_slice %710 {offsets = [0, 32], sizes = [2, 16], strides = [1, 1]} : vector<2x64xf32> to vector<2x16xf32>
    %724 = math.tanh %723 : vector<2x16xf32>
    %725 = vector.extract_strided_slice %710 {offsets = [0, 48], sizes = [2, 16], strides = [1, 1]} : vector<2x64xf32> to vector<2x16xf32>
    %726 = arith.negf %725 : vector<2x16xf32>
    %727 = math.exp %726 : vector<2x16xf32>
    %cst_139 = arith.constant 1.000000e+00 : f32
    %728 = vector.broadcast %cst_139 : f32 to vector<2x16xf32>
    %729 = arith.addf %728, %727 : vector<2x16xf32>
    %730 = arith.divf %728, %729 : vector<2x16xf32>
    %731 = arith.mulf %722, %490 : vector<2x16xf32>
    %732 = arith.mulf %716, %724 : vector<2x16xf32>
    %733 = arith.addf %731, %732 : vector<2x16xf32>
    %734 = math.tanh %733 : vector<2x16xf32>
    %735 = arith.mulf %730, %734 : vector<2x16xf32>
    %cst_140 = arith.constant dense<0.000000e+00> : vector<2x64xf32>
    %736 = tpu.matmul %735, %708, %cst_140 {dimension_numbers = #tpu.dot_dimension_numbers<[1], [0], [0], [1], [0, 0, 1, 1], [], []>} : vector<2x16xf32>, vector<16x64xf32>, vector<2x64xf32> -> vector<2x64xf32>
    %737 = arith.addf %488, %736 : vector<2x64xf32>
    %738 = vector.extract_strided_slice %737 {offsets = [0, 0], sizes = [2, 16], strides = [1, 1]} : vector<2x64xf32> to vector<2x16xf32>
    %739 = arith.negf %738 : vector<2x16xf32>
    %740 = math.exp %739 : vector<2x16xf32>
    %cst_141 = arith.constant 1.000000e+00 : f32
    %741 = vector.broadcast %cst_141 : f32 to vector<2x16xf32>
    %742 = arith.addf %741, %740 : vector<2x16xf32>
    %743 = arith.divf %741, %742 : vector<2x16xf32>
    %744 = vector.extract_strided_slice %737 {offsets = [0, 16], sizes = [2, 16], strides = [1, 1]} : vector<2x64xf32> to vector<2x16xf32>
    %745 = arith.negf %744 : vector<2x16xf32>
    %746 = math.exp %745 : vector<2x16xf32>
    %cst_142 = arith.constant 1.000000e+00 : f32
    %747 = vector.broadcast %cst_142 : f32 to vector<2x16xf32>
    %748 = arith.addf %747, %746 : vector<2x16xf32>
    %749 = arith.divf %747, %748 : vector<2x16xf32>
    %750 = vector.extract_strided_slice %737 {offsets = [0, 32], sizes = [2, 16], strides = [1, 1]} : vector<2x64xf32> to vector<2x16xf32>
    %751 = math.tanh %750 : vector<2x16xf32>
    %752 = vector.extract_strided_slice %737 {offsets = [0, 48], sizes = [2, 16], strides = [1, 1]} : vector<2x64xf32> to vector<2x16xf32>
    %753 = arith.negf %752 : vector<2x16xf32>
    %754 = math.exp %753 : vector<2x16xf32>
    %cst_143 = arith.constant 1.000000e+00 : f32
    %755 = vector.broadcast %cst_143 : f32 to vector<2x16xf32>
    %756 = arith.addf %755, %754 : vector<2x16xf32>
    %757 = arith.divf %755, %756 : vector<2x16xf32>
    %758 = arith.mulf %749, %733 : vector<2x16xf32>
    %759 = arith.mulf %743, %751 : vector<2x16xf32>
    %760 = arith.addf %758, %759 : vector<2x16xf32>
    %761 = math.tanh %760 : vector<2x16xf32>
    %762 = arith.mulf %757, %761 : vector<2x16xf32>
    %cst_144 = arith.constant dense<0.000000e+00> : vector<2x64xf32>
    %763 = tpu.matmul %762, %708, %cst_144 {dimension_numbers = #tpu.dot_dimension_numbers<[1], [0], [0], [1], [0, 0, 1, 1], [], []>} : vector<2x16xf32>, vector<16x64xf32>, vector<2x64xf32> -> vector<2x64xf32>
    %764 = arith.addf %487, %763 : vector<2x64xf32>
    %765 = vector.extract_strided_slice %764 {offsets = [0, 0], sizes = [2, 16], strides = [1, 1]} : vector<2x64xf32> to vector<2x16xf32>
    %766 = arith.negf %765 : vector<2x16xf32>
    %767 = math.exp %766 : vector<2x16xf32>
    %cst_145 = arith.constant 1.000000e+00 : f32
    %768 = vector.broadcast %cst_145 : f32 to vector<2x16xf32>
    %769 = arith.addf %768, %767 : vector<2x16xf32>
    %770 = arith.divf %768, %769 : vector<2x16xf32>
    %771 = vector.extract_strided_slice %764 {offsets = [0, 16], sizes = [2, 16], strides = [1, 1]} : vector<2x64xf32> to vector<2x16xf32>
    %772 = arith.negf %771 : vector<2x16xf32>
    %773 = math.exp %772 : vector<2x16xf32>
    %cst_146 = arith.constant 1.000000e+00 : f32
    %774 = vector.broadcast %cst_146 : f32 to vector<2x16xf32>
    %775 = arith.addf %774, %773 : vector<2x16xf32>
    %776 = arith.divf %774, %775 : vector<2x16xf32>
    %777 = vector.extract_strided_slice %764 {offsets = [0, 32], sizes = [2, 16], strides = [1, 1]} : vector<2x64xf32> to vector<2x16xf32>
    %778 = math.tanh %777 : vector<2x16xf32>
    %779 = vector.extract_strided_slice %764 {offsets = [0, 48], sizes = [2, 16], strides = [1, 1]} : vector<2x64xf32> to vector<2x16xf32>
    %780 = arith.negf %779 : vector<2x16xf32>
    %781 = math.exp %780 : vector<2x16xf32>
    %cst_147 = arith.constant 1.000000e+00 : f32
    %782 = vector.broadcast %cst_147 : f32 to vector<2x16xf32>
    %783 = arith.addf %782, %781 : vector<2x16xf32>
    %784 = arith.divf %782, %783 : vector<2x16xf32>
    %785 = arith.mulf %776, %760 : vector<2x16xf32>
    %786 = arith.mulf %770, %778 : vector<2x16xf32>
    %787 = arith.addf %785, %786 : vector<2x16xf32>
    %788 = math.tanh %787 : vector<2x16xf32>
    %789 = arith.mulf %784, %788 : vector<2x16xf32>
    %cst_148 = arith.constant dense<0.000000e+00> : vector<2x64xf32>
    %790 = tpu.matmul %789, %708, %cst_148 {dimension_numbers = #tpu.dot_dimension_numbers<[1], [0], [0], [1], [0, 0, 1, 1], [], []>} : vector<2x16xf32>, vector<16x64xf32>, vector<2x64xf32> -> vector<2x64xf32>
    %791 = arith.addf %486, %790 : vector<2x64xf32>
    %792 = vector.extract_strided_slice %791 {offsets = [0, 0], sizes = [2, 16], strides = [1, 1]} : vector<2x64xf32> to vector<2x16xf32>
    %793 = arith.negf %792 : vector<2x16xf32>
    %794 = math.exp %793 : vector<2x16xf32>
    %cst_149 = arith.constant 1.000000e+00 : f32
    %795 = vector.broadcast %cst_149 : f32 to vector<2x16xf32>
    %796 = arith.addf %795, %794 : vector<2x16xf32>
    %797 = arith.divf %795, %796 : vector<2x16xf32>
    %798 = vector.extract_strided_slice %791 {offsets = [0, 16], sizes = [2, 16], strides = [1, 1]} : vector<2x64xf32> to vector<2x16xf32>
    %799 = arith.negf %798 : vector<2x16xf32>
    %800 = math.exp %799 : vector<2x16xf32>
    %cst_150 = arith.constant 1.000000e+00 : f32
    %801 = vector.broadcast %cst_150 : f32 to vector<2x16xf32>
    %802 = arith.addf %801, %800 : vector<2x16xf32>
    %803 = arith.divf %801, %802 : vector<2x16xf32>
    %804 = vector.extract_strided_slice %791 {offsets = [0, 32], sizes = [2, 16], strides = [1, 1]} : vector<2x64xf32> to vector<2x16xf32>
    %805 = math.tanh %804 : vector<2x16xf32>
    %806 = vector.extract_strided_slice %791 {offsets = [0, 48], sizes = [2, 16], strides = [1, 1]} : vector<2x64xf32> to vector<2x16xf32>
    %807 = arith.negf %806 : vector<2x16xf32>
    %808 = math.exp %807 : vector<2x16xf32>
    %cst_151 = arith.constant 1.000000e+00 : f32
    %809 = vector.broadcast %cst_151 : f32 to vector<2x16xf32>
    %810 = arith.addf %809, %808 : vector<2x16xf32>
    %811 = arith.divf %809, %810 : vector<2x16xf32>
    %812 = arith.mulf %803, %787 : vector<2x16xf32>
    %813 = arith.mulf %797, %805 : vector<2x16xf32>
    %814 = arith.addf %812, %813 : vector<2x16xf32>
    %815 = math.tanh %814 : vector<2x16xf32>
    %816 = arith.mulf %811, %815 : vector<2x16xf32>
    %cst_152 = arith.constant dense<0.000000e+00> : vector<2x64xf32>
    %817 = tpu.matmul %816, %708, %cst_152 {dimension_numbers = #tpu.dot_dimension_numbers<[1], [0], [0], [1], [0, 0, 1, 1], [], []>} : vector<2x16xf32>, vector<16x64xf32>, vector<2x64xf32> -> vector<2x64xf32>
    %818 = arith.addf %485, %817 : vector<2x64xf32>
    %819 = vector.extract_strided_slice %818 {offsets = [0, 0], sizes = [2, 16], strides = [1, 1]} : vector<2x64xf32> to vector<2x16xf32>
    %820 = arith.negf %819 : vector<2x16xf32>
    %821 = math.exp %820 : vector<2x16xf32>
    %cst_153 = arith.constant 1.000000e+00 : f32
    %822 = vector.broadcast %cst_153 : f32 to vector<2x16xf32>
    %823 = arith.addf %822, %821 : vector<2x16xf32>
    %824 = arith.divf %822, %823 : vector<2x16xf32>
    %825 = vector.extract_strided_slice %818 {offsets = [0, 16], sizes = [2, 16], strides = [1, 1]} : vector<2x64xf32> to vector<2x16xf32>
    %826 = arith.negf %825 : vector<2x16xf32>
    %827 = math.exp %826 : vector<2x16xf32>
    %cst_154 = arith.constant 1.000000e+00 : f32
    %828 = vector.broadcast %cst_154 : f32 to vector<2x16xf32>
    %829 = arith.addf %828, %827 : vector<2x16xf32>
    %830 = arith.divf %828, %829 : vector<2x16xf32>
    %831 = vector.extract_strided_slice %818 {offsets = [0, 32], sizes = [2, 16], strides = [1, 1]} : vector<2x64xf32> to vector<2x16xf32>
    %832 = math.tanh %831 : vector<2x16xf32>
    %833 = vector.extract_strided_slice %818 {offsets = [0, 48], sizes = [2, 16], strides = [1, 1]} : vector<2x64xf32> to vector<2x16xf32>
    %834 = arith.negf %833 : vector<2x16xf32>
    %835 = math.exp %834 : vector<2x16xf32>
    %cst_155 = arith.constant 1.000000e+00 : f32
    %836 = vector.broadcast %cst_155 : f32 to vector<2x16xf32>
    %837 = arith.addf %836, %835 : vector<2x16xf32>
    %838 = arith.divf %836, %837 : vector<2x16xf32>
    %839 = arith.mulf %830, %814 : vector<2x16xf32>
    %840 = arith.mulf %824, %832 : vector<2x16xf32>
    %841 = arith.addf %839, %840 : vector<2x16xf32>
    %842 = math.tanh %841 : vector<2x16xf32>
    %843 = arith.mulf %838, %842 : vector<2x16xf32>
    %cst_156 = arith.constant dense<0.000000e+00> : vector<2x64xf32>
    %844 = tpu.matmul %843, %708, %cst_156 {dimension_numbers = #tpu.dot_dimension_numbers<[1], [0], [0], [1], [0, 0, 1, 1], [], []>} : vector<2x16xf32>, vector<16x64xf32>, vector<2x64xf32> -> vector<2x64xf32>
    %845 = arith.addf %484, %844 : vector<2x64xf32>
    %846 = vector.extract_strided_slice %845 {offsets = [0, 0], sizes = [2, 16], strides = [1, 1]} : vector<2x64xf32> to vector<2x16xf32>
    %847 = arith.negf %846 : vector<2x16xf32>
    %848 = math.exp %847 : vector<2x16xf32>
    %cst_157 = arith.constant 1.000000e+00 : f32
    %849 = vector.broadcast %cst_157 : f32 to vector<2x16xf32>
    %850 = arith.addf %849, %848 : vector<2x16xf32>
    %851 = arith.divf %849, %850 : vector<2x16xf32>
    %852 = vector.extract_strided_slice %845 {offsets = [0, 16], sizes = [2, 16], strides = [1, 1]} : vector<2x64xf32> to vector<2x16xf32>
    %853 = arith.negf %852 : vector<2x16xf32>
    %854 = math.exp %853 : vector<2x16xf32>
    %cst_158 = arith.constant 1.000000e+00 : f32
    %855 = vector.broadcast %cst_158 : f32 to vector<2x16xf32>
    %856 = arith.addf %855, %854 : vector<2x16xf32>
    %857 = arith.divf %855, %856 : vector<2x16xf32>
    %858 = vector.extract_strided_slice %845 {offsets = [0, 32], sizes = [2, 16], strides = [1, 1]} : vector<2x64xf32> to vector<2x16xf32>
    %859 = math.tanh %858 : vector<2x16xf32>
    %860 = vector.extract_strided_slice %845 {offsets = [0, 48], sizes = [2, 16], strides = [1, 1]} : vector<2x64xf32> to vector<2x16xf32>
    %861 = arith.negf %860 : vector<2x16xf32>
    %862 = math.exp %861 : vector<2x16xf32>
    %cst_159 = arith.constant 1.000000e+00 : f32
    %863 = vector.broadcast %cst_159 : f32 to vector<2x16xf32>
    %864 = arith.addf %863, %862 : vector<2x16xf32>
    %865 = arith.divf %863, %864 : vector<2x16xf32>
    %866 = arith.mulf %857, %841 : vector<2x16xf32>
    %867 = arith.mulf %851, %859 : vector<2x16xf32>
    %868 = arith.addf %866, %867 : vector<2x16xf32>
    %869 = math.tanh %868 : vector<2x16xf32>
    %870 = arith.mulf %865, %869 : vector<2x16xf32>
    %cst_160 = arith.constant dense<0.000000e+00> : vector<2x64xf32>
    %871 = tpu.matmul %870, %708, %cst_160 {dimension_numbers = #tpu.dot_dimension_numbers<[1], [0], [0], [1], [0, 0, 1, 1], [], []>} : vector<2x16xf32>, vector<16x64xf32>, vector<2x64xf32> -> vector<2x64xf32>
    %872 = arith.addf %483, %871 : vector<2x64xf32>
    %873 = vector.extract_strided_slice %872 {offsets = [0, 0], sizes = [2, 16], strides = [1, 1]} : vector<2x64xf32> to vector<2x16xf32>
    %874 = arith.negf %873 : vector<2x16xf32>
    %875 = math.exp %874 : vector<2x16xf32>
    %cst_161 = arith.constant 1.000000e+00 : f32
    %876 = vector.broadcast %cst_161 : f32 to vector<2x16xf32>
    %877 = arith.addf %876, %875 : vector<2x16xf32>
    %878 = arith.divf %876, %877 : vector<2x16xf32>
    %879 = vector.extract_strided_slice %872 {offsets = [0, 16], sizes = [2, 16], strides = [1, 1]} : vector<2x64xf32> to vector<2x16xf32>
    %880 = arith.negf %879 : vector<2x16xf32>
    %881 = math.exp %880 : vector<2x16xf32>
    %cst_162 = arith.constant 1.000000e+00 : f32
    %882 = vector.broadcast %cst_162 : f32 to vector<2x16xf32>
    %883 = arith.addf %882, %881 : vector<2x16xf32>
    %884 = arith.divf %882, %883 : vector<2x16xf32>
    %885 = vector.extract_strided_slice %872 {offsets = [0, 32], sizes = [2, 16], strides = [1, 1]} : vector<2x64xf32> to vector<2x16xf32>
    %886 = math.tanh %885 : vector<2x16xf32>
    %887 = vector.extract_strided_slice %872 {offsets = [0, 48], sizes = [2, 16], strides = [1, 1]} : vector<2x64xf32> to vector<2x16xf32>
    %888 = arith.negf %887 : vector<2x16xf32>
    %889 = math.exp %888 : vector<2x16xf32>
    %cst_163 = arith.constant 1.000000e+00 : f32
    %890 = vector.broadcast %cst_163 : f32 to vector<2x16xf32>
    %891 = arith.addf %890, %889 : vector<2x16xf32>
    %892 = arith.divf %890, %891 : vector<2x16xf32>
    %893 = arith.mulf %884, %868 : vector<2x16xf32>
    %894 = arith.mulf %878, %886 : vector<2x16xf32>
    %895 = arith.addf %893, %894 : vector<2x16xf32>
    %896 = math.tanh %895 : vector<2x16xf32>
    %897 = arith.mulf %892, %896 : vector<2x16xf32>
    %cst_164 = arith.constant dense<0.000000e+00> : vector<2x64xf32>
    %898 = tpu.matmul %897, %708, %cst_164 {dimension_numbers = #tpu.dot_dimension_numbers<[1], [0], [0], [1], [0, 0, 1, 1], [], []>} : vector<2x16xf32>, vector<16x64xf32>, vector<2x64xf32> -> vector<2x64xf32>
    %899 = arith.addf %482, %898 : vector<2x64xf32>
    %900 = vector.extract_strided_slice %899 {offsets = [0, 0], sizes = [2, 16], strides = [1, 1]} : vector<2x64xf32> to vector<2x16xf32>
    %901 = arith.negf %900 : vector<2x16xf32>
    %902 = math.exp %901 : vector<2x16xf32>
    %cst_165 = arith.constant 1.000000e+00 : f32
    %903 = vector.broadcast %cst_165 : f32 to vector<2x16xf32>
    %904 = arith.addf %903, %902 : vector<2x16xf32>
    %905 = arith.divf %903, %904 : vector<2x16xf32>
    %906 = vector.extract_strided_slice %899 {offsets = [0, 16], sizes = [2, 16], strides = [1, 1]} : vector<2x64xf32> to vector<2x16xf32>
    %907 = arith.negf %906 : vector<2x16xf32>
    %908 = math.exp %907 : vector<2x16xf32>
    %cst_166 = arith.constant 1.000000e+00 : f32
    %909 = vector.broadcast %cst_166 : f32 to vector<2x16xf32>
    %910 = arith.addf %909, %908 : vector<2x16xf32>
    %911 = arith.divf %909, %910 : vector<2x16xf32>
    %912 = vector.extract_strided_slice %899 {offsets = [0, 32], sizes = [2, 16], strides = [1, 1]} : vector<2x64xf32> to vector<2x16xf32>
    %913 = math.tanh %912 : vector<2x16xf32>
    %914 = vector.extract_strided_slice %899 {offsets = [0, 48], sizes = [2, 16], strides = [1, 1]} : vector<2x64xf32> to vector<2x16xf32>
    %915 = arith.negf %914 : vector<2x16xf32>
    %916 = math.exp %915 : vector<2x16xf32>
    %cst_167 = arith.constant 1.000000e+00 : f32
    %917 = vector.broadcast %cst_167 : f32 to vector<2x16xf32>
    %918 = arith.addf %917, %916 : vector<2x16xf32>
    %919 = arith.divf %917, %918 : vector<2x16xf32>
    %920 = arith.mulf %911, %895 : vector<2x16xf32>
    %921 = arith.mulf %905, %913 : vector<2x16xf32>
    %922 = arith.addf %920, %921 : vector<2x16xf32>
    %923 = math.tanh %922 : vector<2x16xf32>
    %924 = arith.mulf %919, %923 : vector<2x16xf32>
    %925 = tpu.concatenate %518, %924 in 1 : vector<2x16xf32>, vector<2x16xf32> -> vector<2x32xf32>
    %926 = tpu.concatenate %545, %897 in 1 : vector<2x16xf32>, vector<2x16xf32> -> vector<2x32xf32>
    %927 = tpu.concatenate %572, %870 in 1 : vector<2x16xf32>, vector<2x16xf32> -> vector<2x32xf32>
    %928 = tpu.concatenate %599, %843 in 1 : vector<2x16xf32>, vector<2x16xf32> -> vector<2x32xf32>
    %929 = tpu.concatenate %626, %816 in 1 : vector<2x16xf32>, vector<2x16xf32> -> vector<2x32xf32>
    %930 = tpu.concatenate %653, %789 in 1 : vector<2x16xf32>, vector<2x16xf32> -> vector<2x32xf32>
    %931 = tpu.concatenate %680, %762 in 1 : vector<2x16xf32>, vector<2x16xf32> -> vector<2x32xf32>
    %932 = tpu.concatenate %707, %735 in 1 : vector<2x16xf32>, vector<2x16xf32> -> vector<2x32xf32>
    %933 = tpu.concatenate %925, %926, %927, %928, %929, %930, %931, %932 in 0 : vector<2x32xf32>, vector<2x32xf32>, vector<2x32xf32>, vector<2x32xf32>, vector<2x32xf32>, vector<2x32xf32>, vector<2x32xf32>, vector<2x32xf32> -> vector<16x32xf32>
    %c0_168 = arith.constant 0 : index
    %c0_169 = arith.constant 0 : index
    %934 = vector.load %arg15[%c0_168, %c0_169] : memref<32x64xf32, #tpu.memory_space<vmem>>, vector<32x64xf32>
    %cst_170 = arith.constant dense<0.000000e+00> : vector<16x64xf32>
    %935 = tpu.matmul %933, %934, %cst_170 {dimension_numbers = #tpu.dot_dimension_numbers<[1], [0], [0], [1], [0, 0, 1, 1], [], []>} : vector<16x32xf32>, vector<32x64xf32>, vector<16x64xf32> -> vector<16x64xf32>
    %c0_171 = arith.constant 0 : index
    %c0_172 = arith.constant 0 : index
    %936 = vector.load %arg17[%c0_171, %c0_172] : memref<1x64xf32, #tpu.memory_space<vmem>>, vector<1x64xf32>
    %937 = vector.broadcast %936 : vector<1x64xf32> to vector<16x64xf32>
    %938 = arith.addf %935, %937 : vector<16x64xf32>
    %939 = vector.extract_strided_slice %938 {offsets = [0, 0], sizes = [2, 64], strides = [1, 1]} : vector<16x64xf32> to vector<2x64xf32>
    %940 = vector.extract_strided_slice %938 {offsets = [2, 0], sizes = [2, 64], strides = [1, 1]} : vector<16x64xf32> to vector<2x64xf32>
    %941 = vector.extract_strided_slice %938 {offsets = [4, 0], sizes = [2, 64], strides = [1, 1]} : vector<16x64xf32> to vector<2x64xf32>
    %942 = vector.extract_strided_slice %938 {offsets = [6, 0], sizes = [2, 64], strides = [1, 1]} : vector<16x64xf32> to vector<2x64xf32>
    %943 = vector.extract_strided_slice %938 {offsets = [8, 0], sizes = [2, 64], strides = [1, 1]} : vector<16x64xf32> to vector<2x64xf32>
    %944 = vector.extract_strided_slice %938 {offsets = [10, 0], sizes = [2, 64], strides = [1, 1]} : vector<16x64xf32> to vector<2x64xf32>
    %945 = vector.extract_strided_slice %938 {offsets = [12, 0], sizes = [2, 64], strides = [1, 1]} : vector<16x64xf32> to vector<2x64xf32>
    %946 = vector.extract_strided_slice %938 {offsets = [14, 0], sizes = [2, 64], strides = [1, 1]} : vector<16x64xf32> to vector<2x64xf32>
    %947 = tpu.concatenate %925, %926, %927, %928, %929, %930, %931, %932 in 0 : vector<2x32xf32>, vector<2x32xf32>, vector<2x32xf32>, vector<2x32xf32>, vector<2x32xf32>, vector<2x32xf32>, vector<2x32xf32>, vector<2x32xf32> -> vector<16x32xf32>
    %c0_173 = arith.constant 0 : index
    %c0_174 = arith.constant 0 : index
    %948 = vector.load %arg18[%c0_173, %c0_174] : memref<32x64xf32, #tpu.memory_space<vmem>>, vector<32x64xf32>
    %cst_175 = arith.constant dense<0.000000e+00> : vector<16x64xf32>
    %949 = tpu.matmul %947, %948, %cst_175 {dimension_numbers = #tpu.dot_dimension_numbers<[1], [0], [0], [1], [0, 0, 1, 1], [], []>} : vector<16x32xf32>, vector<32x64xf32>, vector<16x64xf32> -> vector<16x64xf32>
    %c0_176 = arith.constant 0 : index
    %c0_177 = arith.constant 0 : index
    %950 = vector.load %arg20[%c0_176, %c0_177] : memref<1x64xf32, #tpu.memory_space<vmem>>, vector<1x64xf32>
    %951 = vector.broadcast %950 : vector<1x64xf32> to vector<16x64xf32>
    %952 = arith.addf %949, %951 : vector<16x64xf32>
    %953 = vector.extract_strided_slice %952 {offsets = [0, 0], sizes = [2, 64], strides = [1, 1]} : vector<16x64xf32> to vector<2x64xf32>
    %954 = vector.extract_strided_slice %952 {offsets = [2, 0], sizes = [2, 64], strides = [1, 1]} : vector<16x64xf32> to vector<2x64xf32>
    %955 = vector.extract_strided_slice %952 {offsets = [4, 0], sizes = [2, 64], strides = [1, 1]} : vector<16x64xf32> to vector<2x64xf32>
    %956 = vector.extract_strided_slice %952 {offsets = [6, 0], sizes = [2, 64], strides = [1, 1]} : vector<16x64xf32> to vector<2x64xf32>
    %957 = vector.extract_strided_slice %952 {offsets = [8, 0], sizes = [2, 64], strides = [1, 1]} : vector<16x64xf32> to vector<2x64xf32>
    %958 = vector.extract_strided_slice %952 {offsets = [10, 0], sizes = [2, 64], strides = [1, 1]} : vector<16x64xf32> to vector<2x64xf32>
    %959 = vector.extract_strided_slice %952 {offsets = [12, 0], sizes = [2, 64], strides = [1, 1]} : vector<16x64xf32> to vector<2x64xf32>
    %960 = vector.extract_strided_slice %952 {offsets = [14, 0], sizes = [2, 64], strides = [1, 1]} : vector<16x64xf32> to vector<2x64xf32>
    %cst_178 = arith.constant 0.000000e+00 : f32
    %961 = vector.broadcast %cst_178 : f32 to vector<2x16xf32>
    %c0_179 = arith.constant 0 : index
    %c0_180 = arith.constant 0 : index
    %962 = vector.load %arg16[%c0_179, %c0_180] : memref<16x64xf32, #tpu.memory_space<vmem>>, vector<16x64xf32>
    %cst_181 = arith.constant dense<0.000000e+00> : vector<2x64xf32>
    %963 = tpu.matmul %961, %962, %cst_181 {dimension_numbers = #tpu.dot_dimension_numbers<[1], [0], [0], [1], [0, 0, 1, 1], [], []>} : vector<2x16xf32>, vector<16x64xf32>, vector<2x64xf32> -> vector<2x64xf32>
    %964 = arith.addf %939, %963 : vector<2x64xf32>
    %965 = vector.extract_strided_slice %964 {offsets = [0, 0], sizes = [2, 16], strides = [1, 1]} : vector<2x64xf32> to vector<2x16xf32>
    %966 = arith.negf %965 : vector<2x16xf32>
    %967 = math.exp %966 : vector<2x16xf32>
    %cst_182 = arith.constant 1.000000e+00 : f32
    %968 = vector.broadcast %cst_182 : f32 to vector<2x16xf32>
    %969 = arith.addf %968, %967 : vector<2x16xf32>
    %970 = arith.divf %968, %969 : vector<2x16xf32>
    %971 = vector.extract_strided_slice %964 {offsets = [0, 16], sizes = [2, 16], strides = [1, 1]} : vector<2x64xf32> to vector<2x16xf32>
    %972 = arith.negf %971 : vector<2x16xf32>
    %973 = math.exp %972 : vector<2x16xf32>
    %cst_183 = arith.constant 1.000000e+00 : f32
    %974 = vector.broadcast %cst_183 : f32 to vector<2x16xf32>
    %975 = arith.addf %974, %973 : vector<2x16xf32>
    %976 = arith.divf %974, %975 : vector<2x16xf32>
    %977 = vector.extract_strided_slice %964 {offsets = [0, 32], sizes = [2, 16], strides = [1, 1]} : vector<2x64xf32> to vector<2x16xf32>
    %978 = math.tanh %977 : vector<2x16xf32>
    %979 = vector.extract_strided_slice %964 {offsets = [0, 48], sizes = [2, 16], strides = [1, 1]} : vector<2x64xf32> to vector<2x16xf32>
    %980 = arith.negf %979 : vector<2x16xf32>
    %981 = math.exp %980 : vector<2x16xf32>
    %cst_184 = arith.constant 1.000000e+00 : f32
    %982 = vector.broadcast %cst_184 : f32 to vector<2x16xf32>
    %983 = arith.addf %982, %981 : vector<2x16xf32>
    %984 = arith.divf %982, %983 : vector<2x16xf32>
    %985 = arith.mulf %976, %961 : vector<2x16xf32>
    %986 = arith.mulf %970, %978 : vector<2x16xf32>
    %987 = arith.addf %985, %986 : vector<2x16xf32>
    %988 = math.tanh %987 : vector<2x16xf32>
    %989 = arith.mulf %984, %988 : vector<2x16xf32>
    %cst_185 = arith.constant dense<0.000000e+00> : vector<2x64xf32>
    %990 = tpu.matmul %989, %962, %cst_185 {dimension_numbers = #tpu.dot_dimension_numbers<[1], [0], [0], [1], [0, 0, 1, 1], [], []>} : vector<2x16xf32>, vector<16x64xf32>, vector<2x64xf32> -> vector<2x64xf32>
    %991 = arith.addf %940, %990 : vector<2x64xf32>
    %992 = vector.extract_strided_slice %991 {offsets = [0, 0], sizes = [2, 16], strides = [1, 1]} : vector<2x64xf32> to vector<2x16xf32>
    %993 = arith.negf %992 : vector<2x16xf32>
    %994 = math.exp %993 : vector<2x16xf32>
    %cst_186 = arith.constant 1.000000e+00 : f32
    %995 = vector.broadcast %cst_186 : f32 to vector<2x16xf32>
    %996 = arith.addf %995, %994 : vector<2x16xf32>
    %997 = arith.divf %995, %996 : vector<2x16xf32>
    %998 = vector.extract_strided_slice %991 {offsets = [0, 16], sizes = [2, 16], strides = [1, 1]} : vector<2x64xf32> to vector<2x16xf32>
    %999 = arith.negf %998 : vector<2x16xf32>
    %1000 = math.exp %999 : vector<2x16xf32>
    %cst_187 = arith.constant 1.000000e+00 : f32
    %1001 = vector.broadcast %cst_187 : f32 to vector<2x16xf32>
    %1002 = arith.addf %1001, %1000 : vector<2x16xf32>
    %1003 = arith.divf %1001, %1002 : vector<2x16xf32>
    %1004 = vector.extract_strided_slice %991 {offsets = [0, 32], sizes = [2, 16], strides = [1, 1]} : vector<2x64xf32> to vector<2x16xf32>
    %1005 = math.tanh %1004 : vector<2x16xf32>
    %1006 = vector.extract_strided_slice %991 {offsets = [0, 48], sizes = [2, 16], strides = [1, 1]} : vector<2x64xf32> to vector<2x16xf32>
    %1007 = arith.negf %1006 : vector<2x16xf32>
    %1008 = math.exp %1007 : vector<2x16xf32>
    %cst_188 = arith.constant 1.000000e+00 : f32
    %1009 = vector.broadcast %cst_188 : f32 to vector<2x16xf32>
    %1010 = arith.addf %1009, %1008 : vector<2x16xf32>
    %1011 = arith.divf %1009, %1010 : vector<2x16xf32>
    %1012 = arith.mulf %1003, %987 : vector<2x16xf32>
    %1013 = arith.mulf %997, %1005 : vector<2x16xf32>
    %1014 = arith.addf %1012, %1013 : vector<2x16xf32>
    %1015 = math.tanh %1014 : vector<2x16xf32>
    %1016 = arith.mulf %1011, %1015 : vector<2x16xf32>
    %cst_189 = arith.constant dense<0.000000e+00> : vector<2x64xf32>
    %1017 = tpu.matmul %1016, %962, %cst_189 {dimension_numbers = #tpu.dot_dimension_numbers<[1], [0], [0], [1], [0, 0, 1, 1], [], []>} : vector<2x16xf32>, vector<16x64xf32>, vector<2x64xf32> -> vector<2x64xf32>
    %1018 = arith.addf %941, %1017 : vector<2x64xf32>
    %1019 = vector.extract_strided_slice %1018 {offsets = [0, 0], sizes = [2, 16], strides = [1, 1]} : vector<2x64xf32> to vector<2x16xf32>
    %1020 = arith.negf %1019 : vector<2x16xf32>
    %1021 = math.exp %1020 : vector<2x16xf32>
    %cst_190 = arith.constant 1.000000e+00 : f32
    %1022 = vector.broadcast %cst_190 : f32 to vector<2x16xf32>
    %1023 = arith.addf %1022, %1021 : vector<2x16xf32>
    %1024 = arith.divf %1022, %1023 : vector<2x16xf32>
    %1025 = vector.extract_strided_slice %1018 {offsets = [0, 16], sizes = [2, 16], strides = [1, 1]} : vector<2x64xf32> to vector<2x16xf32>
    %1026 = arith.negf %1025 : vector<2x16xf32>
    %1027 = math.exp %1026 : vector<2x16xf32>
    %cst_191 = arith.constant 1.000000e+00 : f32
    %1028 = vector.broadcast %cst_191 : f32 to vector<2x16xf32>
    %1029 = arith.addf %1028, %1027 : vector<2x16xf32>
    %1030 = arith.divf %1028, %1029 : vector<2x16xf32>
    %1031 = vector.extract_strided_slice %1018 {offsets = [0, 32], sizes = [2, 16], strides = [1, 1]} : vector<2x64xf32> to vector<2x16xf32>
    %1032 = math.tanh %1031 : vector<2x16xf32>
    %1033 = vector.extract_strided_slice %1018 {offsets = [0, 48], sizes = [2, 16], strides = [1, 1]} : vector<2x64xf32> to vector<2x16xf32>
    %1034 = arith.negf %1033 : vector<2x16xf32>
    %1035 = math.exp %1034 : vector<2x16xf32>
    %cst_192 = arith.constant 1.000000e+00 : f32
    %1036 = vector.broadcast %cst_192 : f32 to vector<2x16xf32>
    %1037 = arith.addf %1036, %1035 : vector<2x16xf32>
    %1038 = arith.divf %1036, %1037 : vector<2x16xf32>
    %1039 = arith.mulf %1030, %1014 : vector<2x16xf32>
    %1040 = arith.mulf %1024, %1032 : vector<2x16xf32>
    %1041 = arith.addf %1039, %1040 : vector<2x16xf32>
    %1042 = math.tanh %1041 : vector<2x16xf32>
    %1043 = arith.mulf %1038, %1042 : vector<2x16xf32>
    %cst_193 = arith.constant dense<0.000000e+00> : vector<2x64xf32>
    %1044 = tpu.matmul %1043, %962, %cst_193 {dimension_numbers = #tpu.dot_dimension_numbers<[1], [0], [0], [1], [0, 0, 1, 1], [], []>} : vector<2x16xf32>, vector<16x64xf32>, vector<2x64xf32> -> vector<2x64xf32>
    %1045 = arith.addf %942, %1044 : vector<2x64xf32>
    %1046 = vector.extract_strided_slice %1045 {offsets = [0, 0], sizes = [2, 16], strides = [1, 1]} : vector<2x64xf32> to vector<2x16xf32>
    %1047 = arith.negf %1046 : vector<2x16xf32>
    %1048 = math.exp %1047 : vector<2x16xf32>
    %cst_194 = arith.constant 1.000000e+00 : f32
    %1049 = vector.broadcast %cst_194 : f32 to vector<2x16xf32>
    %1050 = arith.addf %1049, %1048 : vector<2x16xf32>
    %1051 = arith.divf %1049, %1050 : vector<2x16xf32>
    %1052 = vector.extract_strided_slice %1045 {offsets = [0, 16], sizes = [2, 16], strides = [1, 1]} : vector<2x64xf32> to vector<2x16xf32>
    %1053 = arith.negf %1052 : vector<2x16xf32>
    %1054 = math.exp %1053 : vector<2x16xf32>
    %cst_195 = arith.constant 1.000000e+00 : f32
    %1055 = vector.broadcast %cst_195 : f32 to vector<2x16xf32>
    %1056 = arith.addf %1055, %1054 : vector<2x16xf32>
    %1057 = arith.divf %1055, %1056 : vector<2x16xf32>
    %1058 = vector.extract_strided_slice %1045 {offsets = [0, 32], sizes = [2, 16], strides = [1, 1]} : vector<2x64xf32> to vector<2x16xf32>
    %1059 = math.tanh %1058 : vector<2x16xf32>
    %1060 = vector.extract_strided_slice %1045 {offsets = [0, 48], sizes = [2, 16], strides = [1, 1]} : vector<2x64xf32> to vector<2x16xf32>
    %1061 = arith.negf %1060 : vector<2x16xf32>
    %1062 = math.exp %1061 : vector<2x16xf32>
    %cst_196 = arith.constant 1.000000e+00 : f32
    %1063 = vector.broadcast %cst_196 : f32 to vector<2x16xf32>
    %1064 = arith.addf %1063, %1062 : vector<2x16xf32>
    %1065 = arith.divf %1063, %1064 : vector<2x16xf32>
    %1066 = arith.mulf %1057, %1041 : vector<2x16xf32>
    %1067 = arith.mulf %1051, %1059 : vector<2x16xf32>
    %1068 = arith.addf %1066, %1067 : vector<2x16xf32>
    %1069 = math.tanh %1068 : vector<2x16xf32>
    %1070 = arith.mulf %1065, %1069 : vector<2x16xf32>
    %cst_197 = arith.constant dense<0.000000e+00> : vector<2x64xf32>
    %1071 = tpu.matmul %1070, %962, %cst_197 {dimension_numbers = #tpu.dot_dimension_numbers<[1], [0], [0], [1], [0, 0, 1, 1], [], []>} : vector<2x16xf32>, vector<16x64xf32>, vector<2x64xf32> -> vector<2x64xf32>
    %1072 = arith.addf %943, %1071 : vector<2x64xf32>
    %1073 = vector.extract_strided_slice %1072 {offsets = [0, 0], sizes = [2, 16], strides = [1, 1]} : vector<2x64xf32> to vector<2x16xf32>
    %1074 = arith.negf %1073 : vector<2x16xf32>
    %1075 = math.exp %1074 : vector<2x16xf32>
    %cst_198 = arith.constant 1.000000e+00 : f32
    %1076 = vector.broadcast %cst_198 : f32 to vector<2x16xf32>
    %1077 = arith.addf %1076, %1075 : vector<2x16xf32>
    %1078 = arith.divf %1076, %1077 : vector<2x16xf32>
    %1079 = vector.extract_strided_slice %1072 {offsets = [0, 16], sizes = [2, 16], strides = [1, 1]} : vector<2x64xf32> to vector<2x16xf32>
    %1080 = arith.negf %1079 : vector<2x16xf32>
    %1081 = math.exp %1080 : vector<2x16xf32>
    %cst_199 = arith.constant 1.000000e+00 : f32
    %1082 = vector.broadcast %cst_199 : f32 to vector<2x16xf32>
    %1083 = arith.addf %1082, %1081 : vector<2x16xf32>
    %1084 = arith.divf %1082, %1083 : vector<2x16xf32>
    %1085 = vector.extract_strided_slice %1072 {offsets = [0, 32], sizes = [2, 16], strides = [1, 1]} : vector<2x64xf32> to vector<2x16xf32>
    %1086 = math.tanh %1085 : vector<2x16xf32>
    %1087 = vector.extract_strided_slice %1072 {offsets = [0, 48], sizes = [2, 16], strides = [1, 1]} : vector<2x64xf32> to vector<2x16xf32>
    %1088 = arith.negf %1087 : vector<2x16xf32>
    %1089 = math.exp %1088 : vector<2x16xf32>
    %cst_200 = arith.constant 1.000000e+00 : f32
    %1090 = vector.broadcast %cst_200 : f32 to vector<2x16xf32>
    %1091 = arith.addf %1090, %1089 : vector<2x16xf32>
    %1092 = arith.divf %1090, %1091 : vector<2x16xf32>
    %1093 = arith.mulf %1084, %1068 : vector<2x16xf32>
    %1094 = arith.mulf %1078, %1086 : vector<2x16xf32>
    %1095 = arith.addf %1093, %1094 : vector<2x16xf32>
    %1096 = math.tanh %1095 : vector<2x16xf32>
    %1097 = arith.mulf %1092, %1096 : vector<2x16xf32>
    %cst_201 = arith.constant dense<0.000000e+00> : vector<2x64xf32>
    %1098 = tpu.matmul %1097, %962, %cst_201 {dimension_numbers = #tpu.dot_dimension_numbers<[1], [0], [0], [1], [0, 0, 1, 1], [], []>} : vector<2x16xf32>, vector<16x64xf32>, vector<2x64xf32> -> vector<2x64xf32>
    %1099 = arith.addf %944, %1098 : vector<2x64xf32>
    %1100 = vector.extract_strided_slice %1099 {offsets = [0, 0], sizes = [2, 16], strides = [1, 1]} : vector<2x64xf32> to vector<2x16xf32>
    %1101 = arith.negf %1100 : vector<2x16xf32>
    %1102 = math.exp %1101 : vector<2x16xf32>
    %cst_202 = arith.constant 1.000000e+00 : f32
    %1103 = vector.broadcast %cst_202 : f32 to vector<2x16xf32>
    %1104 = arith.addf %1103, %1102 : vector<2x16xf32>
    %1105 = arith.divf %1103, %1104 : vector<2x16xf32>
    %1106 = vector.extract_strided_slice %1099 {offsets = [0, 16], sizes = [2, 16], strides = [1, 1]} : vector<2x64xf32> to vector<2x16xf32>
    %1107 = arith.negf %1106 : vector<2x16xf32>
    %1108 = math.exp %1107 : vector<2x16xf32>
    %cst_203 = arith.constant 1.000000e+00 : f32
    %1109 = vector.broadcast %cst_203 : f32 to vector<2x16xf32>
    %1110 = arith.addf %1109, %1108 : vector<2x16xf32>
    %1111 = arith.divf %1109, %1110 : vector<2x16xf32>
    %1112 = vector.extract_strided_slice %1099 {offsets = [0, 32], sizes = [2, 16], strides = [1, 1]} : vector<2x64xf32> to vector<2x16xf32>
    %1113 = math.tanh %1112 : vector<2x16xf32>
    %1114 = vector.extract_strided_slice %1099 {offsets = [0, 48], sizes = [2, 16], strides = [1, 1]} : vector<2x64xf32> to vector<2x16xf32>
    %1115 = arith.negf %1114 : vector<2x16xf32>
    %1116 = math.exp %1115 : vector<2x16xf32>
    %cst_204 = arith.constant 1.000000e+00 : f32
    %1117 = vector.broadcast %cst_204 : f32 to vector<2x16xf32>
    %1118 = arith.addf %1117, %1116 : vector<2x16xf32>
    %1119 = arith.divf %1117, %1118 : vector<2x16xf32>
    %1120 = arith.mulf %1111, %1095 : vector<2x16xf32>
    %1121 = arith.mulf %1105, %1113 : vector<2x16xf32>
    %1122 = arith.addf %1120, %1121 : vector<2x16xf32>
    %1123 = math.tanh %1122 : vector<2x16xf32>
    %1124 = arith.mulf %1119, %1123 : vector<2x16xf32>
    %cst_205 = arith.constant dense<0.000000e+00> : vector<2x64xf32>
    %1125 = tpu.matmul %1124, %962, %cst_205 {dimension_numbers = #tpu.dot_dimension_numbers<[1], [0], [0], [1], [0, 0, 1, 1], [], []>} : vector<2x16xf32>, vector<16x64xf32>, vector<2x64xf32> -> vector<2x64xf32>
    %1126 = arith.addf %945, %1125 : vector<2x64xf32>
    %1127 = vector.extract_strided_slice %1126 {offsets = [0, 0], sizes = [2, 16], strides = [1, 1]} : vector<2x64xf32> to vector<2x16xf32>
    %1128 = arith.negf %1127 : vector<2x16xf32>
    %1129 = math.exp %1128 : vector<2x16xf32>
    %cst_206 = arith.constant 1.000000e+00 : f32
    %1130 = vector.broadcast %cst_206 : f32 to vector<2x16xf32>
    %1131 = arith.addf %1130, %1129 : vector<2x16xf32>
    %1132 = arith.divf %1130, %1131 : vector<2x16xf32>
    %1133 = vector.extract_strided_slice %1126 {offsets = [0, 16], sizes = [2, 16], strides = [1, 1]} : vector<2x64xf32> to vector<2x16xf32>
    %1134 = arith.negf %1133 : vector<2x16xf32>
    %1135 = math.exp %1134 : vector<2x16xf32>
    %cst_207 = arith.constant 1.000000e+00 : f32
    %1136 = vector.broadcast %cst_207 : f32 to vector<2x16xf32>
    %1137 = arith.addf %1136, %1135 : vector<2x16xf32>
    %1138 = arith.divf %1136, %1137 : vector<2x16xf32>
    %1139 = vector.extract_strided_slice %1126 {offsets = [0, 32], sizes = [2, 16], strides = [1, 1]} : vector<2x64xf32> to vector<2x16xf32>
    %1140 = math.tanh %1139 : vector<2x16xf32>
    %1141 = vector.extract_strided_slice %1126 {offsets = [0, 48], sizes = [2, 16], strides = [1, 1]} : vector<2x64xf32> to vector<2x16xf32>
    %1142 = arith.negf %1141 : vector<2x16xf32>
    %1143 = math.exp %1142 : vector<2x16xf32>
    %cst_208 = arith.constant 1.000000e+00 : f32
    %1144 = vector.broadcast %cst_208 : f32 to vector<2x16xf32>
    %1145 = arith.addf %1144, %1143 : vector<2x16xf32>
    %1146 = arith.divf %1144, %1145 : vector<2x16xf32>
    %1147 = arith.mulf %1138, %1122 : vector<2x16xf32>
    %1148 = arith.mulf %1132, %1140 : vector<2x16xf32>
    %1149 = arith.addf %1147, %1148 : vector<2x16xf32>
    %1150 = math.tanh %1149 : vector<2x16xf32>
    %1151 = arith.mulf %1146, %1150 : vector<2x16xf32>
    %cst_209 = arith.constant dense<0.000000e+00> : vector<2x64xf32>
    %1152 = tpu.matmul %1151, %962, %cst_209 {dimension_numbers = #tpu.dot_dimension_numbers<[1], [0], [0], [1], [0, 0, 1, 1], [], []>} : vector<2x16xf32>, vector<16x64xf32>, vector<2x64xf32> -> vector<2x64xf32>
    %1153 = arith.addf %946, %1152 : vector<2x64xf32>
    %1154 = vector.extract_strided_slice %1153 {offsets = [0, 0], sizes = [2, 16], strides = [1, 1]} : vector<2x64xf32> to vector<2x16xf32>
    %1155 = arith.negf %1154 : vector<2x16xf32>
    %1156 = math.exp %1155 : vector<2x16xf32>
    %cst_210 = arith.constant 1.000000e+00 : f32
    %1157 = vector.broadcast %cst_210 : f32 to vector<2x16xf32>
    %1158 = arith.addf %1157, %1156 : vector<2x16xf32>
    %1159 = arith.divf %1157, %1158 : vector<2x16xf32>
    %1160 = vector.extract_strided_slice %1153 {offsets = [0, 16], sizes = [2, 16], strides = [1, 1]} : vector<2x64xf32> to vector<2x16xf32>
    %1161 = arith.negf %1160 : vector<2x16xf32>
    %1162 = math.exp %1161 : vector<2x16xf32>
    %cst_211 = arith.constant 1.000000e+00 : f32
    %1163 = vector.broadcast %cst_211 : f32 to vector<2x16xf32>
    %1164 = arith.addf %1163, %1162 : vector<2x16xf32>
    %1165 = arith.divf %1163, %1164 : vector<2x16xf32>
    %1166 = vector.extract_strided_slice %1153 {offsets = [0, 32], sizes = [2, 16], strides = [1, 1]} : vector<2x64xf32> to vector<2x16xf32>
    %1167 = math.tanh %1166 : vector<2x16xf32>
    %1168 = vector.extract_strided_slice %1153 {offsets = [0, 48], sizes = [2, 16], strides = [1, 1]} : vector<2x64xf32> to vector<2x16xf32>
    %1169 = arith.negf %1168 : vector<2x16xf32>
    %1170 = math.exp %1169 : vector<2x16xf32>
    %cst_212 = arith.constant 1.000000e+00 : f32
    %1171 = vector.broadcast %cst_212 : f32 to vector<2x16xf32>
    %1172 = arith.addf %1171, %1170 : vector<2x16xf32>
    %1173 = arith.divf %1171, %1172 : vector<2x16xf32>
    %1174 = arith.mulf %1165, %1149 : vector<2x16xf32>
    %1175 = arith.mulf %1159, %1167 : vector<2x16xf32>
    %1176 = arith.addf %1174, %1175 : vector<2x16xf32>
    %1177 = math.tanh %1176 : vector<2x16xf32>
    %1178 = arith.mulf %1173, %1177 : vector<2x16xf32>
    %c0_213 = arith.constant 0 : index
    %c0_214 = arith.constant 0 : index
    %1179 = vector.load %arg19[%c0_213, %c0_214] : memref<16x64xf32, #tpu.memory_space<vmem>>, vector<16x64xf32>
    %cst_215 = arith.constant dense<0.000000e+00> : vector<2x64xf32>
    %1180 = tpu.matmul %961, %1179, %cst_215 {dimension_numbers = #tpu.dot_dimension_numbers<[1], [0], [0], [1], [0, 0, 1, 1], [], []>} : vector<2x16xf32>, vector<16x64xf32>, vector<2x64xf32> -> vector<2x64xf32>
    %1181 = arith.addf %960, %1180 : vector<2x64xf32>
    %1182 = vector.extract_strided_slice %1181 {offsets = [0, 0], sizes = [2, 16], strides = [1, 1]} : vector<2x64xf32> to vector<2x16xf32>
    %1183 = arith.negf %1182 : vector<2x16xf32>
    %1184 = math.exp %1183 : vector<2x16xf32>
    %cst_216 = arith.constant 1.000000e+00 : f32
    %1185 = vector.broadcast %cst_216 : f32 to vector<2x16xf32>
    %1186 = arith.addf %1185, %1184 : vector<2x16xf32>
    %1187 = arith.divf %1185, %1186 : vector<2x16xf32>
    %1188 = vector.extract_strided_slice %1181 {offsets = [0, 16], sizes = [2, 16], strides = [1, 1]} : vector<2x64xf32> to vector<2x16xf32>
    %1189 = arith.negf %1188 : vector<2x16xf32>
    %1190 = math.exp %1189 : vector<2x16xf32>
    %cst_217 = arith.constant 1.000000e+00 : f32
    %1191 = vector.broadcast %cst_217 : f32 to vector<2x16xf32>
    %1192 = arith.addf %1191, %1190 : vector<2x16xf32>
    %1193 = arith.divf %1191, %1192 : vector<2x16xf32>
    %1194 = vector.extract_strided_slice %1181 {offsets = [0, 32], sizes = [2, 16], strides = [1, 1]} : vector<2x64xf32> to vector<2x16xf32>
    %1195 = math.tanh %1194 : vector<2x16xf32>
    %1196 = vector.extract_strided_slice %1181 {offsets = [0, 48], sizes = [2, 16], strides = [1, 1]} : vector<2x64xf32> to vector<2x16xf32>
    %1197 = arith.negf %1196 : vector<2x16xf32>
    %1198 = math.exp %1197 : vector<2x16xf32>
    %cst_218 = arith.constant 1.000000e+00 : f32
    %1199 = vector.broadcast %cst_218 : f32 to vector<2x16xf32>
    %1200 = arith.addf %1199, %1198 : vector<2x16xf32>
    %1201 = arith.divf %1199, %1200 : vector<2x16xf32>
    %1202 = arith.mulf %1193, %961 : vector<2x16xf32>
    %1203 = arith.mulf %1187, %1195 : vector<2x16xf32>
    %1204 = arith.addf %1202, %1203 : vector<2x16xf32>
    %1205 = math.tanh %1204 : vector<2x16xf32>
    %1206 = arith.mulf %1201, %1205 : vector<2x16xf32>
    %cst_219 = arith.constant dense<0.000000e+00> : vector<2x64xf32>
    %1207 = tpu.matmul %1206, %1179, %cst_219 {dimension_numbers = #tpu.dot_dimension_numbers<[1], [0], [0], [1], [0, 0, 1, 1], [], []>} : vector<2x16xf32>, vector<16x64xf32>, vector<2x64xf32> -> vector<2x64xf32>
    %1208 = arith.addf %959, %1207 : vector<2x64xf32>
    %1209 = vector.extract_strided_slice %1208 {offsets = [0, 0], sizes = [2, 16], strides = [1, 1]} : vector<2x64xf32> to vector<2x16xf32>
    %1210 = arith.negf %1209 : vector<2x16xf32>
    %1211 = math.exp %1210 : vector<2x16xf32>
    %cst_220 = arith.constant 1.000000e+00 : f32
    %1212 = vector.broadcast %cst_220 : f32 to vector<2x16xf32>
    %1213 = arith.addf %1212, %1211 : vector<2x16xf32>
    %1214 = arith.divf %1212, %1213 : vector<2x16xf32>
    %1215 = vector.extract_strided_slice %1208 {offsets = [0, 16], sizes = [2, 16], strides = [1, 1]} : vector<2x64xf32> to vector<2x16xf32>
    %1216 = arith.negf %1215 : vector<2x16xf32>
    %1217 = math.exp %1216 : vector<2x16xf32>
    %cst_221 = arith.constant 1.000000e+00 : f32
    %1218 = vector.broadcast %cst_221 : f32 to vector<2x16xf32>
    %1219 = arith.addf %1218, %1217 : vector<2x16xf32>
    %1220 = arith.divf %1218, %1219 : vector<2x16xf32>
    %1221 = vector.extract_strided_slice %1208 {offsets = [0, 32], sizes = [2, 16], strides = [1, 1]} : vector<2x64xf32> to vector<2x16xf32>
    %1222 = math.tanh %1221 : vector<2x16xf32>
    %1223 = vector.extract_strided_slice %1208 {offsets = [0, 48], sizes = [2, 16], strides = [1, 1]} : vector<2x64xf32> to vector<2x16xf32>
    %1224 = arith.negf %1223 : vector<2x16xf32>
    %1225 = math.exp %1224 : vector<2x16xf32>
    %cst_222 = arith.constant 1.000000e+00 : f32
    %1226 = vector.broadcast %cst_222 : f32 to vector<2x16xf32>
    %1227 = arith.addf %1226, %1225 : vector<2x16xf32>
    %1228 = arith.divf %1226, %1227 : vector<2x16xf32>
    %1229 = arith.mulf %1220, %1204 : vector<2x16xf32>
    %1230 = arith.mulf %1214, %1222 : vector<2x16xf32>
    %1231 = arith.addf %1229, %1230 : vector<2x16xf32>
    %1232 = math.tanh %1231 : vector<2x16xf32>
    %1233 = arith.mulf %1228, %1232 : vector<2x16xf32>
    %cst_223 = arith.constant dense<0.000000e+00> : vector<2x64xf32>
    %1234 = tpu.matmul %1233, %1179, %cst_223 {dimension_numbers = #tpu.dot_dimension_numbers<[1], [0], [0], [1], [0, 0, 1, 1], [], []>} : vector<2x16xf32>, vector<16x64xf32>, vector<2x64xf32> -> vector<2x64xf32>
    %1235 = arith.addf %958, %1234 : vector<2x64xf32>
    %1236 = vector.extract_strided_slice %1235 {offsets = [0, 0], sizes = [2, 16], strides = [1, 1]} : vector<2x64xf32> to vector<2x16xf32>
    %1237 = arith.negf %1236 : vector<2x16xf32>
    %1238 = math.exp %1237 : vector<2x16xf32>
    %cst_224 = arith.constant 1.000000e+00 : f32
    %1239 = vector.broadcast %cst_224 : f32 to vector<2x16xf32>
    %1240 = arith.addf %1239, %1238 : vector<2x16xf32>
    %1241 = arith.divf %1239, %1240 : vector<2x16xf32>
    %1242 = vector.extract_strided_slice %1235 {offsets = [0, 16], sizes = [2, 16], strides = [1, 1]} : vector<2x64xf32> to vector<2x16xf32>
    %1243 = arith.negf %1242 : vector<2x16xf32>
    %1244 = math.exp %1243 : vector<2x16xf32>
    %cst_225 = arith.constant 1.000000e+00 : f32
    %1245 = vector.broadcast %cst_225 : f32 to vector<2x16xf32>
    %1246 = arith.addf %1245, %1244 : vector<2x16xf32>
    %1247 = arith.divf %1245, %1246 : vector<2x16xf32>
    %1248 = vector.extract_strided_slice %1235 {offsets = [0, 32], sizes = [2, 16], strides = [1, 1]} : vector<2x64xf32> to vector<2x16xf32>
    %1249 = math.tanh %1248 : vector<2x16xf32>
    %1250 = vector.extract_strided_slice %1235 {offsets = [0, 48], sizes = [2, 16], strides = [1, 1]} : vector<2x64xf32> to vector<2x16xf32>
    %1251 = arith.negf %1250 : vector<2x16xf32>
    %1252 = math.exp %1251 : vector<2x16xf32>
    %cst_226 = arith.constant 1.000000e+00 : f32
    %1253 = vector.broadcast %cst_226 : f32 to vector<2x16xf32>
    %1254 = arith.addf %1253, %1252 : vector<2x16xf32>
    %1255 = arith.divf %1253, %1254 : vector<2x16xf32>
    %1256 = arith.mulf %1247, %1231 : vector<2x16xf32>
    %1257 = arith.mulf %1241, %1249 : vector<2x16xf32>
    %1258 = arith.addf %1256, %1257 : vector<2x16xf32>
    %1259 = math.tanh %1258 : vector<2x16xf32>
    %1260 = arith.mulf %1255, %1259 : vector<2x16xf32>
    %cst_227 = arith.constant dense<0.000000e+00> : vector<2x64xf32>
    %1261 = tpu.matmul %1260, %1179, %cst_227 {dimension_numbers = #tpu.dot_dimension_numbers<[1], [0], [0], [1], [0, 0, 1, 1], [], []>} : vector<2x16xf32>, vector<16x64xf32>, vector<2x64xf32> -> vector<2x64xf32>
    %1262 = arith.addf %957, %1261 : vector<2x64xf32>
    %1263 = vector.extract_strided_slice %1262 {offsets = [0, 0], sizes = [2, 16], strides = [1, 1]} : vector<2x64xf32> to vector<2x16xf32>
    %1264 = arith.negf %1263 : vector<2x16xf32>
    %1265 = math.exp %1264 : vector<2x16xf32>
    %cst_228 = arith.constant 1.000000e+00 : f32
    %1266 = vector.broadcast %cst_228 : f32 to vector<2x16xf32>
    %1267 = arith.addf %1266, %1265 : vector<2x16xf32>
    %1268 = arith.divf %1266, %1267 : vector<2x16xf32>
    %1269 = vector.extract_strided_slice %1262 {offsets = [0, 16], sizes = [2, 16], strides = [1, 1]} : vector<2x64xf32> to vector<2x16xf32>
    %1270 = arith.negf %1269 : vector<2x16xf32>
    %1271 = math.exp %1270 : vector<2x16xf32>
    %cst_229 = arith.constant 1.000000e+00 : f32
    %1272 = vector.broadcast %cst_229 : f32 to vector<2x16xf32>
    %1273 = arith.addf %1272, %1271 : vector<2x16xf32>
    %1274 = arith.divf %1272, %1273 : vector<2x16xf32>
    %1275 = vector.extract_strided_slice %1262 {offsets = [0, 32], sizes = [2, 16], strides = [1, 1]} : vector<2x64xf32> to vector<2x16xf32>
    %1276 = math.tanh %1275 : vector<2x16xf32>
    %1277 = vector.extract_strided_slice %1262 {offsets = [0, 48], sizes = [2, 16], strides = [1, 1]} : vector<2x64xf32> to vector<2x16xf32>
    %1278 = arith.negf %1277 : vector<2x16xf32>
    %1279 = math.exp %1278 : vector<2x16xf32>
    %cst_230 = arith.constant 1.000000e+00 : f32
    %1280 = vector.broadcast %cst_230 : f32 to vector<2x16xf32>
    %1281 = arith.addf %1280, %1279 : vector<2x16xf32>
    %1282 = arith.divf %1280, %1281 : vector<2x16xf32>
    %1283 = arith.mulf %1274, %1258 : vector<2x16xf32>
    %1284 = arith.mulf %1268, %1276 : vector<2x16xf32>
    %1285 = arith.addf %1283, %1284 : vector<2x16xf32>
    %1286 = math.tanh %1285 : vector<2x16xf32>
    %1287 = arith.mulf %1282, %1286 : vector<2x16xf32>
    %cst_231 = arith.constant dense<0.000000e+00> : vector<2x64xf32>
    %1288 = tpu.matmul %1287, %1179, %cst_231 {dimension_numbers = #tpu.dot_dimension_numbers<[1], [0], [0], [1], [0, 0, 1, 1], [], []>} : vector<2x16xf32>, vector<16x64xf32>, vector<2x64xf32> -> vector<2x64xf32>
    %1289 = arith.addf %956, %1288 : vector<2x64xf32>
    %1290 = vector.extract_strided_slice %1289 {offsets = [0, 0], sizes = [2, 16], strides = [1, 1]} : vector<2x64xf32> to vector<2x16xf32>
    %1291 = arith.negf %1290 : vector<2x16xf32>
    %1292 = math.exp %1291 : vector<2x16xf32>
    %cst_232 = arith.constant 1.000000e+00 : f32
    %1293 = vector.broadcast %cst_232 : f32 to vector<2x16xf32>
    %1294 = arith.addf %1293, %1292 : vector<2x16xf32>
    %1295 = arith.divf %1293, %1294 : vector<2x16xf32>
    %1296 = vector.extract_strided_slice %1289 {offsets = [0, 16], sizes = [2, 16], strides = [1, 1]} : vector<2x64xf32> to vector<2x16xf32>
    %1297 = arith.negf %1296 : vector<2x16xf32>
    %1298 = math.exp %1297 : vector<2x16xf32>
    %cst_233 = arith.constant 1.000000e+00 : f32
    %1299 = vector.broadcast %cst_233 : f32 to vector<2x16xf32>
    %1300 = arith.addf %1299, %1298 : vector<2x16xf32>
    %1301 = arith.divf %1299, %1300 : vector<2x16xf32>
    %1302 = vector.extract_strided_slice %1289 {offsets = [0, 32], sizes = [2, 16], strides = [1, 1]} : vector<2x64xf32> to vector<2x16xf32>
    %1303 = math.tanh %1302 : vector<2x16xf32>
    %1304 = vector.extract_strided_slice %1289 {offsets = [0, 48], sizes = [2, 16], strides = [1, 1]} : vector<2x64xf32> to vector<2x16xf32>
    %1305 = arith.negf %1304 : vector<2x16xf32>
    %1306 = math.exp %1305 : vector<2x16xf32>
    %cst_234 = arith.constant 1.000000e+00 : f32
    %1307 = vector.broadcast %cst_234 : f32 to vector<2x16xf32>
    %1308 = arith.addf %1307, %1306 : vector<2x16xf32>
    %1309 = arith.divf %1307, %1308 : vector<2x16xf32>
    %1310 = arith.mulf %1301, %1285 : vector<2x16xf32>
    %1311 = arith.mulf %1295, %1303 : vector<2x16xf32>
    %1312 = arith.addf %1310, %1311 : vector<2x16xf32>
    %1313 = math.tanh %1312 : vector<2x16xf32>
    %1314 = arith.mulf %1309, %1313 : vector<2x16xf32>
    %cst_235 = arith.constant dense<0.000000e+00> : vector<2x64xf32>
    %1315 = tpu.matmul %1314, %1179, %cst_235 {dimension_numbers = #tpu.dot_dimension_numbers<[1], [0], [0], [1], [0, 0, 1, 1], [], []>} : vector<2x16xf32>, vector<16x64xf32>, vector<2x64xf32> -> vector<2x64xf32>
    %1316 = arith.addf %955, %1315 : vector<2x64xf32>
    %1317 = vector.extract_strided_slice %1316 {offsets = [0, 0], sizes = [2, 16], strides = [1, 1]} : vector<2x64xf32> to vector<2x16xf32>
    %1318 = arith.negf %1317 : vector<2x16xf32>
    %1319 = math.exp %1318 : vector<2x16xf32>
    %cst_236 = arith.constant 1.000000e+00 : f32
    %1320 = vector.broadcast %cst_236 : f32 to vector<2x16xf32>
    %1321 = arith.addf %1320, %1319 : vector<2x16xf32>
    %1322 = arith.divf %1320, %1321 : vector<2x16xf32>
    %1323 = vector.extract_strided_slice %1316 {offsets = [0, 16], sizes = [2, 16], strides = [1, 1]} : vector<2x64xf32> to vector<2x16xf32>
    %1324 = arith.negf %1323 : vector<2x16xf32>
    %1325 = math.exp %1324 : vector<2x16xf32>
    %cst_237 = arith.constant 1.000000e+00 : f32
    %1326 = vector.broadcast %cst_237 : f32 to vector<2x16xf32>
    %1327 = arith.addf %1326, %1325 : vector<2x16xf32>
    %1328 = arith.divf %1326, %1327 : vector<2x16xf32>
    %1329 = vector.extract_strided_slice %1316 {offsets = [0, 32], sizes = [2, 16], strides = [1, 1]} : vector<2x64xf32> to vector<2x16xf32>
    %1330 = math.tanh %1329 : vector<2x16xf32>
    %1331 = vector.extract_strided_slice %1316 {offsets = [0, 48], sizes = [2, 16], strides = [1, 1]} : vector<2x64xf32> to vector<2x16xf32>
    %1332 = arith.negf %1331 : vector<2x16xf32>
    %1333 = math.exp %1332 : vector<2x16xf32>
    %cst_238 = arith.constant 1.000000e+00 : f32
    %1334 = vector.broadcast %cst_238 : f32 to vector<2x16xf32>
    %1335 = arith.addf %1334, %1333 : vector<2x16xf32>
    %1336 = arith.divf %1334, %1335 : vector<2x16xf32>
    %1337 = arith.mulf %1328, %1312 : vector<2x16xf32>
    %1338 = arith.mulf %1322, %1330 : vector<2x16xf32>
    %1339 = arith.addf %1337, %1338 : vector<2x16xf32>
    %1340 = math.tanh %1339 : vector<2x16xf32>
    %1341 = arith.mulf %1336, %1340 : vector<2x16xf32>
    %cst_239 = arith.constant dense<0.000000e+00> : vector<2x64xf32>
    %1342 = tpu.matmul %1341, %1179, %cst_239 {dimension_numbers = #tpu.dot_dimension_numbers<[1], [0], [0], [1], [0, 0, 1, 1], [], []>} : vector<2x16xf32>, vector<16x64xf32>, vector<2x64xf32> -> vector<2x64xf32>
    %1343 = arith.addf %954, %1342 : vector<2x64xf32>
    %1344 = vector.extract_strided_slice %1343 {offsets = [0, 0], sizes = [2, 16], strides = [1, 1]} : vector<2x64xf32> to vector<2x16xf32>
    %1345 = arith.negf %1344 : vector<2x16xf32>
    %1346 = math.exp %1345 : vector<2x16xf32>
    %cst_240 = arith.constant 1.000000e+00 : f32
    %1347 = vector.broadcast %cst_240 : f32 to vector<2x16xf32>
    %1348 = arith.addf %1347, %1346 : vector<2x16xf32>
    %1349 = arith.divf %1347, %1348 : vector<2x16xf32>
    %1350 = vector.extract_strided_slice %1343 {offsets = [0, 16], sizes = [2, 16], strides = [1, 1]} : vector<2x64xf32> to vector<2x16xf32>
    %1351 = arith.negf %1350 : vector<2x16xf32>
    %1352 = math.exp %1351 : vector<2x16xf32>
    %cst_241 = arith.constant 1.000000e+00 : f32
    %1353 = vector.broadcast %cst_241 : f32 to vector<2x16xf32>
    %1354 = arith.addf %1353, %1352 : vector<2x16xf32>
    %1355 = arith.divf %1353, %1354 : vector<2x16xf32>
    %1356 = vector.extract_strided_slice %1343 {offsets = [0, 32], sizes = [2, 16], strides = [1, 1]} : vector<2x64xf32> to vector<2x16xf32>
    %1357 = math.tanh %1356 : vector<2x16xf32>
    %1358 = vector.extract_strided_slice %1343 {offsets = [0, 48], sizes = [2, 16], strides = [1, 1]} : vector<2x64xf32> to vector<2x16xf32>
    %1359 = arith.negf %1358 : vector<2x16xf32>
    %1360 = math.exp %1359 : vector<2x16xf32>
    %cst_242 = arith.constant 1.000000e+00 : f32
    %1361 = vector.broadcast %cst_242 : f32 to vector<2x16xf32>
    %1362 = arith.addf %1361, %1360 : vector<2x16xf32>
    %1363 = arith.divf %1361, %1362 : vector<2x16xf32>
    %1364 = arith.mulf %1355, %1339 : vector<2x16xf32>
    %1365 = arith.mulf %1349, %1357 : vector<2x16xf32>
    %1366 = arith.addf %1364, %1365 : vector<2x16xf32>
    %1367 = math.tanh %1366 : vector<2x16xf32>
    %1368 = arith.mulf %1363, %1367 : vector<2x16xf32>
    %cst_243 = arith.constant dense<0.000000e+00> : vector<2x64xf32>
    %1369 = tpu.matmul %1368, %1179, %cst_243 {dimension_numbers = #tpu.dot_dimension_numbers<[1], [0], [0], [1], [0, 0, 1, 1], [], []>} : vector<2x16xf32>, vector<16x64xf32>, vector<2x64xf32> -> vector<2x64xf32>
    %1370 = arith.addf %953, %1369 : vector<2x64xf32>
    %1371 = vector.extract_strided_slice %1370 {offsets = [0, 0], sizes = [2, 16], strides = [1, 1]} : vector<2x64xf32> to vector<2x16xf32>
    %1372 = arith.negf %1371 : vector<2x16xf32>
    %1373 = math.exp %1372 : vector<2x16xf32>
    %cst_244 = arith.constant 1.000000e+00 : f32
    %1374 = vector.broadcast %cst_244 : f32 to vector<2x16xf32>
    %1375 = arith.addf %1374, %1373 : vector<2x16xf32>
    %1376 = arith.divf %1374, %1375 : vector<2x16xf32>
    %1377 = vector.extract_strided_slice %1370 {offsets = [0, 16], sizes = [2, 16], strides = [1, 1]} : vector<2x64xf32> to vector<2x16xf32>
    %1378 = arith.negf %1377 : vector<2x16xf32>
    %1379 = math.exp %1378 : vector<2x16xf32>
    %cst_245 = arith.constant 1.000000e+00 : f32
    %1380 = vector.broadcast %cst_245 : f32 to vector<2x16xf32>
    %1381 = arith.addf %1380, %1379 : vector<2x16xf32>
    %1382 = arith.divf %1380, %1381 : vector<2x16xf32>
    %1383 = vector.extract_strided_slice %1370 {offsets = [0, 32], sizes = [2, 16], strides = [1, 1]} : vector<2x64xf32> to vector<2x16xf32>
    %1384 = math.tanh %1383 : vector<2x16xf32>
    %1385 = vector.extract_strided_slice %1370 {offsets = [0, 48], sizes = [2, 16], strides = [1, 1]} : vector<2x64xf32> to vector<2x16xf32>
    %1386 = arith.negf %1385 : vector<2x16xf32>
    %1387 = math.exp %1386 : vector<2x16xf32>
    %cst_246 = arith.constant 1.000000e+00 : f32
    %1388 = vector.broadcast %cst_246 : f32 to vector<2x16xf32>
    %1389 = arith.addf %1388, %1387 : vector<2x16xf32>
    %1390 = arith.divf %1388, %1389 : vector<2x16xf32>
    %1391 = arith.mulf %1382, %1366 : vector<2x16xf32>
    %1392 = arith.mulf %1376, %1384 : vector<2x16xf32>
    %1393 = arith.addf %1391, %1392 : vector<2x16xf32>
    %1394 = math.tanh %1393 : vector<2x16xf32>
    %1395 = arith.mulf %1390, %1394 : vector<2x16xf32>
    %1396 = tpu.concatenate %989, %1395 in 1 : vector<2x16xf32>, vector<2x16xf32> -> vector<2x32xf32>
    %1397 = tpu.concatenate %1016, %1368 in 1 : vector<2x16xf32>, vector<2x16xf32> -> vector<2x32xf32>
    %1398 = tpu.concatenate %1043, %1341 in 1 : vector<2x16xf32>, vector<2x16xf32> -> vector<2x32xf32>
    %1399 = tpu.concatenate %1070, %1314 in 1 : vector<2x16xf32>, vector<2x16xf32> -> vector<2x32xf32>
    %1400 = tpu.concatenate %1097, %1287 in 1 : vector<2x16xf32>, vector<2x16xf32> -> vector<2x32xf32>
    %1401 = tpu.concatenate %1124, %1260 in 1 : vector<2x16xf32>, vector<2x16xf32> -> vector<2x32xf32>
    %1402 = tpu.concatenate %1151, %1233 in 1 : vector<2x16xf32>, vector<2x16xf32> -> vector<2x32xf32>
    %1403 = tpu.concatenate %1178, %1206 in 1 : vector<2x16xf32>, vector<2x16xf32> -> vector<2x32xf32>
    %1404 = vector.shape_cast %1396 : vector<2x32xf32> to vector<2x1x32xf32>
    %c0_247 = arith.constant 0 : index
    %c0_248 = arith.constant 0 : index
    %c0_249 = arith.constant 0 : index
    %1405 = vector.load %arg21[%c0_247, %c0_248, %c0_249] : memref<2x8x32xf32, #tpu.memory_space<vmem>>, vector<2x1x32xf32>
    tpu.vector_store %arg21[%c0_247, %c0_248, %c0_249], %1404 {strides = array<i32>} : memref<2x8x32xf32, #tpu.memory_space<vmem>>, vector<2x1x32xf32>,
    %1406 = vector.shape_cast %1397 : vector<2x32xf32> to vector<2x1x32xf32>
    %c0_250 = arith.constant 0 : index
    %c1_251 = arith.constant 1 : index
    %c0_252 = arith.constant 0 : index
    %1407 = vector.load %arg21[%c0_250, %c1_251, %c0_252] : memref<2x8x32xf32, #tpu.memory_space<vmem>>, vector<2x1x32xf32>
    tpu.vector_store %arg21[%c0_250, %c1_251, %c0_252], %1406 {strides = array<i32>} : memref<2x8x32xf32, #tpu.memory_space<vmem>>, vector<2x1x32xf32>,
    %1408 = vector.shape_cast %1398 : vector<2x32xf32> to vector<2x1x32xf32>
    %c0_253 = arith.constant 0 : index
    %c2 = arith.constant 2 : index
    %c0_254 = arith.constant 0 : index
    %1409 = vector.load %arg21[%c0_253, %c2, %c0_254] : memref<2x8x32xf32, #tpu.memory_space<vmem>>, vector<2x1x32xf32>
    tpu.vector_store %arg21[%c0_253, %c2, %c0_254], %1408 {strides = array<i32>} : memref<2x8x32xf32, #tpu.memory_space<vmem>>, vector<2x1x32xf32>,
    %1410 = vector.shape_cast %1399 : vector<2x32xf32> to vector<2x1x32xf32>
    %c0_255 = arith.constant 0 : index
    %c3 = arith.constant 3 : index
    %c0_256 = arith.constant 0 : index
    %1411 = vector.load %arg21[%c0_255, %c3, %c0_256] : memref<2x8x32xf32, #tpu.memory_space<vmem>>, vector<2x1x32xf32>
    tpu.vector_store %arg21[%c0_255, %c3, %c0_256], %1410 {strides = array<i32>} : memref<2x8x32xf32, #tpu.memory_space<vmem>>, vector<2x1x32xf32>,
    %1412 = vector.shape_cast %1400 : vector<2x32xf32> to vector<2x1x32xf32>
    %c0_257 = arith.constant 0 : index
    %c4 = arith.constant 4 : index
    %c0_258 = arith.constant 0 : index
    %1413 = vector.load %arg21[%c0_257, %c4, %c0_258] : memref<2x8x32xf32, #tpu.memory_space<vmem>>, vector<2x1x32xf32>
    tpu.vector_store %arg21[%c0_257, %c4, %c0_258], %1412 {strides = array<i32>} : memref<2x8x32xf32, #tpu.memory_space<vmem>>, vector<2x1x32xf32>,
    %1414 = vector.shape_cast %1401 : vector<2x32xf32> to vector<2x1x32xf32>
    %c0_259 = arith.constant 0 : index
    %c5 = arith.constant 5 : index
    %c0_260 = arith.constant 0 : index
    %1415 = vector.load %arg21[%c0_259, %c5, %c0_260] : memref<2x8x32xf32, #tpu.memory_space<vmem>>, vector<2x1x32xf32>
    tpu.vector_store %arg21[%c0_259, %c5, %c0_260], %1414 {strides = array<i32>} : memref<2x8x32xf32, #tpu.memory_space<vmem>>, vector<2x1x32xf32>,
    %1416 = vector.shape_cast %1402 : vector<2x32xf32> to vector<2x1x32xf32>
    %c0_261 = arith.constant 0 : index
    %c6 = arith.constant 6 : index
    %c0_262 = arith.constant 0 : index
    %1417 = vector.load %arg21[%c0_261, %c6, %c0_262] : memref<2x8x32xf32, #tpu.memory_space<vmem>>, vector<2x1x32xf32>
    tpu.vector_store %arg21[%c0_261, %c6, %c0_262], %1416 {strides = array<i32>} : memref<2x8x32xf32, #tpu.memory_space<vmem>>, vector<2x1x32xf32>,
    %1418 = vector.shape_cast %1403 : vector<2x32xf32> to vector<2x1x32xf32>
    %c0_263 = arith.constant 0 : index
    %c7 = arith.constant 7 : index
    %c0_264 = arith.constant 0 : index
    %1419 = vector.load %arg21[%c0_263, %c7, %c0_264] : memref<2x8x32xf32, #tpu.memory_space<vmem>>, vector<2x1x32xf32>
    tpu.vector_store %arg21[%c0_263, %c7, %c0_264], %1418 {strides = array<i32>} : memref<2x8x32xf32, #tpu.memory_space<vmem>>, vector<2x1x32xf32>,
    %1420 = tpu.concatenate %1178, %1395 in 1 : vector<2x16xf32>, vector<2x16xf32> -> vector<2x32xf32>
    %c0_265 = arith.constant 0 : index
    %c0_266 = arith.constant 0 : index
    %1421 = vector.load %arg22[%c0_265, %c0_266] : memref<2x32xf32, #tpu.memory_space<vmem>>, vector<2x32xf32>
    tpu.vector_store %arg22[%c0_265, %c0_266], %1420 {strides = array<i32>} : memref<2x32xf32, #tpu.memory_space<vmem>>, vector<2x32xf32>,
    %1422 = tpu.concatenate %1176, %1393 in 1 : vector<2x16xf32>, vector<2x16xf32> -> vector<2x32xf32>
    %c0_267 = arith.constant 0 : index
    %c0_268 = arith.constant 0 : index
    %1423 = vector.load %arg23[%c0_267, %c0_268] : memref<2x32xf32, #tpu.memory_space<vmem>>, vector<2x32xf32>
    tpu.vector_store %arg23[%c0_267, %c0_268], %1422 {strides = array<i32>} : memref<2x32xf32, #tpu.memory_space<vmem>>, vector<2x32xf32>,
    return
  }
}

</mosaic_0001>

<bundles_post_ra>
// kernel: tpu_custom_call.1
= control target key start
LH: loop header
LB: loop body
LE: loop exit
PB: predicated region body
PF: predicated region fallthrough
CT: control target
= control target key end

     0   :  { %s9619_s0 = inlined_call_operand.hbm [shape: f32[2,32], index: 0, kind: input, shape index: {}]   ;;  %s9620_s1 = inlined_call_operand.hbm [shape: f32[2,2,32], index: 1, kind: input, shape index: {}]   ;;  %s9621_s2 = inlined_call_operand.hbm [shape: f32[2,2,32], index: 2, kind: input, shape index: {}]   ;;  %s9622_s3 = inlined_call_operand.hbm [shape: f32[32,128], index: 3, kind: input, shape index: {}]   ;;  %s9623_s4 = inlined_call_operand.hbm [shape: f32[32,128], index: 4, kind: input, shape index: {}]   ;;  %s9624_s5 = inlined_call_operand.hbm [shape: f32[1,128], index: 5, kind: input, shape index: {}]   ;;  %s9625_s6 = inlined_call_operand.hbm [shape: f32[32,128], index: 6, kind: input, shape index: {}]   ;;  %s9626_s7 = inlined_call_operand.hbm [shape: f32[32,128], index: 7, kind: input, shape index: {}]   ;;  %s9627_s8 = inlined_call_operand.hbm [shape: f32[1,128], index: 8, kind: input, shape index: {}]   ;;  %s9628_s9 = inlined_call_operand.vmem [shape: f32[32,64], index: 9, kind: input, shape index: {}]   ;;  %s9629_s10 = inlined_call_operand.hbm [shape: f32[16,64], index: 10, kind: input, shape index: {}]   ;;  %s9630_s11 = inlined_call_operand.hbm [shape: f32[1,64], index: 11, kind: input, shape index: {}]   ;;  %s9631_s12 = inlined_call_operand.hbm [shape: f32[32,64], index: 12, kind: input, shape index: {}]   ;;  %s9632_s13 = inlined_call_operand.hbm [shape: f32[16,64], index: 13, kind: input, shape index: {}]   ;;  %s9633_s14 = inlined_call_operand.hbm [shape: f32[1,64], index: 14, kind: input, shape index: {}]   ;;  %s9634_s15 = inlined_call_operand.hbm [shape: f32[32,64], index: 15, kind: input, shape index: {}]   ;;  %s9635_s16 = inlined_call_operand.hbm [shape: f32[16,64], index: 16, kind: input, shape index: {}]   ;;  %s9636_s17 = inlined_call_operand.hbm [shape: f32[1,64], index: 17, kind: input, shape index: {}]   ;;  %s9637_s18 = inlined_call_operand.vmem [shape: f32[32,64], index: 18, kind: input, shape index: {}]   ;;  %s9638_s19 = inlined_call_operand.hbm [shape: f32[16,64], index: 19, kind: input, shape index: {}]   ;;  %s9639_s20 = inlined_call_operand.vmem [shape: f32[1,64], index: 20, kind: input, shape index: {}]   ;;  %s9640_s21 = inlined_call_operand.hbm [shape: f32[2,8,32], index: 21, kind: output, shape index: {0}]   ;;  %s9641_s22 = inlined_call_operand.hbm [shape: f32[2,32], index: 22, kind: output, shape index: {1}]   ;;  %s9642_s23 = inlined_call_operand.hbm [shape: f32[2,32], index: 23, kind: output, shape index: {2}]  }
   0x1   :  { %9657 = sst [smem:[#allocation47_spill]] %s9619_s0 }
   0x2   :  { %9658 = sst [smem:[#allocation48_spill]] %s9620_s1 }
   0x3   :  { %9659 = sst [smem:[#allocation49_spill]] %s9621_s2 }
   0x4   :  { %9660 = sst [smem:[#allocation50_spill]] %s9622_s3 }
   0x5   :  { %9661 = sst [smem:[#allocation51_spill]] %s9623_s4 }
   0x6   :  { %9662 = sst [smem:[#allocation52_spill]] %s9624_s5 }
   0x7   :  { %9663 = sst [smem:[#allocation53_spill]] %s9625_s6 }
   0x8   :  { %9664 = sst [smem:[#allocation54_spill]] %s9626_s7 }
   0x9   :  { %9665 = sst [smem:[#allocation55_spill]] %s9640_s21 }
   0xa   :  { %9666 = sst [smem:[#allocation56_spill]] %s9641_s22 }
   0xb   :  { %9667 = sst [smem:[#allocation57_spill]] %s9642_s23 }
   0xc   :  { %29 = vsyncpa [#allocation3], 0 }
   0xd   :  { %30 = vsyncpa [#allocation6], 0 }
   0xe   :  { %31 = vsyncpa [#allocation9], 0 }
   0xf   :  { %32 = vsyncpa [#allocation12], 0 }
  0x10   :  { %33 = vsyncpa [#allocation15], 0 }
  0x11   :  { %34 = vsyncpa [#allocation18], 0 }
  0x12   :  { %35 = vsyncpa [#allocation21], 0 }
  0x13   :  { %36 = vsyncpa [#allocation24], 0 }
  0x14   :  { %37 = vsyncpa [#allocation27], 0 }
  0x15   :  { %38 = vsyncpa [#allocation30], 0 }
  0x16   :  { %39 = vsyncpa [#allocation4], 0 }
  0x17   :  { %40 = vsyncpa [#allocation33], 0  ;;  %s8247_s4 = smov [#allocation5]   ;;  %s9668_s5 = sld [smem:[#allocation48_spill]] }
  0x18   :  { %s56_s30 = sshll.u32 %s8247_s4, 4  ;;  %s57_s30 = int_to_ptr.vmem [resolvable:$true] %s56_s30 }
  0x1d   :  { %s7761_s1 = scalar_lea.hbm %s9668_s5, 64 }
  0x1e   :  { %p7762_p0 = scmp.ne.s32.totalorder %s9668_s5, %s7761_s1  ;;  %p7765_p1 = scmp.lt.u32.totalorder %s7761_s1, %s9668_s5 }
  0x20   :  { %p7767_p2 = pnand %p7765_p1, %p7762_p0 }
  0x22   :  { %7770 = shalt.err (!%p7767_p2)
}
  0x23   :  { %s7771_s7 = scalar_lea.vmem %s57_s30, 64  ;;  %p7776_p4 = scmp.lt.s32.totalorder %s57_s30, %s57_s30 }
  0x24   :  { %p7772_p3 = scmp.ne.s32.totalorder %s57_s30, %s7771_s7  ;;  %p7777_p5 = scmp.lt.s32.totalorder %s7771_s7, %s7771_s7 }
  0x26   :  { %p7778_p6 = por %p7777_p5, %p7776_p4 }
  0x28   :  { %p7779_p7 = pnand %p7778_p6, %p7772_p3 }
  0x2a   :  { %7782 = shalt.err (!%p7779_p7)
}
  0x2b   :  { %s9653_s28 = smov 32   ;;  %s9655_s29 = smov 2  }
  0x2c   :  { %62 = dma.hbm_to_vmem [thread:$0]  %s9668_s5, 64, %s57_s30, [#allocation6], %s9653_s28, %s9653_s28, %s9655_s29  }
  0x2d   :  { %s8250_s4 = smov [#allocation8]   ;;  %s9669_s26 = sld [smem:[#allocation50_spill]] }
  0x2e   :  { %s80_s24 = sshll.u32 %s8250_s4, 4  ;;  %s81_s24 = int_to_ptr.vmem [resolvable:$true] %s80_s24 }
  0x33   :  { %s7783_s2 = scalar_lea.hbm %s9669_s26, 512 }
  0x34   :  { %p7784_p8 = scmp.ne.s32.totalorder %s9669_s26, %s7783_s2  ;;  %p7787_p9 = scmp.lt.u32.totalorder %s7783_s2, %s9669_s26 }
  0x36   :  { %p7789_p10 = pnand %p7787_p9, %p7784_p8 }
  0x38   :  { %7792 = shalt.err (!%p7789_p10)
}
  0x39   :  { %s7793_s23 = scalar_lea.vmem %s81_s24, 512  ;;  %p7798_p12 = scmp.lt.s32.totalorder %s81_s24, %s81_s24 }
  0x3a   :  { %p7794_p11 = scmp.ne.s32.totalorder %s81_s24, %s7793_s23  ;;  %p7799_p13 = scmp.lt.s32.totalorder %s7793_s23, %s7793_s23 }
  0x3c   :  { %p7800_p0 = por %p7799_p13, %p7798_p12 }
  0x3e   :  { %p7801_p1 = pnand %p7800_p0, %p7794_p11 }
  0x40   :  { %7804 = shalt.err (!%p7801_p1)
}
  0x41   :  { %s8251_s30 = smov 128   ;;  %s8252_s5 = smov 8  }
  0x42   :  { %86 = dma.hbm_to_vmem [thread:$0]  %s9669_s26, 512, %s81_s24, [#allocation9], %s8251_s30, %s8251_s30, %s8252_s5  }
  0x43   :  { %s8253_s21 = smov [#allocation11]   ;;  %s8254_s25 = smov [#allocation14]  }
  0x44   :  { %s105_s4 = sshll.u32 %s8253_s21, 4  ;;  %s126_s1 = sshll.u32 %s8254_s25, 4  ;;  %s106_s4 = int_to_ptr.vmem [resolvable:$true] %s105_s4  ;;  %s8431_s1 = int_to_ptr.vmem [resolvable:$true] %s126_s1 }
  0x45   :  { %s9670_s6 = sld [smem:[#allocation52_spill]] }
  0x4b   :  { %s7805_s27 = scalar_lea.hbm %s9670_s6, 16 }
  0x4c   :  { %p7806_p2 = scmp.ne.s32.totalorder %s9670_s6, %s7805_s27  ;;  %p7809_p3 = scmp.lt.u32.totalorder %s7805_s27, %s9670_s6 }
  0x4e   :  { %p7811_p4 = pnand %p7809_p3, %p7806_p2 }
  0x50   :  { %7814 = shalt.err (!%p7811_p4)
}
  0x51   :  { %s7815_s24 = scalar_lea.vmem %s106_s4, 16  ;;  %s7819_s26 = scalar_lea.vmem %s106_s4, 32 }
  0x52   :  { %p7816_p5 = scmp.ne.s32.totalorder %s106_s4, %s7815_s24  ;;  %p7820_p6 = scmp.lt.s32.totalorder %s106_s4, %s106_s4 }
  0x53   :  { %p7821_p7 = scmp.lt.s32.totalorder %s7819_s26, %s7815_s24 }
  0x55   :  { %p7822_p8 = por %p7821_p7, %p7820_p6 }
  0x57   :  { %p7823_p9 = pnand %p7822_p8, %p7816_p5 }
  0x59   :  { %7826 = shalt.err (!%p7823_p9)
}
  0x5a   :  { %108 = dma.hbm_to_vmem [thread:$0]  %s9670_s6, 16, %s106_s4, [#allocation12]  }
  0x5b   :  { %s9671_s25 = sld [smem:[#allocation54_spill]] }
  0x61   :  { %s7827_s23 = scalar_lea.hbm %s9671_s25, 512 }
  0x62   :  { %p7828_p10 = scmp.ne.s32.totalorder %s9671_s25, %s7827_s23  ;;  %p7831_p11 = scmp.lt.u32.totalorder %s7827_s23, %s9671_s25 }
  0x64   :  { %p7833_p12 = pnand %p7831_p11, %p7828_p10 }
  0x66   :  { %7836 = shalt.err (!%p7833_p12)
}
  0x67   :  { %s7837_s7 = scalar_lea.vmem %s8431_s1, 512  ;;  %p7842_p0 = scmp.lt.s32.totalorder %s8431_s1, %s8431_s1 }
  0x68   :  { %p7838_p13 = scmp.ne.s32.totalorder %s8431_s1, %s7837_s7  ;;  %p7843_p1 = scmp.lt.s32.totalorder %s7837_s7, %s7837_s7 }
  0x6a   :  { %p7844_p2 = por %p7843_p1, %p7842_p0 }
  0x6c   :  { %p7845_p3 = pnand %p7844_p2, %p7838_p13 }
  0x6e   :  { %7848 = shalt.err (!%p7845_p3)
}
  0x6f   :  { %132 = dma.hbm_to_vmem [thread:$0]  %s9671_s25, 512, %s8431_s1, [#allocation15], %s8251_s30, %s8251_s30, %s8252_s5  }
  0x70   :  { %s8255_s24 = smov [#allocation17]   ;;  %s8256_s3 = smov [#allocation20]  }
  0x71   :  { %s150_s26 = sshll.u32 %s8255_s24, 4  ;;  %s172_s0 = sshll.u32 %s8256_s3, 4  ;;  %s151_s26 = int_to_ptr.vmem [resolvable:$true] %s150_s26  ;;  %s8465_s0 = int_to_ptr.vmem [resolvable:$true] %s172_s0 }
  0x72   :  { %s7849_s23 = scalar_lea.hbm %s9629_s10, 256 }
  0x73   :  { %p7850_p4 = scmp.ne.s32.totalorder %s9629_s10, %s7849_s23  ;;  %p7853_p5 = scmp.lt.u32.totalorder %s7849_s23, %s9629_s10 }
  0x75   :  { %p7855_p6 = pnand %p7853_p5, %p7850_p4 }
  0x77   :  { %7858 = shalt.err (!%p7855_p6)
}
  0x78   :  { %s7859_s1 = scalar_lea.vmem %s151_s26, 256  ;;  %p7864_p8 = scmp.lt.s32.totalorder %s151_s26, %s151_s26 }
  0x79   :  { %p7860_p7 = scmp.ne.s32.totalorder %s151_s26, %s7859_s1  ;;  %p7865_p9 = scmp.lt.s32.totalorder %s7859_s1, %s7859_s1 }
  0x7b   :  { %p7866_p10 = por %p7865_p9, %p7864_p8 }
  0x7d   :  { %p7867_p11 = pnand %p7866_p10, %p7860_p7 }
  0x7f   :  { %7870 = shalt.err (!%p7867_p11)
}
  0x80   :  { %156 = dma.hbm_to_vmem [thread:$0]  %s9629_s10, 256, %s151_s26, [#allocation18], %s8251_s30, %s8251_s30, %s8252_s5  }
  0x81   :  { %s7871_s24 = scalar_lea.hbm %s9631_s12, 512 }
  0x82   :  { %p7872_p12 = scmp.ne.s32.totalorder %s9631_s12, %s7871_s24  ;;  %p7875_p13 = scmp.lt.u32.totalorder %s7871_s24, %s9631_s12 }
  0x84   :  { %p7877_p0 = pnand %p7875_p13, %p7872_p12 }
  0x86   :  { %7880 = shalt.err (!%p7877_p0)
}
  0x87   :  { %s7881_s22 = scalar_lea.vmem %s8465_s0, 512  ;;  %p7886_p2 = scmp.lt.s32.totalorder %s8465_s0, %s8465_s0 }
  0x88   :  { %p7882_p1 = scmp.ne.s32.totalorder %s8465_s0, %s7881_s22  ;;  %p7887_p3 = scmp.lt.s32.totalorder %s7881_s22, %s7881_s22 }
  0x8a   :  { %p7888_p4 = por %p7887_p3, %p7886_p2 }
  0x8c   :  { %p7889_p5 = pnand %p7888_p4, %p7882_p1 }
  0x8e   :  { %7892 = shalt.err (!%p7889_p5)
}
  0x8f   :  { %178 = dma.hbm_to_vmem [thread:$0]  %s9631_s12, 512, %s8465_s0, [#allocation21], %s8251_s30, %s8251_s30, %s8252_s5  }
  0x90   :  { %s8257_s29 = smov [#allocation23]   ;;  %s8258_s27 = smov [#allocation26]  }
  0x91   :  { %s197_s2 = sshll.u32 %s8257_s29, 4  ;;  %s218_s1 = sshll.u32 %s8258_s27, 4  ;;  %s198_s2 = int_to_ptr.vmem [resolvable:$true] %s197_s2  ;;  %s8502_s1 = int_to_ptr.vmem [resolvable:$true] %s218_s1 }
  0x92   :  { %s7893_s4 = scalar_lea.hbm %s9633_s14, 16 }
  0x93   :  { %p7894_p6 = scmp.ne.s32.totalorder %s9633_s14, %s7893_s4  ;;  %p7897_p7 = scmp.lt.u32.totalorder %s7893_s4, %s9633_s14 }
  0x95   :  { %p7899_p8 = pnand %p7897_p7, %p7894_p6 }
  0x97   :  { %7902 = shalt.err (!%p7899_p8)
}
  0x98   :  { %s7903_s12 = scalar_lea.vmem %s198_s2, 16  ;;  %s7907_s0 = scalar_lea.vmem %s198_s2, 32 }
  0x99   :  { %p7904_p9 = scmp.ne.s32.totalorder %s198_s2, %s7903_s12  ;;  %p7908_p10 = scmp.lt.s32.totalorder %s198_s2, %s198_s2 }
  0x9a   :  { %p7909_p11 = scmp.lt.s32.totalorder %s7907_s0, %s7903_s12 }
  0x9c   :  { %p7910_p12 = por %p7909_p11, %p7908_p10 }
  0x9e   :  { %p7911_p13 = pnand %p7910_p12, %p7904_p9 }
  0xa0   :  { %7914 = shalt.err (!%p7911_p13)
}
  0xa1   :  { %200 = dma.hbm_to_vmem [thread:$0]  %s9633_s14, 16, %s198_s2, [#allocation24]  }
  0xa2   :  { %s7915_s26 = scalar_lea.hbm %s9635_s16, 256 }
  0xa3   :  { %p7916_p0 = scmp.ne.s32.totalorder %s9635_s16, %s7915_s26  ;;  %p7919_p1 = scmp.lt.u32.totalorder %s7915_s26, %s9635_s16 }
  0xa5   :  { %p7921_p2 = pnand %p7919_p1, %p7916_p0 }
  0xa7   :  { %7924 = shalt.err (!%p7921_p2)
}
  0xa8   :  { %s7925_s4 = scalar_lea.vmem %s8502_s1, 256  ;;  %p7930_p4 = scmp.lt.s32.totalorder %s8502_s1, %s8502_s1 }
  0xa9   :  { %p7926_p3 = scmp.ne.s32.totalorder %s8502_s1, %s7925_s4  ;;  %p7931_p5 = scmp.lt.s32.totalorder %s7925_s4, %s7925_s4 }
  0xab   :  { %p7932_p6 = por %p7931_p5, %p7930_p4 }
  0xad   :  { %p7933_p7 = pnand %p7932_p6, %p7926_p3 }
  0xaf   :  { %7936 = shalt.err (!%p7933_p7)
}
  0xb0   :  { %224 = dma.hbm_to_vmem [thread:$0]  %s9635_s16, 256, %s8502_s1, [#allocation27], %s8251_s30, %s8251_s30, %s8252_s5  }
  0xb1   :  { %s8259_s6 = smov [#allocation2]   ;;  %s8260_s3 = smov [#allocation7]  }
  0xb2   :  { %s47_s24 = sshll.u32 %s8259_s6, 4  ;;  %s68_s28 = sshll.u32 %s8260_s3, 4  ;;  %s48_s24 = int_to_ptr.vmem [resolvable:$true] %s47_s24  ;;  %s8536_s28 = int_to_ptr.vmem [resolvable:$true] %s68_s28 }
  0xb3   :  { %s9672_s21 = sld [smem:[#allocation47_spill]] }
  0xb9   :  { %s7937_s23 = scalar_lea.hbm %s9672_s21, 32 }
  0xba   :  { %p7938_p8 = scmp.ne.s32.totalorder %s9672_s21, %s7937_s23  ;;  %p7941_p9 = scmp.lt.u32.totalorder %s7937_s23, %s9672_s21 }
  0xbc   :  { %p7943_p10 = pnand %p7941_p9, %p7938_p8 }
  0xbe   :  { %7946 = shalt.err (!%p7943_p10)
}
  0xbf   :  { %s7947_s16 = scalar_lea.vmem %s48_s24, 32  ;;  %p7952_p12 = scmp.lt.s32.totalorder %s48_s24, %s48_s24 }
  0xc0   :  { %p7948_p11 = scmp.ne.s32.totalorder %s48_s24, %s7947_s16  ;;  %p7953_p13 = scmp.lt.s32.totalorder %s7947_s16, %s7947_s16 }
  0xc2   :  { %p7954_p0 = por %p7953_p13, %p7952_p12 }
  0xc4   :  { %p7955_p1 = pnand %p7954_p0, %p7948_p11 }
  0xc6   :  { %7958 = shalt.err (!%p7955_p1)
}
  0xc7   :  { %50 = dma.hbm_to_vmem [thread:$0]  %s9672_s21, 32, %s48_s24, [#allocation3]  }
  0xc8   :  { %s9673_s4 = sld [smem:[#allocation49_spill]] }
  0xce   :  { %s7959_s14 = scalar_lea.hbm %s9673_s4, 64 }
  0xcf   :  { %p7960_p2 = scmp.ne.s32.totalorder %s9673_s4, %s7959_s14  ;;  %p7963_p3 = scmp.lt.u32.totalorder %s7959_s14, %s9673_s4 }
  0xd1   :  { %p7965_p4 = pnand %p7963_p3, %p7960_p2 }
  0xd3   :  { %7968 = shalt.err (!%p7965_p4)
}
  0xd4   :  { %s7969_s0 = scalar_lea.vmem %s8536_s28, 64  ;;  %p7974_p6 = scmp.lt.s32.totalorder %s8536_s28, %s8536_s28 }
  0xd5   :  { %p7970_p5 = scmp.ne.s32.totalorder %s8536_s28, %s7969_s0  ;;  %p7975_p7 = scmp.lt.s32.totalorder %s7969_s0, %s7969_s0 }
  0xd7   :  { %p7976_p8 = por %p7975_p7, %p7974_p6 }
  0xd9   :  { %p7977_p9 = pnand %p7976_p8, %p7970_p5 }
  0xdb   :  { %7980 = shalt.err (!%p7977_p9)
}
  0xdc   :  { %s9674_s24 = smov 2   ;;  %s9675_s21 = smov 32  }
  0xdd   :  { %74 = dma.hbm_to_vmem [thread:$0]  %s9673_s4, 64, %s8536_s28, [#allocation6], %s9675_s21, %s9675_s21, %s9674_s24  }
  0xde   :  { %s8261_s10 = smov [#allocation10]   ;;  %s8262_s29 = smov [#allocation13]  }
  0xdf   :  { %s92_s26 = sshll.u32 %s8261_s10, 4  ;;  %s114_s16 = sshll.u32 %s8262_s29, 4  ;;  %s93_s26 = int_to_ptr.vmem [resolvable:$true] %s92_s26  ;;  %s8570_s16 = int_to_ptr.vmem [resolvable:$true] %s114_s16 }
  0xe0   :  { %s9676_s25 = sld [smem:[#allocation51_spill]] }
  0xe6   :  { %s7981_s7 = scalar_lea.hbm %s9676_s25, 512 }
  0xe7   :  { %p7982_p10 = scmp.ne.s32.totalorder %s9676_s25, %s7981_s7  ;;  %p7985_p11 = scmp.lt.u32.totalorder %s7981_s7, %s9676_s25 }
  0xe9   :  { %p7987_p12 = pnand %p7985_p11, %p7982_p10 }
  0xeb   :  { %7990 = shalt.err (!%p7987_p12)
}
  0xec   :  { %s7991_s28 = scalar_lea.vmem %s93_s26, 512  ;;  %p7996_p0 = scmp.lt.s32.totalorder %s93_s26, %s93_s26 }
  0xed   :  { %p7992_p13 = scmp.ne.s32.totalorder %s93_s26, %s7991_s28  ;;  %p7997_p1 = scmp.lt.s32.totalorder %s7991_s28, %s7991_s28 }
  0xef   :  { %p7998_p2 = por %p7997_p1, %p7996_p0 }
  0xf1   :  { %p7999_p3 = pnand %p7998_p2, %p7992_p13 }
  0xf3   :  { %8002 = shalt.err (!%p7999_p3)
}
  0xf4   :  { %98 = dma.hbm_to_vmem [thread:$0]  %s9676_s25, 512, %s93_s26, [#allocation9], %s8251_s30, %s8251_s30, %s8252_s5  }
  0xf5   :  { %s9677_s23 = sld [smem:[#allocation53_spill]] }
  0xfb   :  { %s8003_s22 = scalar_lea.hbm %s9677_s23, 512 }
  0xfc   :  { %p8004_p4 = scmp.ne.s32.totalorder %s9677_s23, %s8003_s22  ;;  %p8007_p5 = scmp.lt.u32.totalorder %s8003_s22, %s9677_s23 }
  0xfe   :  { %p8009_p6 = pnand %p8007_p5, %p8004_p4 }
 0x100   :  { %8012 = shalt.err (!%p8009_p6)
}
 0x101   :  { %s8013_s7 = scalar_lea.vmem %s8570_s16, 512  ;;  %p8018_p8 = scmp.lt.s32.totalorder %s8570_s16, %s8570_s16 }
 0x102   :  { %p8014_p7 = scmp.ne.s32.totalorder %s8570_s16, %s8013_s7  ;;  %p8019_p9 = scmp.lt.s32.totalorder %s8013_s7, %s8013_s7 }
 0x104   :  { %p8020_p10 = por %p8019_p9, %p8018_p8 }
 0x106   :  { %p8021_p11 = pnand %p8020_p10, %p8014_p7 }
 0x108   :  { %8024 = shalt.err (!%p8021_p11)
}
 0x109   :  { %120 = dma.hbm_to_vmem [thread:$0]  %s9677_s23, 512, %s8570_s16, [#allocation12], %s8251_s30, %s8251_s30, %s8252_s5  }
 0x10a   :  { %s8263_s14 = smov [#allocation16]   ;;  %s8264_s6 = smov [#allocation19]  }
 0x10b   :  { %s139_s2 = sshll.u32 %s8263_s14, 4  ;;  %s163_s3 = sshll.u32 %s8264_s6, 4  ;;  %s140_s2 = int_to_ptr.vmem [resolvable:$true] %s139_s2  ;;  %s164_s3 = int_to_ptr.vmem [resolvable:$true] %s163_s3 }
 0x10c   :  { %s8025_s12 = scalar_lea.hbm %s9627_s8, 16 }
 0x10d   :  { %p8026_p12 = scmp.ne.s32.totalorder %s9627_s8, %s8025_s12  ;;  %p8029_p13 = scmp.lt.u32.totalorder %s8025_s12, %s9627_s8 }
 0x10f   :  { %p8031_p0 = pnand %p8029_p13, %p8026_p12 }
 0x111   :  { %8034 = shalt.err (!%p8031_p0)
}
 0x112   :  { %s8035_s16 = scalar_lea.vmem %s140_s2, 16  ;;  %s8039_s23 = scalar_lea.vmem %s140_s2, 32 }
 0x113   :  { %p8036_p1 = scmp.ne.s32.totalorder %s140_s2, %s8035_s16  ;;  %p8040_p2 = scmp.lt.s32.totalorder %s140_s2, %s140_s2 }
 0x114   :  { %p8041_p3 = scmp.lt.s32.totalorder %s8039_s23, %s8035_s16 }
 0x116   :  { %p8042_p4 = por %p8041_p3, %p8040_p2 }
 0x118   :  { %p8043_p5 = pnand %p8042_p4, %p8036_p1 }
 0x11a   :  { %8046 = shalt.err (!%p8043_p5)
}
 0x11b   :  { %142 = dma.hbm_to_vmem [thread:$0]  %s9627_s8, 16, %s140_s2, [#allocation15]  }
 0x11c   :  { %s8047_s26 = scalar_lea.hbm %s9630_s11, 16 }
 0x11d   :  { %p8048_p6 = scmp.ne.s32.totalorder %s9630_s11, %s8047_s26  ;;  %p8051_p7 = scmp.lt.u32.totalorder %s8047_s26, %s9630_s11 }
 0x11f   :  { %p8053_p8 = pnand %p8051_p7, %p8048_p6 }
 0x121   :  { %8056 = shalt.err (!%p8053_p8)
}
 0x122   :  { %s8057_s4 = scalar_lea.vmem %s164_s3, 16  ;;  %s8061_s12 = scalar_lea.vmem %s164_s3, 32 }
 0x123   :  { %p8058_p9 = scmp.ne.s32.totalorder %s164_s3, %s8057_s4  ;;  %p8062_p10 = scmp.lt.s32.totalorder %s164_s3, %s164_s3 }
 0x124   :  { %p8063_p11 = scmp.lt.s32.totalorder %s8061_s12, %s8057_s4 }
 0x126   :  { %p8064_p12 = por %p8063_p11, %p8062_p10 }
 0x128   :  { %p8065_p13 = pnand %p8064_p12, %p8058_p9 }
 0x12a   :  { %8068 = shalt.err (!%p8065_p13)
}
 0x12b   :  { %166 = dma.hbm_to_vmem [thread:$0]  %s9630_s11, 16, %s164_s3, [#allocation18]  }
 0x12c   :  { %s8265_s0 = smov [#allocation22]   ;;  %s8266_s22 = smov [#allocation25]  }
 0x12d   :  { %s184_s24 = sshll.u32 %s8265_s0, 4  ;;  %s206_s10 = sshll.u32 %s8266_s22, 4  ;;  %s185_s24 = int_to_ptr.vmem [resolvable:$true] %s184_s24  ;;  %s8631_s10 = int_to_ptr.vmem [resolvable:$true] %s206_s10 }
 0x12e   :  { %s8069_s29 = scalar_lea.hbm %s9632_s13, 256 }
 0x12f   :  { %p8070_p0 = scmp.ne.s32.totalorder %s9632_s13, %s8069_s29  ;;  %p8073_p1 = scmp.lt.u32.totalorder %s8069_s29, %s9632_s13 }
 0x131   :  { %p8075_p2 = pnand %p8073_p1, %p8070_p0 }
 0x133   :  { %8078 = shalt.err (!%p8075_p2)
}
 0x134   :  { %s8079_s11 = scalar_lea.vmem %s185_s24, 256  ;;  %p8084_p4 = scmp.lt.s32.totalorder %s185_s24, %s185_s24 }
 0x135   :  { %p8080_p3 = scmp.ne.s32.totalorder %s185_s24, %s8079_s11  ;;  %p8085_p5 = scmp.lt.s32.totalorder %s8079_s11, %s8079_s11 }
 0x137   :  { %p8086_p6 = por %p8085_p5, %p8084_p4 }
 0x139   :  { %p8087_p7 = pnand %p8086_p6, %p8080_p3 }
 0x13b   :  { %8090 = shalt.err (!%p8087_p7)
}
 0x13c   :  { %190 = dma.hbm_to_vmem [thread:$0]  %s9632_s13, 256, %s185_s24, [#allocation21], %s8251_s30, %s8251_s30, %s8252_s5  }
 0x13d   :  { %s8091_s28 = scalar_lea.hbm %s9634_s15, 512 }
 0x13e   :  { %p8092_p8 = scmp.ne.s32.totalorder %s9634_s15, %s8091_s28  ;;  %p8095_p9 = scmp.lt.u32.totalorder %s8091_s28, %s9634_s15 }
 0x140   :  { %p8097_p10 = pnand %p8095_p9, %p8092_p8 }
 0x142   :  { %8100 = shalt.err (!%p8097_p10)
}
 0x143   :  { %s8101_s0 = scalar_lea.vmem %s8631_s10, 512  ;;  %p8106_p12 = scmp.lt.s32.totalorder %s8631_s10, %s8631_s10 }
 0x144   :  { %p8102_p11 = scmp.ne.s32.totalorder %s8631_s10, %s8101_s0  ;;  %p8107_p13 = scmp.lt.s32.totalorder %s8101_s0, %s8101_s0 }
 0x146   :  { %p8108_p0 = por %p8107_p13, %p8106_p12 }
 0x148   :  { %p8109_p1 = pnand %p8108_p0, %p8102_p11 }
 0x14a   :  { %8112 = shalt.err (!%p8109_p1)
}
 0x14b   :  { %212 = dma.hbm_to_vmem [thread:$0]  %s9634_s15, 512, %s8631_s10, [#allocation24], %s8251_s30, %s8251_s30, %s8252_s5  }
 0x14c   :  { %s8267_s22 = smov [#allocation28]   ;;  %s8268_s23 = smov [#allocation29]  }
 0x14d   :  { %s231_s16 = sshll.u32 %s8267_s22, 4  ;;  %s242_s29 = sshll.u32 %s8268_s23, 4  ;;  %s232_s16 = int_to_ptr.vmem [resolvable:$true] %s231_s16  ;;  %s8668_s29 = int_to_ptr.vmem [resolvable:$true] %s242_s29 }
 0x14e   :  { %s8113_s7 = scalar_lea.hbm %s9636_s17, 16 }
 0x14f   :  { %p8114_p2 = scmp.ne.s32.totalorder %s9636_s17, %s8113_s7  ;;  %p8117_p3 = scmp.lt.u32.totalorder %s8113_s7, %s9636_s17 }
 0x151   :  { %p8119_p4 = pnand %p8117_p3, %p8114_p2 }
 0x153   :  { %8122 = shalt.err (!%p8119_p4)
}
 0x154   :  { %s8123_s15 = scalar_lea.vmem %s232_s16, 16  ;;  %s8127_s10 = scalar_lea.vmem %s232_s16, 32 }
 0x155   :  { %p8124_p5 = scmp.ne.s32.totalorder %s232_s16, %s8123_s15  ;;  %p8128_p6 = scmp.lt.s32.totalorder %s232_s16, %s232_s16 }
 0x156   :  { %p8129_p7 = scmp.lt.s32.totalorder %s8127_s10, %s8123_s15 }
 0x158   :  { %p8130_p8 = por %p8129_p7, %p8128_p6 }
 0x15a   :  { %p8131_p9 = pnand %p8130_p8, %p8124_p5 }
 0x15c   :  { %8134 = shalt.err (!%p8131_p9)
}
 0x15d   :  { %234 = dma.hbm_to_vmem [thread:$0]  %s9636_s17, 16, %s232_s16, [#allocation27]  }
 0x15e   :  { %s8135_s12 = scalar_lea.hbm %s9638_s19, 256 }
 0x15f   :  { %p8136_p10 = scmp.ne.s32.totalorder %s9638_s19, %s8135_s12  ;;  %p8139_p11 = scmp.lt.u32.totalorder %s8135_s12, %s9638_s19 }
 0x161   :  { %p8141_p12 = pnand %p8139_p11, %p8136_p10 }
 0x163   :  { %8144 = shalt.err (!%p8141_p12)
}
 0x164   :  { %s8145_s24 = scalar_lea.vmem %s8668_s29, 256  ;;  %p8150_p0 = scmp.lt.s32.totalorder %s8668_s29, %s8668_s29 }
 0x165   :  { %p8146_p13 = scmp.ne.s32.totalorder %s8668_s29, %s8145_s24  ;;  %p8151_p1 = scmp.lt.s32.totalorder %s8145_s24, %s8145_s24 }
 0x167   :  { %p8152_p2 = por %p8151_p1, %p8150_p0 }
 0x169   :  { %p8153_p3 = pnand %p8152_p2, %p8146_p13 }
 0x16b   :  { %8156 = shalt.err (!%p8153_p3)
}
 0x16c   :  { %248 = dma.hbm_to_vmem [thread:$0]  %s9638_s19, 256, %s8668_s29, [#allocation30], %s8251_s30, %s8251_s30, %s8252_s5  }
 0x16d   :  { %8223 = dma.done.wait [#allocation3], 32  }
 0x16e   :  { %8224 = vsyncadd [#allocation3], 4294967264 }
 0x16f   :  { %8225 = dma.done.wait [#allocation6], 128  }
 0x170   :  { %8226 = vsyncadd [#allocation6], 4294967168 }
 0x171   :  { %8227 = dma.done.wait [#allocation9], 1024  }
 0x172   :  { %8228 = vsyncadd [#allocation9], 4294966272 }
 0x173   :  { %8229 = dma.done.wait [#allocation12], 528  }
 0x174   :  { %8230 = vsyncadd [#allocation12], 4294966768 }
 0x175   :  { %8231 = dma.done.wait [#allocation15], 528  }
 0x176   :  { %8232 = vsyncadd [#allocation15], 4294966768 }
 0x177   :  { %8233 = dma.done.wait [#allocation18], 272  }
 0x178   :  { %8234 = vsyncadd [#allocation18], 4294967024 }
 0x179   :  { %8235 = dma.done.wait [#allocation21], 768  }
 0x17a   :  { %8236 = vsyncadd [#allocation21], 4294966528 }
 0x17b   :  { %8237 = dma.done.wait [#allocation24], 528  }
 0x17c   :  { %8238 = vsyncadd [#allocation24], 4294966768 }
 0x17d   :  { %8239 = dma.done.wait [#allocation27], 272  }
 0x17e   :  { %8240 = vsyncadd [#allocation27], 4294967024 }
 0x17f   :  { %8241 = dma.done.wait [#allocation30], 256  }
 0x180   :  { %8242 = vsyncadd [#allocation30], 4294967040  ;;  %v8269_v0 = vmov 0.0|0.0   ;;  %vm8270_vm0 = vmmov 0   ;;  %v8271_v1 = vmov 0.0   ;;  %v306_v2 = vld [vmem:[#allocation8] sm:$0xff] }
 0x181   :  { %7105 = vmatprep.subr.bf16.mxu0 %v8269_v0  ;;  %7111 = vmatprep.subr.bf16.mxu1 %v8269_v0  ;;  %v307_v3 = vld [vmem:[#allocation8 + $0x8] sm:$0xff]  ;;  %v393_v4 = vld [vmem:[#allocation10] sm:$0xff]  ;;  %v308_v7 = vld [vmem:[#allocation8 + $0x10] sm:$0xff]  ;;  %vm317_vm1 = vcmask 261120   ;;  %s8272_s19 = smov 64   ;;  %vm1212_vm2 = vcmask 1041408  }
 0x182   :  { %6647 = vmatprep.mubr.msk.f32.mxu0 %vm8270_vm0, %v8271_v1  ;;  %6658 = vmatprep.mubr.msk.f32.mxu1 %vm8270_vm0, %v8271_v1  ;;  %v7106_v5 = vpack.c.bf16 %v307_v3, %v306_v2  ;;  %v394_v6 = vld [vmem:[#allocation10 + $0x8] sm:$0xff]  ;;  %v309_v8 = vld [vmem:[#allocation8 + $0x18] sm:$0xff]  ;;  %v395_v10 = vld [vmem:[#allocation10 + $0x10] sm:$0xff]  ;;  %vm1214_vm3 = vcmask 1043456   ;;  %vm1216_vm4 = vcmask 1045504   ;;  %s8274_s3 = smov 16  }
 0x183   :  { %v8708_v9 = vpack.c.bf16 %v394_v6, %v393_v4  ;;  %v396_v11 = vld [vmem:[#allocation10 + $0x18] sm:$0xff]  ;;  %v7109_v12 = vpack.c.bf16 %v309_v8, %v308_v7  ;;  %v305_v14 = vld [vmem:[#allocation2] sm:$0x3]  ;;  %v6319_v16 = vld [vmem:[#allocation11] ss:$0 sm:$0xff]  ;;  %s8275_s25 = smov 80  }
 0x184   :  { %7107 = vmatpush3.bf16.msra.mxu0 %v7106_v5  ;;  %v8712_v13 = vpack.c.bf16 %v396_v11, %v395_v10  ;;  %v391_v15 = vld [vmem:[#allocation5] sm:$0x3]  ;;  %v392_v24 = vld [vmem:[#allocation7] sm:$0x3]  ;;  %vm2361_vm5 = vcmask 130048   ;;  %vm6046_vm6 = vcmask 253952  }
 0x185   :  { %7113 = vmatpush3.bf16.msra.mxu1 %v8708_v9  ;;  %7108 = vmatprep.subr.bf16.mxu0 %v8269_v0  ;;  %vm6255_vm7 = vcmask 261126   ;;  %s8279_s13 = smov [#allocation34]   ;;  %s8280_s17 = smov [#allocation31]  }
 0x186   :  { %7114 = vmatprep.subr.bf16.mxu1 %v8269_v0  ;;  %s6294_s24 = sshll.u32 %s8279_s13, 4  ;;  %s6271_s22 = sshll.u32 %s8280_s17, 4  ;;  %s9562_s24 = int_to_ptr.vmem [resolvable:$true] %s6294_s24  ;;  %s9567_s22 = int_to_ptr.vmem [resolvable:$true] %s6271_s22 }
 0x188   :  { %7110 = vmatpush3.bf16.msra.mxu0 %v7109_v12 }
 0x189   :  { %7116 = vmatpush3.bf16.msra.mxu1 %v8712_v13  ;;  %7117 = vmatprep.subr.bf16.mxu0 %v8269_v0 }
 0x18a   :  { %7123 = vmatprep.subr.bf16.mxu1 %v8269_v0 }
 0x18b   :  { %6648 = vmatmul.mubr.msk.f32.vlgmr.msra.gmra.mrb[0].mxu0 %vm317_vm1, %v305_v14 }
 0x18c   :  { %6659 = vmatmul.mubr.msk.f32.vlgmr.msra.gmra.mrb[0].mxu1 %vm317_vm1, %v391_v15  ;;  %7119 = vmatpush3.bf16.msra.mxu0 %v8708_v9 }
 0x18d   :  { %7120 = vmatprep.subr.bf16.mxu0 %v8269_v0  ;;  %6669 = vmatprep.mubr.msk.f32.mxu0 %vm8270_vm0, %v8271_v1 }
 0x18e   :  { %7125 = vmatpush3.bf16.msra.mxu1 %v8708_v9  ;;  %6680 = vmatprep.mubr.msk.f32.mxu1 %vm8270_vm0, %v8271_v1 }
 0x18f   :  { %7126 = vmatprep.subr.bf16.mxu1 %v8269_v0 }
 0x190   :  { %7122 = vmatpush3.bf16.msra.mxu0 %v8712_v13 }
 0x191   :  { %7129 = vmatprep.subr.bf16.mxu0 %v8269_v0 }
 0x192   :  { %7128 = vmatpush3.bf16.msra.mxu1 %v8712_v13 }
 0x193   :  { %7135 = vmatprep.subr.bf16.mxu1 %v8269_v0 }
 0x25e   :  { %v387_v17 = vpop.f32.mrb[0].mxu0 }
 0x25f   :  { %v8732_v18 = vadd.f32 %v6319_v16, %v387_v17  ;;  %v6649_v19 = vpop.f32.mrb[1].mxu0  ;;  %v466_v20 = vpop.f32.mrb[0].mxu1 }
 0x260   :  { %v6660_v21 = vpop.f32.mrb[1].mxu1 }
 0x261   :  { %v470_v22 = vadd.f32 %v466_v20, %v8732_v18 }
 0x263   :  { %7377 = vtanh.f32 %v470_v22  ;;  %v6322_v25 = vmul.f32 -1.442695, %v470_v22 }
 0x265   :  { %7379 = vpow2.f32 %v6322_v25 }
 0x26d   :  { %v7378_v23 = vpop.eup %7377 }
 0x26e   :  { %484 = vrot.lane.b32.xlu0 %v7378_v23, %s8272_s19 }
 0x26f   :  { %v7380_v26 = vpop.eup %7379 }
 0x270   :  { %v474_v27 = vadd.f32 1.0, %v7380_v26 }
 0x272   :  { %479 = vrot.lane.b32.xlu0 %v392_v24, %s9675_s21  ;;  %7381 = vrcp.f32 %v474_v27 }
 0x27c   :  { %v7382_v28 = vpop.eup %7381 }
 0x2e0   :  { %v485_v29 = vpop.permute.xlu0 %484 }
 0x2e1   :  { %v487_v30 = vmul.f32 %v7382_v28, %v485_v29 }
 0x2e3   :  { %489 = vrot.lane.b32.xlu1 %v487_v30, %s9675_s21 }
 0x2e4   :  { %v480_v31 = vpop.permute.xlu0 %479 }
 0x2e5   :  { %v482_v32 = vmul.f32 %v7382_v28, %v480_v31 }
 0x355   :  { %v490_v33 = vpop.permute.xlu1 %489 }
 0x356   :  { %v492_v34 = vadd.f32 %v490_v33, %v482_v32 }
 0x358   :  { %7383 = vtanh.f32 %v492_v34 }
 0x362   :  { %v7384_v35 = vpop.eup %7383 }
 0x363   :  { %495 = vrot.lane.b32.xlu1 %v7384_v35, %s8272_s19 }
 0x3d5   :  { %v496_v36 = vpop.permute.xlu1 %495 }
 0x3d6   :  { %v8739_v37 = vmul.f32 %v7382_v28, %v496_v36 }
 0x3d8   :  { %500 = vrot.lane.b32.xlu0 %v8739_v37, %s9675_s21 }
 0x44a   :  { %v501_v38 = vpop.permute.xlu0 %500 }
 0x44b   :  { %6670 = vmatmul.mubr.msk.f32.vlgmr.msra.gmra.mrb[2].mxu0 %vm317_vm1, %v501_v38 }
 0x44c   :  { %7131 = vmatpush3.bf16.msra.mxu0 %v8708_v9  ;;  %6691 = vmatprep.mubr.msk.f32.mxu0 %vm8270_vm0, %v8271_v1 }
 0x44d   :  { %7132 = vmatprep.subr.bf16.mxu0 %v8269_v0 }
 0x450   :  { %7134 = vmatpush3.bf16.msra.mxu0 %v8712_v13 }
 0x451   :  { %7141 = vmatprep.subr.bf16.mxu0 %v8269_v0 }
 0x51e   :  { %v570_v39 = vpop.f32.mrb[2].mxu0 }
 0x51f   :  { %v574_v40 = vadd.f32 %v570_v39, %v8732_v18  ;;  %v6671_v41 = vpop.f32.mrb[3].mxu0 }
 0x521   :  { %7385 = vtanh.f32 %v574_v40  ;;  %v6324_v43 = vmul.f32 -1.442695, %v574_v40 }
 0x523   :  { %7387 = vpow2.f32 %v6324_v43 }
 0x52b   :  { %v7386_v42 = vpop.eup %7385 }
 0x52c   :  { %584 = vrot.lane.b32.xlu1 %v7386_v42, %s8272_s19 }
 0x52d   :  { %v7388_v44 = vpop.eup %7387 }
 0x52e   :  { %v578_v45 = vadd.f32 1.0, %v7388_v44 }
 0x530   :  { %7389 = vrcp.f32 %v578_v45 }
 0x53a   :  { %v7390_v46 = vpop.eup %7389 }
 0x53b   :  { %v582_v49 = vmul.f32 %v7390_v46, %v492_v34 }
 0x59e   :  { %v585_v47 = vpop.permute.xlu1 %584 }
 0x59f   :  { %v587_v48 = vmul.f32 %v7390_v46, %v585_v47 }
 0x5a1   :  { %589 = vrot.lane.b32.xlu0 %v587_v48, %s9675_s21 }
 0x613   :  { %v590_v50 = vpop.permute.xlu0 %589 }
 0x614   :  { %v592_v51 = vadd.f32 %v590_v50, %v582_v49 }
 0x616   :  { %7391 = vtanh.f32 %v592_v51 }
 0x620   :  { %v7392_v52 = vpop.eup %7391 }
 0x621   :  { %595 = vrot.lane.b32.xlu1 %v7392_v52, %s8272_s19 }
 0x693   :  { %v596_v53 = vpop.permute.xlu1 %595 }
 0x694   :  { %v598_v54 = vmul.f32 %v7390_v46, %v596_v53 }
 0x696   :  { %600 = vrot.lane.b32.xlu0 %v598_v54, %s9675_s21  ;;  %v1199_v8 = vrot.slane %v598_v54, 6 }
 0x698   :  { %v1213_v14 = vsel %vm1212_vm2, %v8739_v37, %v1199_v8 }
 0x708   :  { %v601_v55 = vpop.permute.xlu0 %600 }
 0x709   :  { %6681 = vmatmul.mubr.msk.f32.vlgmr.msra.gmra.mrb[2].mxu1 %vm317_vm1, %v601_v55 }
 0x70a   :  { %7137 = vmatpush3.bf16.msra.mxu1 %v8708_v9  ;;  %6702 = vmatprep.mubr.msk.f32.mxu1 %vm8270_vm0, %v8271_v1 }
 0x70b   :  { %7138 = vmatprep.subr.bf16.mxu1 %v8269_v0 }
 0x70e   :  { %7140 = vmatpush3.bf16.msra.mxu1 %v8712_v13 }
 0x70f   :  { %7147 = vmatprep.subr.bf16.mxu1 %v8269_v0 }
 0x7dc   :  { %v670_v56 = vpop.f32.mrb[2].mxu1 }
 0x7dd   :  { %v674_v57 = vadd.f32 %v670_v56, %v8732_v18  ;;  %v6682_v58 = vpop.f32.mrb[3].mxu1 }
 0x7df   :  { %7393 = vtanh.f32 %v674_v57  ;;  %v6326_v60 = vmul.f32 -1.442695, %v674_v57 }
 0x7e1   :  { %7395 = vpow2.f32 %v6326_v60 }
 0x7e9   :  { %v7394_v59 = vpop.eup %7393 }
 0x7ea   :  { %684 = vrot.lane.b32.xlu1 %v7394_v59, %s8272_s19 }
 0x7eb   :  { %v7396_v61 = vpop.eup %7395 }
 0x7ec   :  { %v678_v62 = vadd.f32 1.0, %v7396_v61 }
 0x7ee   :  { %7397 = vrcp.f32 %v678_v62 }
 0x7f8   :  { %v7398_v63 = vpop.eup %7397 }
 0x7f9   :  { %v682_v4 = vmul.f32 %v7398_v63, %v592_v51 }
 0x85c   :  { %v685_v2 = vpop.permute.xlu1 %684 }
 0x85d   :  { %v687_v3 = vmul.f32 %v7398_v63, %v685_v2 }
 0x85f   :  { %689 = vrot.lane.b32.xlu0 %v687_v3, %s9675_s21 }
 0x8d1   :  { %v690_v5 = vpop.permute.xlu0 %689 }
 0x8d2   :  { %v692_v6 = vadd.f32 %v690_v5, %v682_v4 }
 0x8d4   :  { %7399 = vtanh.f32 %v692_v6 }
 0x8de   :  { %v7400_v7 = vpop.eup %7399 }
 0x8df   :  { %695 = vrot.lane.b32.xlu1 %v7400_v7, %s8272_s19 }
 0x951   :  { %v696_v10 = vpop.permute.xlu1 %695 }
 0x952   :  { %v698_v11 = vmul.f32 %v7398_v63, %v696_v10 }
 0x954   :  { %700 = vrot.lane.b32.xlu0 %v698_v11, %s9675_s21  ;;  %v1201_v12 = vrot.slane %v698_v11, 4 }
 0x956   :  { %v1215_v15 = vsel %vm1214_vm3, %v1213_v14, %v1201_v12 }
 0x9c6   :  { %v701_v16 = vpop.permute.xlu0 %700 }
 0x9c7   :  { %6692 = vmatmul.mubr.msk.f32.vlgmr.msra.gmra.mrb[4].mxu0 %vm317_vm1, %v701_v16 }
 0x9c8   :  { %7143 = vmatpush3.bf16.msra.mxu0 %v8708_v9  ;;  %6713 = vmatprep.mubr.msk.f32.mxu0 %vm8270_vm0, %v8271_v1 }
 0x9c9   :  { %7144 = vmatprep.subr.bf16.mxu0 %v8269_v0 }
 0x9cc   :  { %7146 = vmatpush3.bf16.msra.mxu0 %v8712_v13 }
 0x9cd   :  { %7153 = vmatprep.subr.bf16.mxu0 %v8269_v0 }
 0xa9a   :  { %v770_v17 = vpop.f32.mrb[4].mxu0 }
 0xa9b   :  { %v774_v19 = vadd.f32 %v770_v17, %v8732_v18  ;;  %v6693_v20 = vpop.f32.mrb[5].mxu0 }
 0xa9d   :  { %7401 = vtanh.f32 %v774_v19  ;;  %v6328_v22 = vmul.f32 -1.442695, %v774_v19 }
 0xa9f   :  { %7403 = vpow2.f32 %v6328_v22 }
 0xaa7   :  { %v7402_v21 = vpop.eup %7401 }
 0xaa8   :  { %784 = vrot.lane.b32.xlu1 %v7402_v21, %s8272_s19 }
 0xaa9   :  { %v7404_v23 = vpop.eup %7403 }
 0xaaa   :  { %v778_v24 = vadd.f32 1.0, %v7404_v23 }
 0xaac   :  { %7405 = vrcp.f32 %v778_v24 }
 0xab6   :  { %v7406_v25 = vpop.eup %7405 }
 0xab7   :  { %v782_v28 = vmul.f32 %v7406_v25, %v692_v6 }
 0xb1a   :  { %v785_v26 = vpop.permute.xlu1 %784 }
 0xb1b   :  { %v787_v27 = vmul.f32 %v7406_v25, %v785_v26 }
 0xb1d   :  { %789 = vrot.lane.b32.xlu0 %v787_v27, %s9675_s21 }
 0xb8f   :  { %v790_v29 = vpop.permute.xlu0 %789 }
 0xb90   :  { %v792_v30 = vadd.f32 %v790_v29, %v782_v28 }
 0xb92   :  { %7407 = vtanh.f32 %v792_v30 }
 0xb9c   :  { %v7408_v31 = vpop.eup %7407 }
 0xb9d   :  { %795 = vrot.lane.b32.xlu1 %v7408_v31, %s8272_s19 }
 0xc0f   :  { %v796_v32 = vpop.permute.xlu1 %795 }
 0xc10   :  { %v798_v33 = vmul.f32 %v7406_v25, %v796_v32 }
 0xc12   :  { %800 = vrot.lane.b32.xlu0 %v798_v33, %s9675_s21  ;;  %v1203_v34 = vrot.slane %v798_v33, 2 }
 0xc14   :  { %v8783_v35 = vsel %vm1216_vm4, %v1215_v15, %v1203_v34 }
 0xc84   :  { %v801_v36 = vpop.permute.xlu0 %800 }
 0xc85   :  { %6703 = vmatmul.mubr.msk.f32.vlgmr.msra.gmra.mrb[4].mxu1 %vm317_vm1, %v801_v36 }
 0xc86   :  { %7149 = vmatpush3.bf16.msra.mxu1 %v8708_v9  ;;  %6724 = vmatprep.mubr.msk.f32.mxu1 %vm8270_vm0, %v8271_v1 }
 0xc87   :  { %7150 = vmatprep.subr.bf16.mxu1 %v8269_v0 }
 0xc8a   :  { %7152 = vmatpush3.bf16.msra.mxu1 %v8712_v13 }
 0xd58   :  { %v870_v37 = vpop.f32.mrb[4].mxu1 }
 0xd59   :  { %v874_v38 = vadd.f32 %v870_v37, %v8732_v18  ;;  %v6704_v39 = vpop.f32.mrb[5].mxu1 }
 0xd5b   :  { %7409 = vtanh.f32 %v874_v38  ;;  %v6330_v41 = vmul.f32 -1.442695, %v874_v38 }
 0xd5d   :  { %7411 = vpow2.f32 %v6330_v41 }
 0xd65   :  { %v7410_v40 = vpop.eup %7409 }
 0xd66   :  { %884 = vrot.lane.b32.xlu1 %v7410_v40, %s8272_s19 }
 0xd67   :  { %v7412_v42 = vpop.eup %7411 }
 0xd68   :  { %v878_v43 = vadd.f32 1.0, %v7412_v42 }
 0xd6a   :  { %7413 = vrcp.f32 %v878_v43 }
 0xd74   :  { %v7414_v44 = vpop.eup %7413 }
 0xd75   :  { %v882_v47 = vmul.f32 %v7414_v44, %v792_v30 }
 0xdd8   :  { %v885_v45 = vpop.permute.xlu1 %884 }
 0xdd9   :  { %v887_v46 = vmul.f32 %v7414_v44, %v885_v45  ;;  %v1221_v45 = vld [vmem:[#allocation13] sm:$0xff] }
 0xddb   :  { %889 = vrot.lane.b32.xlu0 %v887_v46, %s9675_s21  ;;  %v1222_v46 = vld [vmem:[#allocation13 + $0x8] sm:$0xff] }
 0xe4d   :  { %v890_v48 = vpop.permute.xlu0 %889 }
 0xe4e   :  { %v892_v49 = vadd.f32 %v890_v48, %v882_v47  ;;  %v1321_v47 = vld [vmem:[#allocation14] sm:$0xff]  ;;  %v7159_v48 = vpack.c.bf16 %v1222_v46, %v1221_v45 }
 0xe50   :  { %7415 = vtanh.f32 %v892_v49  ;;  %7160 = vmatprep.subr.bf16.mxu1 %v7159_v48 }
 0xe5a   :  { %v7416_v50 = vpop.eup %7415 }
 0xe5b   :  { %895 = vrot.lane.b32.xlu1 %v7416_v50, %s8272_s19  ;;  %v1223_v50 = vld [vmem:[#allocation13 + $0x10] sm:$0xff] }
 0xecd   :  { %v896_v51 = vpop.permute.xlu1 %895 }
 0xece   :  { %v898_v52 = vmul.f32 %v7414_v44, %v896_v51  ;;  %v1224_v51 = vld [vmem:[#allocation13 + $0x18] sm:$0xff] }
 0xed0   :  { %900 = vrot.lane.b32.xlu0 %v898_v52, %s9675_s21 }
 0xf42   :  { %v901_v53 = vpop.permute.xlu0 %900 }
 0xf43   :  { %6714 = vmatmul.mubr.msk.f32.vlgmr.msra.gmra.mrb[6].mxu0 %vm317_vm1, %v901_v53  ;;  %v7163_v53 = vpack.c.bf16 %v1224_v51, %v1223_v50 }
 0xf44   :  { %7155 = vmatpush3.bf16.msra.mxu0 %v8708_v9  ;;  %6735 = vmatprep.mubr.msk.f32.mxu0 %vm8270_vm0, %v8271_v1 }
 0xf45   :  { %7156 = vmatprep.subr.bf16.mxu0 %v8269_v0 }
 0xf48   :  { %7158 = vmatpush3.bf16.msra.mxu0 %v8712_v13 }
 0xf49   :  { %7167 = vmatprep.subr.bf16.mxu0 %v8269_v0 }
0x1016   :  { %v970_v54 = vpop.f32.mrb[6].mxu0 }
0x1017   :  { %v974_v55 = vadd.f32 %v970_v54, %v8732_v18  ;;  %v6715_v56 = vpop.f32.mrb[7].mxu0  ;;  %v1323_v54 = vld [vmem:[#allocation14 + $0x10] sm:$0xff] }
0x1019   :  { %7417 = vtanh.f32 %v974_v55  ;;  %v6332_v58 = vmul.f32 -1.442695, %v974_v55  ;;  %v1324_v55 = vld [vmem:[#allocation14 + $0x18] sm:$0xff] }
0x101b   :  { %7419 = vpow2.f32 %v6332_v58 }
0x1023   :  { %v7418_v57 = vpop.eup %7417 }
0x1024   :  { %984 = vrot.lane.b32.xlu1 %v7418_v57, %s8272_s19  ;;  %v1318_v57 = vld [vmem:[#allocation5 + $0x2] sm:$0x3] }
0x1025   :  { %v7420_v9 = vpop.eup %7419 }
0x1026   :  { %v978_v59 = vadd.f32 1.0, %v7420_v9 }
0x1028   :  { %7421 = vrcp.f32 %v978_v59 }
0x1032   :  { %v7422_v60 = vpop.eup %7421 }
0x1033   :  { %v982_v13 = vmul.f32 %v7422_v60, %v892_v49  ;;  %v1322_v49 = vld [vmem:[#allocation14 + $0x8] sm:$0xff] }
0x1096   :  { %v985_v61 = vpop.permute.xlu1 %984 }
0x1097   :  { %v987_v62 = vmul.f32 %v7422_v60, %v985_v61  ;;  %v1320_v61 = vld [vmem:[#allocation7 + $0x2] sm:$0x3] }
0x1099   :  { %989 = vrot.lane.b32.xlu0 %v987_v62, %s9675_s21 }
0x110b   :  { %v990_v63 = vpop.permute.xlu0 %989 }
0x110c   :  { %v992_v2 = vadd.f32 %v990_v63, %v982_v13 }
0x110e   :  { %7423 = vtanh.f32 %v992_v2 }
0x1118   :  { %v7424_v3 = vpop.eup %7423 }
0x1119   :  { %995 = vrot.lane.b32.xlu1 %v7424_v3, %s8272_s19 }
0x118b   :  { %v996_v4 = vpop.permute.xlu1 %995 }
0x118c   :  { %v998_v5 = vmul.f32 %v7422_v60, %v996_v4 }
0x118e   :  { %1000 = vrot.lane.b32.xlu0 %v998_v5, %s9675_s21  ;;  %v1205_v24 = vrot.slane %v998_v5, 6 }
0x1190   :  { %v1218_v28 = vsel %vm1212_vm2, %v898_v52, %v1205_v24  ;;  %v8825_v52 = vpack.c.bf16 %v1322_v49, %v1321_v47 }
0x1200   :  { %v1001_v6 = vpop.permute.xlu0 %1000 }
0x1201   :  { %6725 = vmatmul.mubr.msk.f32.vlgmr.msra.gmra.mrb[6].mxu1 %vm317_vm1, %v1001_v6 }
0x1202   :  { %7162 = vmatpush3.bf16.msra.mxu1 %v7159_v48 }
0x1203   :  { %7164 = vmatprep.subr.bf16.mxu1 %v7163_v53 }
0x1206   :  { %7166 = vmatpush3.bf16.msra.mxu1 %v7163_v53 }
0x1207   :  { %7173 = vmatprep.subr.bf16.mxu1 %v8269_v0 }
0x12d4   :  { %v1070_v7 = vpop.f32.mrb[6].mxu1 }
0x12d5   :  { %v1074_v8 = vadd.f32 %v1070_v7, %v8732_v18  ;;  %v6726_v10 = vpop.f32.mrb[7].mxu1 }
0x12d7   :  { %7425 = vtanh.f32 %v1074_v8  ;;  %v6334_v12 = vmul.f32 -1.442695, %v1074_v8 }
0x12d9   :  { %7427 = vpow2.f32 %v6334_v12 }
0x12e1   :  { %v7426_v11 = vpop.eup %7425 }
0x12e2   :  { %1084 = vrot.lane.b32.xlu1 %v7426_v11, %s8272_s19 }
0x12e3   :  { %v7428_v14 = vpop.eup %7427 }
0x12e4   :  { %v1078_v15 = vadd.f32 1.0, %v7428_v14 }
0x12e6   :  { %7429 = vrcp.f32 %v1078_v15 }
0x12f0   :  { %v7430_v16 = vpop.eup %7429 }
0x12f1   :  { %v1082_v20 = vmul.f32 %v7430_v16, %v992_v2  ;;  %v6337_v2 = vld [vmem:[#allocation16] ss:$0 sm:$0xff] }
0x1354   :  { %v1085_v17 = vpop.permute.xlu1 %1084 }
0x1355   :  { %v1087_v19 = vmul.f32 %v7430_v16, %v1085_v17 }
0x1357   :  { %1089 = vrot.lane.b32.xlu0 %v1087_v19, %s9675_s21 }
0x13c9   :  { %v1090_v21 = vpop.permute.xlu0 %1089 }
0x13ca   :  { %v1092_v22 = vadd.f32 %v1090_v21, %v1082_v20 }
0x13cc   :  { %7431 = vtanh.f32 %v1092_v22 }
0x13d6   :  { %v7432_v23 = vpop.eup %7431 }
0x13d7   :  { %1095 = vrot.lane.b32.xlu1 %v7432_v23, %s8272_s19 }
0x1449   :  { %v1096_v25 = vpop.permute.xlu1 %1095 }
0x144a   :  { %v1098_v26 = vmul.f32 %v7430_v16, %v1096_v25 }
0x144c   :  { %1100 = vrot.lane.b32.xlu0 %v1098_v26, %s9675_s21  ;;  %v1207_v27 = vrot.slane %v1098_v26, 4 }
0x144e   :  { %v1219_v29 = vsel %vm1214_vm3, %v1218_v28, %v1207_v27 }
0x14be   :  { %v1101_v30 = vpop.permute.xlu0 %1100 }
0x14bf   :  { %6736 = vmatmul.mubr.msk.f32.vlgmr.msra.gmra.mrb[8].mxu0 %vm317_vm1, %v1101_v30 }
0x14c0   :  { %6757 = vmatprep.mubr.msk.f32.mxu0 %vm8270_vm0, %v8271_v1  ;;  %7169 = vmatpush3.bf16.msra.mxu0 %v8825_v52 }
0x14c1   :  { %7170 = vmatprep.subr.bf16.mxu0 %v8269_v0 }
0x1592   :  { %v1170_v31 = vpop.f32.mrb[8].mxu0 }
0x1593   :  { %v1174_v32 = vadd.f32 %v1170_v31, %v8732_v18  ;;  %v6737_v33 = vpop.f32.mrb[9].mxu0 }
0x1595   :  { %7433 = vtanh.f32 %v1174_v32  ;;  %v6336_v36 = vmul.f32 -1.442695, %v1174_v32 }
0x1597   :  { %7435 = vpow2.f32 %v6336_v36 }
0x159f   :  { %v7434_v34 = vpop.eup %7433 }
0x15a0   :  { %1184 = vrot.lane.b32.xlu1 %v7434_v34, %s8272_s19 }
0x15a1   :  { %v7436_v37 = vpop.eup %7435 }
0x15a2   :  { %v1178_v38 = vadd.f32 1.0, %v7436_v37 }
0x15a4   :  { %7437 = vrcp.f32 %v1178_v38 }
0x15ae   :  { %v7438_v39 = vpop.eup %7437 }
0x15af   :  { %v1182_v42 = vmul.f32 %v7438_v39, %v1092_v22 }
0x1612   :  { %v1185_v40 = vpop.permute.xlu1 %1184 }
0x1613   :  { %v1187_v41 = vmul.f32 %v7438_v39, %v1185_v40 }
0x1615   :  { %1189 = vrot.lane.b32.xlu0 %v1187_v41, %s9675_s21 }
0x1619   :  { %1234 = vrot.lane.b32.xlu0 %v8783_v35, %s9675_s21  ;;  %v8829_v35 = vpack.c.bf16 %v1324_v55, %v1323_v54 }
0x161b   :  { %7172 = vmatpush3.bf16.msra.mxu0 %v8829_v35 }
0x161c   :  { %7179 = vmatprep.subr.bf16.mxu0 %v8269_v0 }
0x161e   :  { %6758 = vmatmul.mubr.msk.f32.vlgmr.msra.gmra.mrb[10].mxu0 %vm317_vm1, %v1318_v57 }
0x161f   :  { %7181 = vmatpush3.bf16.msra.mxu0 %v8825_v52  ;;  %6779 = vmatprep.mubr.msk.f32.mxu0 %vm8270_vm0, %v8271_v1 }
0x1620   :  { %7182 = vmatprep.subr.bf16.mxu0 %v8269_v0 }
0x1623   :  { %7184 = vmatpush3.bf16.msra.mxu0 %v8829_v35 }
0x1624   :  { %7191 = vmatprep.subr.bf16.mxu0 %v8269_v0 }
0x1687   :  { %v1190_v18 = vpop.permute.xlu0 %1189 }
0x1688   :  { %v1192_v43 = vadd.f32 %v1190_v18, %v1182_v42 }
0x168a   :  { %7439 = vtanh.f32 %v1192_v43 }
0x168b   :  { %v1235_v44 = vpop.permute.xlu0 %1234 }
0x168c   :  { %6746 = vmatprep.mubr.msk.f32.mxu1 %vm317_vm1, %v1235_v44 }
0x1694   :  { %v7440_v56 = vpop.eup %7439 }
0x1695   :  { %1195 = vrot.lane.b32.xlu1 %v7440_v56, %s8272_s19 }
0x16f1   :  { %v1394_v13 = vpop.f32.mrb[10].mxu0 }
0x16f2   :  { %v6759_v63 = vpop.f32.mrb[11].mxu0 }
0x1707   :  { %v1196_v58 = vpop.permute.xlu1 %1195 }
0x1708   :  { %v1198_v9 = vmul.f32 %v7438_v39, %v1196_v58 }
0x170a   :  { %v1210_v59 = vrot.slane %v1198_v9, 2 }
0x170c   :  { %v1220_v60 = vsel %vm1216_vm4, %v1219_v29, %v1210_v59 }
0x170d   :  { %1236 = vrot.lane.b32.xlu1 %v1220_v60, %s9675_s21 }
0x1711   :  { %1407 = vrot.lane.b32.xlu1 %v1320_v61, %s9675_s21 }
0x177f   :  { %v1237_v62 = vpop.permute.xlu1 %1236 }
0x1780   :  { %6747 = vmatmul.mubr.msk.f32.vlgmr.msra.gmra.mrb[8].mxu1 %vm317_vm1, %v1237_v62 }
0x1781   :  { %7175 = vmatpush3.bf16.msra.mxu1 %v8825_v52  ;;  %6768 = vmatprep.mubr.msk.f32.mxu1 %vm8270_vm0, %v8271_v1 }
0x1782   :  { %7176 = vmatprep.subr.bf16.mxu1 %v8269_v0 }
0x1783   :  { %v1408_v17 = vpop.permute.xlu1 %1407 }
0x1785   :  { %7178 = vmatpush3.bf16.msra.mxu1 %v8829_v35 }
0x1786   :  { %7185 = vmatprep.subr.bf16.mxu1 %v8269_v0 }
0x1853   :  { %v6748_v3 = vpop.f32.mrb[8].mxu1 }
0x1854   :  { %v8852_v4 = vadd.f32 %v6748_v3, %v6337_v2  ;;  %v1308_v5 = vpop.f32.mrb[9].mxu1 }
0x1855   :  { %v8854_v6 = vadd.f32 %v6337_v2, %v1308_v5 }
0x1857   :  { %v1398_v7 = vadd.f32 %v1394_v13, %v8854_v6 }
0x1859   :  { %7441 = vtanh.f32 %v1398_v7  ;;  %v6341_v10 = vmul.f32 -1.442695, %v1398_v7 }
0x185b   :  { %7443 = vpow2.f32 %v6341_v10 }
0x1863   :  { %v7442_v8 = vpop.eup %7441 }
0x1864   :  { %1412 = vrot.lane.b32.xlu0 %v7442_v8, %s8272_s19 }
0x1865   :  { %v7444_v11 = vpop.eup %7443 }
0x1866   :  { %v1402_v12 = vadd.f32 1.0, %v7444_v11 }
0x1868   :  { %7445 = vrcp.f32 %v1402_v12 }
0x1872   :  { %v7446_v14 = vpop.eup %7445 }
0x1873   :  { %v1410_v19 = vmul.f32 %v7446_v14, %v1408_v17 }
0x18d6   :  { %v1413_v15 = vpop.permute.xlu0 %1412 }
0x18d7   :  { %v1415_v16 = vmul.f32 %v7446_v14, %v1413_v15 }
0x18d9   :  { %1417 = vrot.lane.b32.xlu0 %v1415_v16, %s9675_s21 }
0x194b   :  { %v1418_v20 = vpop.permute.xlu0 %1417 }
0x194c   :  { %v1420_v21 = vadd.f32 %v1418_v20, %v1410_v19 }
0x194e   :  { %7447 = vtanh.f32 %v1420_v21  ;;  %v1514_v38 = vrot.slane %v1420_v21, 6 }
0x1958   :  { %v7448_v22 = vpop.eup %7447 }
0x1959   :  { %1423 = vrot.lane.b32.xlu1 %v7448_v22, %s8272_s19 }
0x19cb   :  { %v1424_v23 = vpop.permute.xlu1 %1423 }
0x19cc   :  { %v8860_v24 = vmul.f32 %v7446_v14, %v1424_v23 }
0x19ce   :  { %1428 = vrot.lane.b32.xlu0 %v8860_v24, %s9675_s21 }
0x1a40   :  { %v1429_v25 = vpop.permute.xlu0 %1428 }
0x1a41   :  { %6769 = vmatmul.mubr.msk.f32.vlgmr.msra.gmra.mrb[10].mxu1 %vm317_vm1, %v1429_v25 }
0x1a42   :  { %7187 = vmatpush3.bf16.msra.mxu1 %v8825_v52  ;;  %6790 = vmatprep.mubr.msk.f32.mxu1 %vm8270_vm0, %v8271_v1 }
0x1a43   :  { %7188 = vmatprep.subr.bf16.mxu1 %v8269_v0 }
0x1a46   :  { %7190 = vmatpush3.bf16.msra.mxu1 %v8829_v35 }
0x1a47   :  { %7197 = vmatprep.subr.bf16.mxu1 %v8269_v0 }
0x1b14   :  { %v1498_v26 = vpop.f32.mrb[10].mxu1 }
0x1b15   :  { %v1503_v27 = vrot.slane %v1498_v26, 6  ;;  %v6770_v28 = vpop.f32.mrb[11].mxu1 }
0x1b17   :  { %v1505_v29 = vadd.f32 %v1503_v27, %v8854_v6 }
0x1b19   :  { %7449 = vtanh.f32 %v1505_v29  ;;  %v6343_v31 = vmul.f32 -1.442695, %v1505_v29 }
0x1b1b   :  { %7451 = vpow2.f32 %v6343_v31 }
0x1b23   :  { %v7450_v30 = vpop.eup %7449 }
0x1b24   :  { %1518 = vrot.lane.b32.xlu1 %v7450_v30, %s8272_s19 }
0x1b25   :  { %v7452_v32 = vpop.eup %7451 }
0x1b26   :  { %v1509_v33 = vadd.f32 1.0, %v7452_v32 }
0x1b28   :  { %7453 = vrcp.f32 %v1509_v33 }
0x1b32   :  { %v7454_v34 = vpop.eup %7453 }
0x1b33   :  { %v1516_v39 = vmul.f32 %v7454_v34, %v1514_v38 }
0x1b96   :  { %v1519_v36 = vpop.permute.xlu1 %1518 }
0x1b97   :  { %v1521_v37 = vmul.f32 %v7454_v34, %v1519_v36 }
0x1b99   :  { %1523 = vrot.lane.b32.xlu0 %v1521_v37, %s9675_s21 }
0x1c0b   :  { %v1524_v40 = vpop.permute.xlu0 %1523 }
0x1c0c   :  { %v1526_v41 = vadd.f32 %v1524_v40, %v1516_v39 }
0x1c0e   :  { %7455 = vtanh.f32 %v1526_v41  ;;  %v1621_v58 = vrot.slane %v1526_v41, 6 }
0x1c18   :  { %v7456_v42 = vpop.eup %7455 }
0x1c19   :  { %1529 = vrot.lane.b32.xlu1 %v7456_v42, %s8272_s19 }
0x1c8b   :  { %v1530_v18 = vpop.permute.xlu1 %1529 }
0x1c8c   :  { %v1532_v43 = vmul.f32 %v7454_v34, %v1530_v18 }
0x1c8e   :  { %v1534_v44 = vrot.slane %v1532_v43, 2  ;;  %v2171_v63 = vsel %vm1212_vm2, %v8860_v24, %v1532_v43 }
0x1c90   :  { %1535 = vrot.lane.b32.xlu0 %v1534_v44, %s9675_s21 }
0x1d02   :  { %v1536_v45 = vpop.permute.xlu0 %1535 }
0x1d03   :  { %6780 = vmatmul.mubr.msk.f32.vlgmr.msra.gmra.mrb[12].mxu0 %vm317_vm1, %v1536_v45 }
0x1d04   :  { %7193 = vmatpush3.bf16.msra.mxu0 %v8825_v52  ;;  %6801 = vmatprep.mubr.msk.f32.mxu0 %vm8270_vm0, %v8271_v1 }
0x1d05   :  { %7194 = vmatprep.subr.bf16.mxu0 %v8269_v0 }
0x1d08   :  { %7196 = vmatpush3.bf16.msra.mxu0 %v8829_v35 }
0x1d09   :  { %7203 = vmatprep.subr.bf16.mxu0 %v8269_v0 }
0x1dd6   :  { %v1605_v46 = vpop.f32.mrb[12].mxu0 }
0x1dd7   :  { %v1610_v47 = vrot.slane %v1605_v46, 4  ;;  %v6781_v48 = vpop.f32.mrb[13].mxu0 }
0x1dd9   :  { %v1612_v49 = vadd.f32 %v1610_v47, %v8854_v6 }
0x1ddb   :  { %7457 = vtanh.f32 %v1612_v49  ;;  %v6345_v51 = vmul.f32 -1.442695, %v1612_v49 }
0x1ddd   :  { %7459 = vpow2.f32 %v6345_v51 }
0x1de5   :  { %v7458_v50 = vpop.eup %7457 }
0x1de6   :  { %1625 = vrot.lane.b32.xlu1 %v7458_v50, %s8272_s19 }
0x1de7   :  { %v7460_v53 = vpop.eup %7459 }
0x1de8   :  { %v1616_v54 = vadd.f32 1.0, %v7460_v53 }
0x1dea   :  { %7461 = vrcp.f32 %v1616_v54 }
0x1df4   :  { %v7462_v55 = vpop.eup %7461 }
0x1df5   :  { %v1623_v9 = vmul.f32 %v7462_v55, %v1621_v58 }
0x1e58   :  { %v1626_v56 = vpop.permute.xlu1 %1625 }
0x1e59   :  { %v1628_v57 = vmul.f32 %v7462_v55, %v1626_v56 }
0x1e5b   :  { %1630 = vrot.lane.b32.xlu0 %v1628_v57, %s9675_s21 }
0x1ecd   :  { %v1631_v59 = vpop.permute.xlu0 %1630 }
0x1ece   :  { %v1633_v60 = vadd.f32 %v1631_v59, %v1623_v9 }
0x1ed0   :  { %7463 = vtanh.f32 %v1633_v60  ;;  %v1728_v21 = vrot.slane %v1633_v60, 6 }
0x1eda   :  { %v7464_v61 = vpop.eup %7463 }
0x1edb   :  { %1636 = vrot.lane.b32.xlu1 %v7464_v61, %s8272_s19 }
0x1f4d   :  { %v1637_v62 = vpop.permute.xlu1 %1636 }
0x1f4e   :  { %v1639_v13 = vmul.f32 %v7462_v55, %v1637_v62 }
0x1f50   :  { %v1641_v2 = vrot.slane %v1639_v13, 4  ;;  %v2172_v3 = vsel %vm1214_vm3, %v2171_v63, %v1639_v13 }
0x1f52   :  { %1642 = vrot.lane.b32.xlu0 %v1641_v2, %s9675_s21 }
0x1fc4   :  { %v1643_v5 = vpop.permute.xlu0 %1642 }
0x1fc5   :  { %6791 = vmatmul.mubr.msk.f32.vlgmr.msra.gmra.mrb[12].mxu1 %vm317_vm1, %v1643_v5 }
0x1fc6   :  { %7199 = vmatpush3.bf16.msra.mxu1 %v8825_v52  ;;  %6812 = vmatprep.mubr.msk.f32.mxu1 %vm8270_vm0, %v8271_v1 }
0x1fc7   :  { %7200 = vmatprep.subr.bf16.mxu1 %v8269_v0 }
0x1fca   :  { %7202 = vmatpush3.bf16.msra.mxu1 %v8829_v35 }
0x1fcb   :  { %7209 = vmatprep.subr.bf16.mxu1 %v8269_v0 }
0x2098   :  { %v1712_v7 = vpop.f32.mrb[12].mxu1 }
0x2099   :  { %v1717_v8 = vrot.slane %v1712_v7, 2  ;;  %v6792_v10 = vpop.f32.mrb[13].mxu1 }
0x209b   :  { %v1719_v11 = vadd.f32 %v1717_v8, %v8854_v6 }
0x209d   :  { %7465 = vtanh.f32 %v1719_v11  ;;  %v6347_v14 = vmul.f32 -1.442695, %v1719_v11 }
0x209f   :  { %7467 = vpow2.f32 %v6347_v14 }
0x20a7   :  { %v7466_v12 = vpop.eup %7465 }
0x20a8   :  { %1732 = vrot.lane.b32.xlu1 %v7466_v12, %s8272_s19 }
0x20a9   :  { %v7468_v15 = vpop.eup %7467 }
0x20aa   :  { %v1723_v16 = vadd.f32 1.0, %v7468_v15 }
0x20ac   :  { %7469 = vrcp.f32 %v1723_v16 }
0x20b6   :  { %v7470_v17 = vpop.eup %7469 }
0x20b7   :  { %v1730_v22 = vmul.f32 %v7470_v17, %v1728_v21 }
0x211a   :  { %v1733_v19 = vpop.permute.xlu1 %1732 }
0x211b   :  { %v1735_v20 = vmul.f32 %v7470_v17, %v1733_v19 }
0x211d   :  { %1737 = vrot.lane.b32.xlu0 %v1735_v20, %s9675_s21 }
0x218f   :  { %v1738_v23 = vpop.permute.xlu0 %1737 }
0x2190   :  { %v1740_v24 = vadd.f32 %v1738_v23, %v1730_v22 }
0x2192   :  { %7471 = vtanh.f32 %v1740_v24  ;;  %v1832_v41 = vrot.slane %v1740_v24, 6 }
0x219c   :  { %v7472_v6 = vpop.eup %7471 }
0x219d   :  { %1743 = vrot.lane.b32.xlu1 %v7472_v6, %s8272_s19 }
0x220f   :  { %v1744_v25 = vpop.permute.xlu1 %1743 }
0x2210   :  { %v1746_v26 = vmul.f32 %v7470_v17, %v1744_v25 }
0x2212   :  { %v1748_v27 = vrot.slane %v1746_v26, 6  ;;  %v8903_v28 = vsel %vm1216_vm4, %v2172_v3, %v1746_v26 }
0x2214   :  { %1749 = vrot.lane.b32.xlu0 %v1748_v27, %s9675_s21 }
0x2286   :  { %v1750_v29 = vpop.permute.xlu0 %1749 }
0x2287   :  { %6802 = vmatmul.mubr.msk.f32.vlgmr.msra.gmra.mrb[14].mxu0 %vm317_vm1, %v1750_v29 }
0x2288   :  { %7205 = vmatpush3.bf16.msra.mxu0 %v8825_v52  ;;  %6823 = vmatprep.mubr.msk.f32.mxu0 %vm8270_vm0, %v8271_v1 }
0x2289   :  { %7206 = vmatprep.subr.bf16.mxu0 %v8269_v0 }
0x228c   :  { %7208 = vmatpush3.bf16.msra.mxu0 %v8829_v35 }
0x235a   :  { %v1819_v30 = vpop.f32.mrb[14].mxu0 }
0x235b   :  { %v1823_v31 = vadd.f32 %v1819_v30, %v8852_v4  ;;  %v6803_v32 = vpop.f32.mrb[15].mxu0 }
0x235d   :  { %7473 = vtanh.f32 %v1823_v31  ;;  %v6349_v34 = vmul.f32 -1.442695, %v1823_v31 }
0x235f   :  { %7475 = vpow2.f32 %v6349_v34 }
0x2367   :  { %v7474_v33 = vpop.eup %7473 }
0x2368   :  { %1836 = vrot.lane.b32.xlu1 %v7474_v33, %s8272_s19 }
0x2369   :  { %v7476_v36 = vpop.eup %7475 }
0x236a   :  { %v1827_v37 = vadd.f32 1.0, %v7476_v36 }
0x236c   :  { %7477 = vrcp.f32 %v1827_v37 }
0x2376   :  { %v7478_v38 = vpop.eup %7477 }
0x2377   :  { %v1834_v42 = vmul.f32 %v7478_v38, %v1832_v41 }
0x23da   :  { %v1837_v39 = vpop.permute.xlu1 %1836 }
0x23db   :  { %v1839_v40 = vmul.f32 %v7478_v38, %v1837_v39 }
0x23dd   :  { %1841 = vrot.lane.b32.xlu0 %v1839_v40, %s9675_s21 }
0x244f   :  { %v1842_v18 = vpop.permute.xlu0 %1841 }
0x2450   :  { %v1844_v43 = vadd.f32 %v1842_v18, %v1834_v42 }
0x2452   :  { %7479 = vtanh.f32 %v1844_v43 }
0x245c   :  { %v7480_v44 = vpop.eup %7479 }
0x245d   :  { %1847 = vrot.lane.b32.xlu1 %v7480_v44, %s8272_s19 }
0x24cf   :  { %v1848_v45 = vpop.permute.xlu1 %1847 }
0x24d0   :  { %v8916_v46 = vmul.f32 %v7478_v38, %v1848_v45  ;;  %v2177_v45 = vld [vmem:[%s9628_s9] sm:$0xff] }
0x24d2   :  { %1852 = vrot.lane.b32.xlu0 %v8916_v46, %s9675_s21 }
0x2544   :  { %v1853_v47 = vpop.permute.xlu0 %1852 }
0x2545   :  { %6813 = vmatmul.mubr.msk.f32.vlgmr.msra.gmra.mrb[14].mxu1 %vm317_vm1, %v1853_v47  ;;  %v2273_v47 = vld [vmem:[#allocation20] sm:$0xff] }
0x2546   :  { %7211 = vmatpush3.bf16.msra.mxu1 %v8825_v52  ;;  %6834 = vmatprep.mubr.msk.f32.mxu1 %vm8270_vm0, %v8271_v1 }
0x2547   :  { %7212 = vmatprep.subr.bf16.mxu1 %v8269_v0 }
0x254a   :  { %7214 = vmatpush3.bf16.msra.mxu1 %v8829_v35  ;;  %v1938_v35 = vrot.slane %v1844_v43, 6 }
0x2618   :  { %v1922_v48 = vpop.f32.mrb[14].mxu1 }
0x2619   :  { %v1927_v49 = vrot.slane %v1922_v48, 6  ;;  %v6814_v50 = vpop.f32.mrb[15].mxu1  ;;  %v2274_v48 = vld [vmem:[#allocation20 + $0x8] sm:$0xff] }
0x261a   :  { %v2180_v50 = vld [vmem:[%s9628_s9 + $0x18] sm:$0xff] }
0x261b   :  { %v1929_v51 = vadd.f32 %v1927_v49, %v8852_v4  ;;  %v2179_v49 = vld [vmem:[%s9628_s9 + $0x10] sm:$0xff] }
0x261d   :  { %7481 = vtanh.f32 %v1929_v51  ;;  %v6351_v54 = vmul.f32 -1.442695, %v1929_v51  ;;  %v7223_v51 = vpack.c.bf16 %v2274_v48, %v2273_v47 }
0x261f   :  { %7483 = vpow2.f32 %v6351_v54  ;;  %v2275_v54 = vld [vmem:[#allocation20 + $0x10] sm:$0xff]  ;;  %7224 = vmatprep.subr.bf16.mxu1 %v7223_v51 }
0x2627   :  { %v7482_v53 = vpop.eup %7481 }
0x2628   :  { %1942 = vrot.lane.b32.xlu1 %v7482_v53, %s8272_s19  ;;  %v7219_v53 = vpack.c.bf16 %v2180_v50, %v2179_v49 }
0x2629   :  { %v7484_v55 = vpop.eup %7483 }
0x262a   :  { %v1933_v52 = vadd.f32 1.0, %v7484_v55  ;;  %v2276_v55 = vld [vmem:[#allocation20 + $0x18] sm:$0xff] }
0x262c   :  { %7485 = vrcp.f32 %v1933_v52  ;;  %v7227_v52 = vpack.c.bf16 %v2276_v55, %v2275_v54 }
0x2636   :  { %v7486_v56 = vpop.eup %7485 }
0x2637   :  { %v1940_v9 = vmul.f32 %v7486_v56, %v1938_v35 }
0x269a   :  { %v1943_v57 = vpop.permute.xlu1 %1942 }
0x269b   :  { %v1945_v58 = vmul.f32 %v7486_v56, %v1943_v57 }
0x269d   :  { %1947 = vrot.lane.b32.xlu0 %v1945_v58, %s9675_s21 }
0x270f   :  { %v1948_v59 = vpop.permute.xlu0 %1947 }
0x2710   :  { %v1950_v60 = vadd.f32 %v1948_v59, %v1940_v9  ;;  %v2359_v9 = vld [vmem:[#allocation17] sm:$0xff]  ;;  %v2360_v59 = vld [vmem:[#allocation17 + $0x8] sm:$0xff] }
0x2712   :  { %7487 = vtanh.f32 %v1950_v60  ;;  %v2045_v19 = vrot.slane %v1950_v60, 6  ;;  %v8965_v60 = vpack.c.bf16 %v2360_v59, %v2359_v9 }
0x271c   :  { %v7488_v61 = vpop.eup %7487 }
0x271d   :  { %1953 = vrot.lane.b32.xlu1 %v7488_v61, %s8272_s19 }
0x278f   :  { %v1954_v62 = vpop.permute.xlu1 %1953 }
0x2790   :  { %v1956_v13 = vmul.f32 %v7486_v56, %v1954_v62  ;;  %v6356_v62 = vld [vmem:[#allocation19] ss:$0 sm:$0xff] }
0x2792   :  { %v1958_v63 = vrot.slane %v1956_v13, 2  ;;  %v2174_v25 = vsel %vm1212_vm2, %v8916_v46, %v1956_v13  ;;  %v2178_v46 = vld [vmem:[%s9628_s9 + $0x8] sm:$0xff]  ;;  %v8982_v13 = vld [vmem:[#allocation23] ss:$0 sm:$0xff]  ;;  %s8273_s9 = smov 96  }
0x2794   :  { %1959 = vrot.lane.b32.xlu0 %v1958_v63, %s9675_s21 }
0x2806   :  { %v1960_v2 = vpop.permute.xlu0 %1959 }
0x2807   :  { %6824 = vmatmul.mubr.msk.f32.vlgmr.msra.gmra.mrb[16].mxu0 %vm317_vm1, %v1960_v2 }
0x28da   :  { %v2029_v3 = vpop.f32.mrb[16].mxu0 }
0x28db   :  { %v2034_v5 = vrot.slane %v2029_v3, 4  ;;  %v6825_v7 = vpop.f32.mrb[17].mxu0 }
0x28dd   :  { %v2036_v8 = vadd.f32 %v2034_v5, %v8852_v4 }
0x28df   :  { %7489 = vtanh.f32 %v2036_v8  ;;  %v6353_v11 = vmul.f32 -1.442695, %v2036_v8 }
0x28e1   :  { %7491 = vpow2.f32 %v6353_v11 }
0x28e9   :  { %v7490_v10 = vpop.eup %7489 }
0x28ea   :  { %2049 = vrot.lane.b32.xlu1 %v7490_v10, %s8272_s19 }
0x28eb   :  { %v7492_v12 = vpop.eup %7491 }
0x28ec   :  { %v2040_v14 = vadd.f32 1.0, %v7492_v12 }
0x28ee   :  { %7493 = vrcp.f32 %v2040_v14 }
0x28f8   :  { %v7494_v15 = vpop.eup %7493 }
0x28f9   :  { %v2047_v20 = vmul.f32 %v7494_v15, %v2045_v19 }
0x295c   :  { %v2050_v16 = vpop.permute.xlu1 %2049 }
0x295d   :  { %v2052_v17 = vmul.f32 %v7494_v15, %v2050_v16 }
0x295f   :  { %2054 = vrot.lane.b32.xlu0 %v2052_v17, %s9675_s21 }
0x29d1   :  { %v2055_v21 = vpop.permute.xlu0 %2054 }
0x29d2   :  { %v2057_v22 = vadd.f32 %v2055_v21, %v2047_v20 }
0x29d4   :  { %7495 = vtanh.f32 %v2057_v22  ;;  %v2152_v42 = vrot.slane %v2057_v22, 6 }
0x29de   :  { %v7496_v23 = vpop.eup %7495 }
0x29df   :  { %2060 = vrot.lane.b32.xlu1 %v7496_v23, %s8272_s19 }
0x2a51   :  { %v2061_v24 = vpop.permute.xlu1 %2060 }
0x2a52   :  { %v2063_v6 = vmul.f32 %v7494_v15, %v2061_v24 }
0x2a54   :  { %v2065_v26 = vrot.slane %v2063_v6, 4  ;;  %v2175_v27 = vsel %vm1214_vm3, %v2174_v25, %v2063_v6 }
0x2a56   :  { %2066 = vrot.lane.b32.xlu0 %v2065_v26, %s9675_s21 }
0x2ac8   :  { %v2067_v29 = vpop.permute.xlu0 %2066 }
0x2ac9   :  { %6835 = vmatmul.mubr.msk.f32.vlgmr.msra.gmra.mrb[16].mxu1 %vm317_vm1, %v2067_v29 }
0x2aca   :  { %7226 = vmatpush3.bf16.msra.mxu1 %v7223_v51 }
0x2acb   :  { %7228 = vmatprep.subr.bf16.mxu1 %v7227_v52 }
0x2ace   :  { %7230 = vmatpush3.bf16.msra.mxu1 %v7227_v52 }
0x2acf   :  { %7234 = vmatprep.subr.bf16.mxu1 %v8269_v0 }
0x2b9c   :  { %v2136_v30 = vpop.f32.mrb[16].mxu1 }
0x2b9d   :  { %v2141_v31 = vrot.slane %v2136_v30, 2  ;;  %v6836_v32 = vpop.f32.mrb[17].mxu1 }
0x2b9f   :  { %v2143_v33 = vadd.f32 %v2141_v31, %v8852_v4 }
0x2ba1   :  { %7497 = vtanh.f32 %v2143_v33  ;;  %v6355_v36 = vmul.f32 -1.442695, %v2143_v33 }
0x2ba3   :  { %7499 = vpow2.f32 %v6355_v36 }
0x2bab   :  { %v7498_v34 = vpop.eup %7497 }
0x2bac   :  { %2156 = vrot.lane.b32.xlu1 %v7498_v34, %s8272_s19 }
0x2bad   :  { %v7500_v37 = vpop.eup %7499 }
0x2bae   :  { %v2147_v38 = vadd.f32 1.0, %v7500_v37 }
0x2bb0   :  { %7501 = vrcp.f32 %v2147_v38 }
0x2bba   :  { %v7502_v39 = vpop.eup %7501 }
0x2bbb   :  { %v2154_v18 = vmul.f32 %v7502_v39, %v2152_v42 }
0x2c1e   :  { %v2157_v40 = vpop.permute.xlu1 %2156 }
0x2c1f   :  { %v2159_v41 = vmul.f32 %v7502_v39, %v2157_v40 }
0x2c21   :  { %2161 = vrot.lane.b32.xlu0 %v2159_v41, %s9675_s21 }
0x2c25   :  { %2190 = vrot.lane.b32.xlu0 %v8903_v28, %s9675_s21  ;;  %v7215_v28 = vpack.c.bf16 %v2178_v46, %v2177_v45 }
0x2c27   :  { %7216 = vmatprep.subr.bf16.mxu0 %v7215_v28 }
0x2c28   :  { %7218 = vmatpush3.bf16.msra.mxu0 %v7215_v28 }
0x2c29   :  { %7220 = vmatprep.subr.bf16.mxu0 %v7219_v53 }
0x2c2c   :  { %7222 = vmatpush3.bf16.msra.mxu0 %v7219_v53 }
0x2c2d   :  { %7231 = vmatprep.subr.bf16.mxu0 %v8269_v0 }
0x2c93   :  { %v2162_v4 = vpop.permute.xlu0 %2161 }
0x2c94   :  { %v2164_v43 = vadd.f32 %v2162_v4, %v2154_v18 }
0x2c96   :  { %7503 = vtanh.f32 %v2164_v43 }
0x2c97   :  { %v2191_v44 = vpop.permute.xlu0 %2190 }
0x2c98   :  { %6845 = vmatprep.mubr.msk.f32.mxu0 %vm317_vm1, %v2191_v44  ;;  %6856 = vmatprep.mubr.msk.f32.mxu1 %vm317_vm1, %v2191_v44 }
0x2ca0   :  { %v7504_v56 = vpop.eup %7503 }
0x2ca1   :  { %2167 = vrot.lane.b32.xlu1 %v7504_v56, %s8272_s19 }
0x2d13   :  { %v2168_v57 = vpop.permute.xlu1 %2167 }
0x2d14   :  { %v2170_v58 = vmul.f32 %v7502_v39, %v2168_v57 }
0x2d16   :  { %v2176_v35 = vsel %vm1216_vm4, %v2175_v27, %v2170_v58 }
0x2d17   :  { %2192 = vrot.lane.b32.xlu1 %v2176_v35, %s9675_s21 }
0x2d89   :  { %v2193_v61 = vpop.permute.xlu1 %2192 }
0x2d8a   :  { %6846 = vmatmul.mubr.msk.f32.vlgmr.msra.gmra.mrb[18].mxu0 %vm317_vm1, %v2193_v61  ;;  %6857 = vmatmul.mubr.msk.f32.vlgmr.msra.gmra.mrb[18].mxu1 %vm317_vm1, %v2193_v61 }
0x2d8b   :  { %7233 = vmatpush3.bf16.msra.mxu0 %v8965_v60  ;;  %6863 = vmatprep.mubr.msk.f32.mxu0 %vm8270_vm0, %v8271_v1 }
0x2d8c   :  { %7236 = vmatpush3.bf16.msra.mxu1 %v8965_v60  ;;  %6870 = vmatprep.mubr.msk.f32.mxu1 %vm8270_vm0, %v8271_v1 }
0x2d8d   :  { %7237 = vmatprep.subr.bf16.mxu0 %v8269_v0  ;;  %7240 = vmatprep.subr.bf16.mxu1 %v8269_v0 }
0x2d8e   :  { %6864 = vmatmul.mubr.f32.vlgmr.msra.gmra.mrb[20].mxu0 %v8271_v1 }
0x2d8f   :  { %7239 = vmatpush3.bf16.msra.mxu0 %v8965_v60  ;;  %6877 = vmatprep.mubr.msk.f32.mxu0 %vm8270_vm0, %v8271_v1 }
0x2d90   :  { %7243 = vmatprep.subr.bf16.mxu0 %v8269_v0 }
0x2e5d   :  { %v6847_v63 = vpop.f32.mrb[18].mxu0  ;;  %v8984_v2 = vpop.f32.mrb[18].mxu1 }
0x2e5e   :  { %v8986_v3 = vadd.f32 %v6847_v63, %v6356_v62  ;;  %v2264_v5 = vpop.f32.mrb[19].mxu0  ;;  %v2350_v7 = vpop.f32.mrb[19].mxu1 }
0x2e5f   :  { %v8988_v8 = vadd.f32 %v6356_v62, %v2264_v5  ;;  %v8991_v10 = vadd.f32 %v8982_v13, %v2350_v7 }
0x2e61   :  { %v2431_v11 = vpop.f32.mrb[20].mxu0 }
0x2e62   :  { %v2435_v12 = vadd.f32 %v2431_v11, %v8988_v8  ;;  %v6865_v14 = vpop.f32.mrb[21].mxu0 }
0x2e64   :  { %7505 = vtanh.f32 %v2435_v12  ;;  %v6362_v16 = vmul.f32 -1.442695, %v2435_v12 }
0x2e66   :  { %7507 = vpow2.f32 %v6362_v16 }
0x2e6e   :  { %v7506_v15 = vpop.eup %7505 }
0x2e6f   :  { %2445 = vrot.lane.b32.xlu0 %v7506_v15, %s8273_s9 }
0x2e70   :  { %v7508_v17 = vpop.eup %7507 }
0x2e71   :  { %v2439_v19 = vadd.f32 1.0, %v7508_v17 }
0x2e73   :  { %7509 = vrcp.f32 %v2439_v19 }
0x2e7d   :  { %v7510_v20 = vpop.eup %7509 }
0x2e7e   :  { %v2443_v23 = vmul.f32 0.0, %v7510_v20 }
0x2ee1   :  { %v2446_v21 = vpop.permute.xlu0 %2445 }
0x2ee2   :  { %v2448_v22 = vmul.f32 %v7510_v20, %v2446_v21 }
0x2ee4   :  { %2450 = vrot.lane.b32.xlu1 %v2448_v22, %s8274_s3 }
0x2f56   :  { %v2451_v24 = vpop.permute.xlu1 %2450 }
0x2f57   :  { %v2453_v6 = vadd.f32 %v2451_v24, %v2443_v23 }
0x2f59   :  { %7511 = vtanh.f32 %v2453_v6  ;;  %v2547_v42 = vrot.slane %v2453_v6, 6 }
0x2f63   :  { %v7512_v25 = vpop.eup %7511 }
0x2f64   :  { %2456 = vrot.lane.b32.xlu0 %v7512_v25, %s9675_s21 }
0x2fd6   :  { %v2457_v26 = vpop.permute.xlu0 %2456 }
0x2fd7   :  { %v2459_v27 = vmul.f32 %v7510_v20, %v2457_v26 }
0x2fd9   :  { %2461 = vrot.lane.b32.xlu1 %v2459_v27, %s8275_s25 }
0x304b   :  { %v8998_v29 = vpop.permute.xlu1 %2461 }
0x304c   :  { %6871 = vmatmul.mubr.msk.f32.vlgmr.msra.gmra.mrb[20].mxu1 %vm2361_vm5, %v8998_v29 }
0x304d   :  { %7242 = vmatpush3.bf16.msra.mxu1 %v8965_v60  ;;  %6884 = vmatprep.mubr.msk.f32.mxu1 %vm8270_vm0, %v8271_v1 }
0x304e   :  { %7246 = vmatprep.subr.bf16.mxu1 %v8269_v0 }
0x311f   :  { %v2531_v30 = vpop.f32.mrb[20].mxu1 }
0x3120   :  { %v2536_v31 = vrot.slane %v2531_v30, 6  ;;  %v6872_v32 = vpop.f32.mrb[21].mxu1 }
0x3122   :  { %v2538_v33 = vadd.f32 %v2536_v31, %v8988_v8 }
0x3124   :  { %7513 = vtanh.f32 %v2538_v33  ;;  %v6364_v36 = vmul.f32 -1.442695, %v2538_v33 }
0x3126   :  { %7515 = vpow2.f32 %v6364_v36 }
0x312e   :  { %v7514_v34 = vpop.eup %7513 }
0x312f   :  { %2551 = vrot.lane.b32.xlu0 %v7514_v34, %s8273_s9 }
0x3130   :  { %v7516_v37 = vpop.eup %7515 }
0x3131   :  { %v2542_v38 = vadd.f32 1.0, %v7516_v37 }
0x3133   :  { %7517 = vrcp.f32 %v2542_v38 }
0x313d   :  { %v7518_v39 = vpop.eup %7517 }
0x313e   :  { %v2549_v18 = vmul.f32 %v7518_v39, %v2547_v42 }
0x31a1   :  { %v2552_v40 = vpop.permute.xlu0 %2551 }
0x31a2   :  { %v2554_v41 = vmul.f32 %v7518_v39, %v2552_v40 }
0x31a4   :  { %2556 = vrot.lane.b32.xlu1 %v2554_v41, %s8274_s3 }
0x3216   :  { %v2557_v4 = vpop.permute.xlu1 %2556 }
0x3217   :  { %v2559_v43 = vadd.f32 %v2557_v4, %v2549_v18 }
0x3219   :  { %7519 = vtanh.f32 %v2559_v43  ;;  %v2654_v35 = vrot.slane %v2559_v43, 6 }
0x3223   :  { %v7520_v44 = vpop.eup %7519 }
0x3224   :  { %2562 = vrot.lane.b32.xlu0 %v7520_v44, %s9675_s21 }
0x3296   :  { %v2563_v45 = vpop.permute.xlu0 %2562 }
0x3297   :  { %v9010_v46 = vmul.f32 %v7518_v39, %v2563_v45 }
0x3299   :  { %v2567_v47 = vrot.slane %v9010_v46, 2 }
0x329b   :  { %2568 = vrot.lane.b32.xlu1 %v2567_v47, %s8275_s25 }
0x330d   :  { %v2569_v28 = vpop.permute.xlu1 %2568 }
0x330e   :  { %6878 = vmatmul.mubr.msk.f32.vlgmr.msra.gmra.mrb[22].mxu0 %vm2361_vm5, %v2569_v28 }
0x330f   :  { %7245 = vmatpush3.bf16.msra.mxu0 %v8965_v60  ;;  %6891 = vmatprep.mubr.msk.f32.mxu0 %vm8270_vm0, %v8271_v1 }
0x3310   :  { %7249 = vmatprep.subr.bf16.mxu0 %v8269_v0 }
0x33e1   :  { %v2638_v48 = vpop.f32.mrb[22].mxu0 }
0x33e2   :  { %v2643_v49 = vrot.slane %v2638_v48, 4  ;;  %v6879_v50 = vpop.f32.mrb[23].mxu0 }
0x33e4   :  { %v2645_v51 = vadd.f32 %v2643_v49, %v8988_v8 }
0x33e6   :  { %7521 = vtanh.f32 %v2645_v51  ;;  %v6366_v54 = vmul.f32 -1.442695, %v2645_v51 }
0x33e8   :  { %7523 = vpow2.f32 %v6366_v54 }
0x33f0   :  { %v7522_v53 = vpop.eup %7521 }
0x33f1   :  { %2658 = vrot.lane.b32.xlu0 %v7522_v53, %s8273_s9 }
0x33f2   :  { %v7524_v55 = vpop.eup %7523 }
0x33f3   :  { %v2649_v52 = vadd.f32 1.0, %v7524_v55 }
0x33f5   :  { %7525 = vrcp.f32 %v2649_v52 }
0x33ff   :  { %v7526_v56 = vpop.eup %7525 }
0x3400   :  { %v2656_v9 = vmul.f32 %v7526_v56, %v2654_v35 }
0x3463   :  { %v2659_v57 = vpop.permute.xlu0 %2658 }
0x3464   :  { %v2661_v58 = vmul.f32 %v7526_v56, %v2659_v57 }
0x3466   :  { %2663 = vrot.lane.b32.xlu1 %v2661_v58, %s8274_s3 }
0x34d8   :  { %v2664_v59 = vpop.permute.xlu1 %2663 }
0x34d9   :  { %v2666_v61 = vadd.f32 %v2664_v59, %v2656_v9 }
0x34db   :  { %7527 = vtanh.f32 %v2666_v61  ;;  %v2761_v6 = vrot.slane %v2666_v61, 6 }
0x34e5   :  { %v7528_v62 = vpop.eup %7527 }
0x34e6   :  { %2669 = vrot.lane.b32.xlu0 %v7528_v62, %s9675_s21 }
0x3558   :  { %v2670_v63 = vpop.permute.xlu0 %2669 }
0x3559   :  { %v9023_v5 = vmul.f32 %v7526_v56, %v2670_v63 }
0x355b   :  { %v2674_v7 = vrot.slane %v9023_v5, 4 }
0x355d   :  { %2675 = vrot.lane.b32.xlu1 %v2674_v7, %s8275_s25 }
0x35cf   :  { %v2676_v11 = vpop.permute.xlu1 %2675 }
0x35d0   :  { %6885 = vmatmul.mubr.msk.f32.vlgmr.msra.gmra.mrb[22].mxu1 %vm2361_vm5, %v2676_v11 }
0x35d1   :  { %7248 = vmatpush3.bf16.msra.mxu1 %v8965_v60  ;;  %6898 = vmatprep.mubr.msk.f32.mxu1 %vm8270_vm0, %v8271_v1 }
0x35d2   :  { %7252 = vmatprep.subr.bf16.mxu1 %v8269_v0 }
0x36a3   :  { %v2745_v12 = vpop.f32.mrb[22].mxu1 }
0x36a4   :  { %v2750_v14 = vrot.slane %v2745_v12, 2  ;;  %v6886_v15 = vpop.f32.mrb[23].mxu1 }
0x36a5   :  { %v3204_v15 = vld [vmem:[#allocation22] sm:$0xff] }
0x36a6   :  { %v2752_v16 = vadd.f32 %v2750_v14, %v8988_v8 }
0x36a8   :  { %7529 = vtanh.f32 %v2752_v16  ;;  %v6368_v19 = vmul.f32 -1.442695, %v2752_v16  ;;  %v3205_v16 = vld [vmem:[#allocation22 + $0x8] sm:$0xff] }
0x36aa   :  { %7531 = vpow2.f32 %v6368_v19 }
0x36b2   :  { %v7530_v17 = vpop.eup %7529 }
0x36b3   :  { %2765 = vrot.lane.b32.xlu0 %v7530_v17, %s8273_s9  ;;  %v9066_v17 = vpack.c.bf16 %v3205_v16, %v3204_v15 }
0x36b4   :  { %v7532_v20 = vpop.eup %7531 }
0x36b5   :  { %v2756_v21 = vadd.f32 1.0, %v7532_v20 }
0x36b7   :  { %7533 = vrcp.f32 %v2756_v21 }
0x36c1   :  { %v7534_v22 = vpop.eup %7533 }
0x36c2   :  { %v2763_v25 = vmul.f32 %v7534_v22, %v2761_v6  ;;  %v9081_v6 = vadd.f32 %v8984_v2, %v8982_v13 }
0x3725   :  { %v2766_v23 = vpop.permute.xlu0 %2765 }
0x3726   :  { %v2768_v24 = vmul.f32 %v7534_v22, %v2766_v23 }
0x3728   :  { %2770 = vrot.lane.b32.xlu1 %v2768_v24, %s8274_s3 }
0x379a   :  { %v2771_v26 = vpop.permute.xlu1 %2770 }
0x379b   :  { %v2773_v27 = vadd.f32 %v2771_v26, %v2763_v25 }
0x379d   :  { %7535 = vtanh.f32 %v2773_v27  ;;  %v2865_v43 = vrot.slane %v2773_v27, 6 }
0x37a7   :  { %v7536_v8 = vpop.eup %7535 }
0x37a8   :  { %2776 = vrot.lane.b32.xlu0 %v7536_v8, %s9675_s21 }
0x381a   :  { %v2777_v30 = vpop.permute.xlu0 %2776 }
0x381b   :  { %v9036_v31 = vmul.f32 %v7534_v22, %v2777_v30 }
0x381d   :  { %v2781_v32 = vrot.slane %v9036_v31, 6 }
0x381f   :  { %2782 = vrot.lane.b32.xlu1 %v2781_v32, %s8275_s25 }
0x3891   :  { %v2783_v33 = vpop.permute.xlu1 %2782 }
0x3892   :  { %6892 = vmatmul.mubr.msk.f32.vlgmr.msra.gmra.mrb[24].mxu0 %vm2361_vm5, %v2783_v33 }
0x3893   :  { %7251 = vmatpush3.bf16.msra.mxu0 %v8965_v60  ;;  %6905 = vmatprep.mubr.msk.f32.mxu0 %vm8270_vm0, %v8271_v1 }
0x3894   :  { %7255 = vmatprep.subr.bf16.mxu0 %v8269_v0 }
0x3965   :  { %v2852_v34 = vpop.f32.mrb[24].mxu0 }
0x3966   :  { %v2856_v36 = vadd.f32 %v2852_v34, %v8986_v3  ;;  %v6893_v37 = vpop.f32.mrb[25].mxu0 }
0x3968   :  { %7537 = vtanh.f32 %v2856_v36  ;;  %v6370_v39 = vmul.f32 -1.442695, %v2856_v36 }
0x396a   :  { %7539 = vpow2.f32 %v6370_v39 }
0x3972   :  { %v7538_v38 = vpop.eup %7537 }
0x3973   :  { %2869 = vrot.lane.b32.xlu0 %v7538_v38, %s8273_s9 }
0x3974   :  { %v7540_v40 = vpop.eup %7539 }
0x3975   :  { %v2860_v41 = vadd.f32 1.0, %v7540_v40 }
0x3977   :  { %7541 = vrcp.f32 %v2860_v41 }
0x3981   :  { %v7542_v42 = vpop.eup %7541 }
0x3982   :  { %v2867_v44 = vmul.f32 %v7542_v42, %v2865_v43 }
0x39e5   :  { %v2870_v18 = vpop.permute.xlu0 %2869 }
0x39e6   :  { %v2872_v4 = vmul.f32 %v7542_v42, %v2870_v18 }
0x39e8   :  { %2874 = vrot.lane.b32.xlu1 %v2872_v4, %s8274_s3 }
0x3a5a   :  { %v2875_v45 = vpop.permute.xlu1 %2874 }
0x3a5b   :  { %v2877_v47 = vadd.f32 %v2875_v45, %v2867_v44 }
0x3a5d   :  { %7543 = vtanh.f32 %v2877_v47  ;;  %v2971_v59 = vrot.slane %v2877_v47, 6 }
0x3a67   :  { %v7544_v28 = vpop.eup %7543 }
0x3a68   :  { %2880 = vrot.lane.b32.xlu0 %v7544_v28, %s9675_s21 }
0x3ada   :  { %v2881_v48 = vpop.permute.xlu0 %2880 }
0x3adb   :  { %v2883_v49 = vmul.f32 %v7542_v42, %v2881_v48 }
0x3add   :  { %2885 = vrot.lane.b32.xlu1 %v2883_v49, %s8275_s25 }
0x3b4f   :  { %v9050_v50 = vpop.permute.xlu1 %2885 }
0x3b50   :  { %6899 = vmatmul.mubr.msk.f32.vlgmr.msra.gmra.mrb[24].mxu1 %vm2361_vm5, %v9050_v50 }
0x3b51   :  { %7254 = vmatpush3.bf16.msra.mxu1 %v8965_v60  ;;  %6912 = vmatprep.mubr.msk.f32.mxu1 %vm8270_vm0, %v8271_v1 }
0x3b52   :  { %7258 = vmatprep.subr.bf16.mxu1 %v8269_v0 }
0x3c23   :  { %v2955_v51 = vpop.f32.mrb[24].mxu1 }
0x3c24   :  { %v2960_v53 = vrot.slane %v2955_v51, 6  ;;  %v6900_v54 = vpop.f32.mrb[25].mxu1 }
0x3c26   :  { %v2962_v55 = vadd.f32 %v2960_v53, %v8986_v3 }
0x3c28   :  { %7545 = vtanh.f32 %v2962_v55  ;;  %v6372_v56 = vmul.f32 -1.442695, %v2962_v55 }
0x3c2a   :  { %7547 = vpow2.f32 %v6372_v56 }
0x3c32   :  { %v7546_v52 = vpop.eup %7545 }
0x3c33   :  { %2975 = vrot.lane.b32.xlu0 %v7546_v52, %s8273_s9 }
0x3c34   :  { %v7548_v57 = vpop.eup %7547 }
0x3c35   :  { %v2966_v58 = vadd.f32 1.0, %v7548_v57 }
0x3c37   :  { %7549 = vrcp.f32 %v2966_v58 }
0x3c41   :  { %v7550_v60 = vpop.eup %7549 }
0x3c42   :  { %v2973_v61 = vmul.f32 %v7550_v60, %v2971_v59 }
0x3ca5   :  { %v2976_v35 = vpop.permute.xlu0 %2975 }
0x3ca6   :  { %v2978_v9 = vmul.f32 %v7550_v60, %v2976_v35 }
0x3ca8   :  { %2980 = vrot.lane.b32.xlu1 %v2978_v9, %s8274_s3 }
0x3d1a   :  { %v2981_v62 = vpop.permute.xlu1 %2980 }
0x3d1b   :  { %v2983_v63 = vadd.f32 %v2981_v62, %v2973_v61 }
0x3d1d   :  { %7551 = vtanh.f32 %v2983_v63  ;;  %v3078_v18 = vrot.slane %v2983_v63, 6 }
0x3d27   :  { %v7552_v7 = vpop.eup %7551 }
0x3d28   :  { %2986 = vrot.lane.b32.xlu0 %v7552_v7, %s9675_s21 }
0x3d9a   :  { %v2987_v11 = vpop.permute.xlu0 %2986 }
0x3d9b   :  { %v9062_v12 = vmul.f32 %v7550_v60, %v2987_v11 }
0x3d9d   :  { %v2991_v14 = vrot.slane %v9062_v12, 2 }
0x3d9f   :  { %2992 = vrot.lane.b32.xlu1 %v2991_v14, %s8275_s25 }
0x3e11   :  { %v2993_v19 = vpop.permute.xlu1 %2992 }
0x3e12   :  { %6906 = vmatmul.mubr.msk.f32.vlgmr.msra.gmra.mrb[26].mxu0 %vm2361_vm5, %v2993_v19 }
0x3e13   :  { %7257 = vmatpush3.bf16.msra.mxu0 %v9066_v17  ;;  %6919 = vmatprep.mubr.msk.f32.mxu0 %vm8270_vm0, %v8271_v1 }
0x3e14   :  { %7261 = vmatprep.subr.bf16.mxu0 %v8269_v0 }
0x3e16   :  { %6920 = vmatmul.mubr.f32.vlgmr.msra.gmra.mrb[28].mxu0 %v8271_v1 }
0x3e17   :  { %7263 = vmatpush3.bf16.msra.mxu0 %v9066_v17  ;;  %6933 = vmatprep.mubr.msk.f32.mxu0 %vm8270_vm0, %v8271_v1 }
0x3e18   :  { %7267 = vmatprep.subr.bf16.mxu0 %v8269_v0 }
0x3ee5   :  { %v3062_v20 = vpop.f32.mrb[26].mxu0 }
0x3ee6   :  { %v3067_v21 = vrot.slane %v3062_v20, 4  ;;  %v6907_v22 = vpop.f32.mrb[27].mxu0 }
0x3ee8   :  { %v3069_v23 = vadd.f32 %v3067_v21, %v8986_v3 }
0x3ee9   :  { %v3272_v24 = vpop.f32.mrb[28].mxu0 }
0x3eea   :  { %7553 = vtanh.f32 %v3069_v23  ;;  %v3277_v25 = vrot.slane %v3272_v24, 2  ;;  %v6921_v26 = vpop.f32.mrb[29].mxu0  ;;  %v6374_v32 = vmul.f32 -1.442695, %v3069_v23 }
0x3eec   :  { %v3279_v27 = vadd.f32 %v3277_v25, %v9081_v6 }
0x3eee   :  { %7555 = vtanh.f32 %v3279_v27  ;;  %v6377_v33 = vmul.f32 -1.442695, %v3279_v27 }
0x3eef   :  { %7557 = vpow2.f32 %v6374_v32 }
0x3ef0   :  { %7559 = vpow2.f32 %v6377_v33 }
0x3ef4   :  { %v7554_v8 = vpop.eup %7553 }
0x3ef5   :  { %3082 = vrot.lane.b32.xlu0 %v7554_v8, %s8273_s9 }
0x3ef8   :  { %v7556_v30 = vpop.eup %7555 }
0x3ef9   :  { %3289 = vrot.lane.b32.xlu1 %v7556_v30, %s8273_s9  ;;  %v7558_v34 = vpop.eup %7557 }
0x3efa   :  { %v3073_v36 = vadd.f32 1.0, %v7558_v34  ;;  %v7560_v13 = vpop.eup %7559 }
0x3efb   :  { %v3283_v2 = vadd.f32 1.0, %v7560_v13 }
0x3efc   :  { %7561 = vrcp.f32 %v3073_v36 }
0x3efd   :  { %7563 = vrcp.f32 %v3283_v2 }
0x3f06   :  { %v7562_v37 = vpop.eup %7561 }
0x3f07   :  { %v7564_v40 = vpop.eup %7563  ;;  %v3080_v4 = vmul.f32 %v7562_v37, %v3078_v18 }
0x3f08   :  { %v3287_v45 = vmul.f32 0.0, %v7564_v40 }
0x3f67   :  { %v3083_v38 = vpop.permute.xlu0 %3082 }
0x3f68   :  { %v3085_v39 = vmul.f32 %v7562_v37, %v3083_v38 }
0x3f6a   :  { %3087 = vrot.lane.b32.xlu0 %v3085_v39, %s8274_s3 }
0x3f6b   :  { %v3290_v41 = vpop.permute.xlu1 %3289 }
0x3f6c   :  { %v3292_v42 = vmul.f32 %v7564_v40, %v3290_v41 }
0x3f6e   :  { %3294 = vrot.lane.b32.xlu1 %v3292_v42, %s8274_s3 }
0x3fdc   :  { %v3088_v43 = vpop.permute.xlu0 %3087 }
0x3fdd   :  { %v9088_v44 = vadd.f32 %v3088_v43, %v3080_v4 }
0x3fdf   :  { %7565 = vtanh.f32 %v9088_v44 }
0x3fe0   :  { %v3295_v47 = vpop.permute.xlu1 %3294 }
0x3fe1   :  { %v3297_v28 = vadd.f32 %v3295_v47, %v3287_v45 }
0x3fe3   :  { %7567 = vtanh.f32 %v3297_v28  ;;  %v3392_v20 = vrot.slane %v3297_v28, 2 }
0x3fe9   :  { %v7566_v48 = vpop.eup %7565 }
0x3fea   :  { %3093 = vrot.lane.b32.xlu0 %v7566_v48, %s9675_s21 }
0x3fed   :  { %v7568_v49 = vpop.eup %7567 }
0x3fee   :  { %3300 = vrot.lane.b32.xlu1 %v7568_v49, %s9675_s21 }
0x405c   :  { %v3094_v51 = vpop.permute.xlu0 %3093 }
0x405d   :  { %v9093_v53 = vmul.f32 %v7562_v37, %v3094_v51 }
0x405f   :  { %v3098_v54 = vrot.slane %v9093_v53, 4 }
0x4060   :  { %v3301_v55 = vpop.permute.xlu1 %3300 }
0x4061   :  { %v9096_v52 = vmul.f32 %v7564_v40, %v3301_v55  ;;  %3099 = vrot.lane.b32.xlu0 %v3098_v54, %s8275_s25 }
0x4063   :  { %v3305_v56 = vrot.slane %v9096_v52, 6 }
0x4065   :  { %3306 = vrot.lane.b32.xlu1 %v3305_v56, %s8275_s25 }
0x40d3   :  { %v3100_v57 = vpop.permute.xlu0 %3099 }
0x40d4   :  { %6913 = vmatmul.mubr.msk.f32.vlgmr.msra.gmra.mrb[26].mxu1 %vm2361_vm5, %v3100_v57 }
0x40d5   :  { %7260 = vmatpush3.bf16.msra.mxu1 %v9066_v17  ;;  %6926 = vmatprep.mubr.msk.f32.mxu1 %vm8270_vm0, %v8271_v1 }
0x40d6   :  { %7264 = vmatprep.subr.bf16.mxu1 %v8269_v0 }
0x40d7   :  { %v3307_v58 = vpop.permute.xlu1 %3306 }
0x40d8   :  { %6927 = vmatmul.mubr.msk.f32.vlgmr.msra.gmra.mrb[28].mxu1 %vm2361_vm5, %v3307_v58 }
0x40d9   :  { %7266 = vmatpush3.bf16.msra.mxu1 %v9066_v17  ;;  %6940 = vmatprep.mubr.msk.f32.mxu1 %vm8270_vm0, %v8271_v1 }
0x40da   :  { %7270 = vmatprep.subr.bf16.mxu1 %v8269_v0 }
0x41a7   :  { %v9111_v60 = vpop.f32.mrb[26].mxu1 }
0x41a8   :  { %v6914_v35 = vpop.f32.mrb[27].mxu1 }
0x41ab   :  { %v3376_v9 = vpop.f32.mrb[28].mxu1 }
0x41ac   :  { %v3381_v59 = vrot.slane %v3376_v9, 4  ;;  %v6928_v61 = vpop.f32.mrb[29].mxu1 }
0x41ae   :  { %v3383_v62 = vadd.f32 %v3381_v59, %v9081_v6 }
0x41b0   :  { %7569 = vtanh.f32 %v3383_v62  ;;  %v6379_v7 = vmul.f32 -1.442695, %v3383_v62 }
0x41b2   :  { %7571 = vpow2.f32 %v6379_v7 }
0x41ba   :  { %v7570_v63 = vpop.eup %7569 }
0x41bb   :  { %3396 = vrot.lane.b32.xlu0 %v7570_v63, %s8273_s9 }
0x41bc   :  { %v7572_v11 = vpop.eup %7571 }
0x41bd   :  { %v3387_v14 = vadd.f32 1.0, %v7572_v11 }
0x41bf   :  { %7573 = vrcp.f32 %v3387_v14 }
0x41c9   :  { %v7574_v15 = vpop.eup %7573 }
0x41ca   :  { %v3394_v21 = vmul.f32 %v7574_v15, %v3392_v20 }
0x422d   :  { %v3397_v16 = vpop.permute.xlu0 %3396 }
0x422e   :  { %v3399_v19 = vmul.f32 %v7574_v15, %v3397_v16 }
0x4230   :  { %3401 = vrot.lane.b32.xlu1 %v3399_v19, %s8274_s3 }
0x42a2   :  { %v3402_v22 = vpop.permute.xlu1 %3401 }
0x42a3   :  { %v3404_v23 = vadd.f32 %v3402_v22, %v3394_v21 }
0x42a5   :  { %7575 = vtanh.f32 %v3404_v23  ;;  %v3499_v41 = vrot.slane %v3404_v23, 2 }
0x42af   :  { %v7576_v24 = vpop.eup %7575 }
0x42b0   :  { %3407 = vrot.lane.b32.xlu0 %v7576_v24, %s9675_s21 }
0x4322   :  { %v3408_v25 = vpop.permute.xlu0 %3407 }
0x4323   :  { %v9117_v26 = vmul.f32 %v7574_v15, %v3408_v25 }
0x4325   :  { %v3412_v27 = vrot.slane %v9117_v26, 4 }
0x4327   :  { %3413 = vrot.lane.b32.xlu1 %v3412_v27, %s8275_s25 }
0x4399   :  { %v3414_v8 = vpop.permute.xlu1 %3413 }
0x439a   :  { %6934 = vmatmul.mubr.msk.f32.vlgmr.msra.gmra.mrb[30].mxu0 %vm2361_vm5, %v3414_v8 }
0x439b   :  { %7269 = vmatpush3.bf16.msra.mxu0 %v9066_v17  ;;  %6947 = vmatprep.mubr.msk.f32.mxu0 %vm8270_vm0, %v8271_v1 }
0x439c   :  { %7273 = vmatprep.subr.bf16.mxu0 %v8269_v0 }
0x446d   :  { %v3483_v30 = vpop.f32.mrb[30].mxu0 }
0x446e   :  { %v3488_v32 = vrot.slane %v3483_v30, 6  ;;  %v6935_v33 = vpop.f32.mrb[31].mxu0 }
0x4470   :  { %v3490_v34 = vadd.f32 %v3488_v32, %v9081_v6 }
0x4472   :  { %7577 = vtanh.f32 %v3490_v34  ;;  %v6381_v13 = vmul.f32 -1.442695, %v3490_v34 }
0x4474   :  { %7579 = vpow2.f32 %v6381_v13 }
0x447c   :  { %v7578_v36 = vpop.eup %7577 }
0x447d   :  { %3503 = vrot.lane.b32.xlu0 %v7578_v36, %s8273_s9 }
0x447e   :  { %v7580_v2 = vpop.eup %7579 }
0x447f   :  { %v3494_v37 = vadd.f32 1.0, %v7580_v2 }
0x4481   :  { %7581 = vrcp.f32 %v3494_v37 }
0x448b   :  { %v7582_v38 = vpop.eup %7581 }
0x448c   :  { %v3501_v42 = vmul.f32 %v7582_v38, %v3499_v41 }
0x44ef   :  { %v3504_v39 = vpop.permute.xlu0 %3503 }
0x44f0   :  { %v3506_v40 = vmul.f32 %v7582_v38, %v3504_v39 }
0x44f2   :  { %3508 = vrot.lane.b32.xlu1 %v3506_v40, %s8274_s3 }
0x4564   :  { %v3509_v18 = vpop.permute.xlu1 %3508 }
0x4565   :  { %v3511_v4 = vadd.f32 %v3509_v18, %v3501_v42 }
0x4567   :  { %7583 = vtanh.f32 %v3511_v4  ;;  %v3603_v61 = vrot.slane %v3511_v4, 2 }
0x4571   :  { %v7584_v43 = vpop.eup %7583 }
0x4572   :  { %3514 = vrot.lane.b32.xlu0 %v7584_v43, %s9675_s21 }
0x45e4   :  { %v3515_v45 = vpop.permute.xlu0 %3514 }
0x45e5   :  { %v9130_v47 = vmul.f32 %v7582_v38, %v3515_v45 }
0x45e7   :  { %v3519_v28 = vrot.slane %v9130_v47, 2 }
0x45e9   :  { %3520 = vrot.lane.b32.xlu1 %v3519_v28, %s8275_s25 }
0x465b   :  { %v3521_v48 = vpop.permute.xlu1 %3520 }
0x465c   :  { %6941 = vmatmul.mubr.msk.f32.vlgmr.msra.gmra.mrb[30].mxu1 %vm2361_vm5, %v3521_v48 }
0x465d   :  { %7272 = vmatpush3.bf16.msra.mxu1 %v9066_v17  ;;  %6954 = vmatprep.mubr.msk.f32.mxu1 %vm8270_vm0, %v8271_v1 }
0x465e   :  { %7276 = vmatprep.subr.bf16.mxu1 %v8269_v0 }
0x472f   :  { %v3590_v49 = vpop.f32.mrb[30].mxu1 }
0x4730   :  { %v3594_v51 = vadd.f32 %v3590_v49, %v9081_v6  ;;  %v6942_v54 = vpop.f32.mrb[31].mxu1 }
0x4732   :  { %7585 = vtanh.f32 %v3594_v51  ;;  %v6383_v56 = vmul.f32 -1.442695, %v3594_v51 }
0x4734   :  { %7587 = vpow2.f32 %v6383_v56 }
0x473c   :  { %v7586_v55 = vpop.eup %7585 }
0x473d   :  { %3607 = vrot.lane.b32.xlu0 %v7586_v55, %s8273_s9 }
0x473e   :  { %v7588_v57 = vpop.eup %7587 }
0x473f   :  { %v3598_v58 = vadd.f32 1.0, %v7588_v57 }
0x4741   :  { %7589 = vrcp.f32 %v3598_v58 }
0x474b   :  { %v7590_v35 = vpop.eup %7589 }
0x474c   :  { %v3605_v62 = vmul.f32 %v7590_v35, %v3603_v61 }
0x47af   :  { %v3608_v9 = vpop.permute.xlu0 %3607 }
0x47b0   :  { %v3610_v59 = vmul.f32 %v7590_v35, %v3608_v9 }
0x47b2   :  { %3612 = vrot.lane.b32.xlu1 %v3610_v59, %s8274_s3 }
0x4824   :  { %v3613_v63 = vpop.permute.xlu1 %3612 }
0x4825   :  { %v3615_v7 = vadd.f32 %v3613_v63, %v3605_v62 }
0x4827   :  { %7591 = vtanh.f32 %v3615_v7  ;;  %v3709_v32 = vrot.slane %v3615_v7, 2 }
0x4831   :  { %v7592_v6 = vpop.eup %7591 }
0x4832   :  { %3618 = vrot.lane.b32.xlu0 %v7592_v6, %s9675_s21 }
0x48a4   :  { %v3619_v11 = vpop.permute.xlu0 %3618 }
0x48a5   :  { %v9143_v14 = vmul.f32 %v7590_v35, %v3619_v11 }
0x48a7   :  { %3623 = vrot.lane.b32.xlu1 %v9143_v14, %s8275_s25 }
0x4919   :  { %v3624_v15 = vpop.permute.xlu1 %3623 }
0x491a   :  { %6948 = vmatmul.mubr.msk.f32.vlgmr.msra.gmra.mrb[32].mxu0 %vm2361_vm5, %v3624_v15 }
0x491b   :  { %7275 = vmatpush3.bf16.msra.mxu0 %v9066_v17  ;;  %6961 = vmatprep.mubr.msk.f32.mxu0 %vm8270_vm0, %v8271_v1 }
0x49ed   :  { %v3693_v16 = vpop.f32.mrb[32].mxu0 }
0x49ee   :  { %v3698_v19 = vrot.slane %v3693_v16, 2  ;;  %v6949_v20 = vpop.f32.mrb[33].mxu0 }
0x49f0   :  { %v3700_v21 = vadd.f32 %v3698_v19, %v8991_v10 }
0x49f2   :  { %7593 = vtanh.f32 %v3700_v21  ;;  %v6385_v23 = vmul.f32 -1.442695, %v3700_v21 }
0x49f4   :  { %7595 = vpow2.f32 %v6385_v23 }
0x49fc   :  { %v7594_v22 = vpop.eup %7593 }
0x49fd   :  { %3713 = vrot.lane.b32.xlu0 %v7594_v22, %s8273_s9 }
0x49fe   :  { %v7596_v24 = vpop.eup %7595 }
0x49ff   :  { %v3704_v25 = vadd.f32 1.0, %v7596_v24 }
0x4a01   :  { %7597 = vrcp.f32 %v3704_v25 }
0x4a0b   :  { %v7598_v27 = vpop.eup %7597 }
0x4a0c   :  { %v3711_v33 = vmul.f32 %v7598_v27, %v3709_v32 }
0x4a6f   :  { %v3714_v8 = vpop.permute.xlu0 %3713 }
0x4a70   :  { %v3716_v30 = vmul.f32 %v7598_v27, %v3714_v8  ;;  %v3174_v8 = vrot.slane %v9111_v60, 2 }
0x4a72   :  { %3718 = vrot.lane.b32.xlu1 %v3716_v30, %s8274_s3  ;;  %v3176_v30 = vadd.f32 %v3174_v8, %v8986_v3 }
0x4ae4   :  { %v3719_v34 = vpop.permute.xlu1 %3718 }
0x4ae5   :  { %v3721_v36 = vadd.f32 %v3719_v34, %v3711_v33 }
0x4ae7   :  { %7599 = vtanh.f32 %v3721_v36  ;;  %v3816_v51 = vrot.slane %v3721_v36, 2 }
0x4af1   :  { %v7600_v13 = vpop.eup %7599 }
0x4af2   :  { %3724 = vrot.lane.b32.xlu0 %v7600_v13, %s9675_s21  ;;  %v6376_v13 = vmul.f32 -1.442695, %v3176_v30 }
0x4b64   :  { %v3725_v2 = vpop.permute.xlu0 %3724 }
0x4b65   :  { %v9155_v37 = vmul.f32 %v7598_v27, %v3725_v2 }
0x4b67   :  { %v3729_v38 = vrot.slane %v9155_v37, 6 }
0x4b69   :  { %3730 = vrot.lane.b32.xlu1 %v3729_v38, %s8275_s25 }
0x4bdb   :  { %v3731_v39 = vpop.permute.xlu1 %3730 }
0x4bdc   :  { %6955 = vmatmul.mubr.msk.f32.vlgmr.msra.gmra.mrb[32].mxu1 %vm2361_vm5, %v3731_v39 }
0x4bdd   :  { %7278 = vmatpush3.bf16.msra.mxu1 %v9066_v17  ;;  %6968 = vmatprep.mubr.msk.f32.mxu1 %vm8270_vm0, %v8271_v1 }
0x4caf   :  { %v3800_v40 = vpop.f32.mrb[32].mxu1 }
0x4cb0   :  { %v3805_v41 = vrot.slane %v3800_v40, 4  ;;  %v6956_v42 = vpop.f32.mrb[33].mxu1 }
0x4cb2   :  { %v3807_v18 = vadd.f32 %v3805_v41, %v8991_v10  ;;  %v3185_v41 = vrot.slane %v9088_v44, 6 }
0x4cb4   :  { %7601 = vtanh.f32 %v3807_v18  ;;  %v6387_v43 = vmul.f32 -1.442695, %v3807_v18 }
0x4cb6   :  { %7603 = vpow2.f32 %v6387_v43 }
0x4cbe   :  { %v7602_v4 = vpop.eup %7601 }
0x4cbf   :  { %3820 = vrot.lane.b32.xlu0 %v7602_v4, %s8273_s9 }
0x4cc0   :  { %v7604_v45 = vpop.eup %7603 }
0x4cc1   :  { %v3811_v28 = vadd.f32 1.0, %v7604_v45 }
0x4cc3   :  { %7605 = vrcp.f32 %v3811_v28 }
0x4ccd   :  { %v7606_v48 = vpop.eup %7605 }
0x4cce   :  { %v3818_v54 = vmul.f32 %v7606_v48, %v3816_v51 }
0x4d31   :  { %v3821_v49 = vpop.permute.xlu0 %3820 }
0x4d32   :  { %v3823_v17 = vmul.f32 %v7606_v48, %v3821_v49 }
0x4d34   :  { %3825 = vrot.lane.b32.xlu1 %v3823_v17, %s8274_s3 }
0x4da6   :  { %v3826_v55 = vpop.permute.xlu1 %3825 }
0x4da7   :  { %v3828_v56 = vadd.f32 %v3826_v55, %v3818_v54  ;;  %v4106_v54 = vld [vmem:[#allocation25] sm:$0xff]  ;;  %v4107_v55 = vld [vmem:[#allocation25 + $0x8] sm:$0xff] }
0x4da9   :  { %7607 = vtanh.f32 %v3828_v56  ;;  %v3923_v22 = vrot.slane %v3828_v56, 2  ;;  %v4198_v56 = vld [vmem:[%s9637_s18] sm:$0xff] }
0x4db3   :  { %v7608_v57 = vpop.eup %7607 }
0x4db4   :  { %3831 = vrot.lane.b32.xlu0 %v7608_v57, %s9675_s21  ;;  %v7279_v57 = vpack.c.bf16 %v4107_v55, %v4106_v54 }
0x4db6   :  { %7280 = vmatprep.subr.bf16.mxu0 %v7279_v57 }
0x4e26   :  { %v3832_v58 = vpop.permute.xlu0 %3831 }
0x4e27   :  { %v9167_v35 = vmul.f32 %v7606_v48, %v3832_v58  ;;  %v4199_v58 = vld [vmem:[%s9637_s18 + $0x8] sm:$0xff] }
0x4e29   :  { %v3836_v9 = vrot.slane %v9167_v35, 4 }
0x4e2b   :  { %3837 = vrot.lane.b32.xlu1 %v3836_v9, %s8275_s25  ;;  %v7287_v9 = vpack.c.bf16 %v4199_v58, %v4198_v56 }
0x4e2d   :  { %7288 = vmatprep.subr.bf16.mxu1 %v7287_v9 }
0x4e9d   :  { %v3838_v59 = vpop.permute.xlu1 %3837 }
0x4e9e   :  { %6962 = vmatmul.mubr.msk.f32.vlgmr.msra.gmra.mrb[34].mxu0 %vm2361_vm5, %v3838_v59  ;;  %v4109_v59 = vld [vmem:[#allocation25 + $0x18] sm:$0xff] }
0x4e9f   :  { %7282 = vmatpush3.bf16.msra.mxu0 %v7279_v57 }
0x4f71   :  { %v3907_v61 = vpop.f32.mrb[34].mxu0 }
0x4f72   :  { %v3912_v62 = vrot.slane %v3907_v61, 6  ;;  %v6963_v63 = vpop.f32.mrb[35].mxu0  ;;  %v4200_v61 = vld [vmem:[%s9637_s18 + $0x10] sm:$0xff] }
0x4f74   :  { %v3914_v7 = vadd.f32 %v3912_v62, %v8991_v10 }
0x4f76   :  { %7609 = vtanh.f32 %v3914_v7  ;;  %v6389_v11 = vmul.f32 -1.442695, %v3914_v7 }
0x4f78   :  { %7611 = vpow2.f32 %v6389_v11 }
0x4f80   :  { %v7610_v6 = vpop.eup %7609 }
0x4f81   :  { %3927 = vrot.lane.b32.xlu0 %v7610_v6, %s8273_s9 }
0x4f82   :  { %v7612_v15 = vpop.eup %7611 }
0x4f83   :  { %v3918_v16 = vadd.f32 1.0, %v7612_v15 }
0x4f85   :  { %7613 = vrcp.f32 %v3918_v16 }
0x4f8f   :  { %v7614_v19 = vpop.eup %7613 }
0x4f90   :  { %v3925_v23 = vmul.f32 %v7614_v19, %v3923_v22 }
0x4ff3   :  { %v3928_v20 = vpop.permute.xlu0 %3927 }
0x4ff4   :  { %v3930_v21 = vmul.f32 %v7614_v19, %v3928_v20 }
0x4ff6   :  { %3932 = vrot.lane.b32.xlu1 %v3930_v21, %s8274_s3 }
0x5068   :  { %v3933_v24 = vpop.permute.xlu1 %3932 }
0x5069   :  { %v3935_v25 = vadd.f32 %v3933_v24, %v3925_v23 }
0x506b   :  { %7615 = vtanh.f32 %v3935_v25 }
0x506c   :  { %7617 = vtanh.f32 %v3176_v30 }
0x506d   :  { %7619 = vpow2.f32 %v6376_v13 }
0x5075   :  { %v7616_v27 = vpop.eup %7615 }
0x5076   :  { %3938 = vrot.lane.b32.xlu0 %v7616_v27, %s9675_s21  ;;  %v7618_v36 = vpop.eup %7617 }
0x5077   :  { %v7620_v2 = vpop.eup %7619 }
0x5078   :  { %v3180_v38 = vadd.f32 1.0, %v7620_v2 }
0x507a   :  { %7621 = vrcp.f32 %v3180_v38 }
0x5084   :  { %v9181_v60 = vpop.eup %7621 }
0x5085   :  { %v3187_v42 = vmul.f32 %v9181_v60, %v3185_v41 }
0x50e8   :  { %v3939_v32 = vpop.permute.xlu0 %3938 }
0x50e9   :  { %v3941_v33 = vmul.f32 %v7614_v19, %v3939_v32 }
0x50eb   :  { %v3943_v34 = vrot.slane %v3941_v33, 2 }
0x50ed   :  { %3944 = vrot.lane.b32.xlu1 %v3943_v34, %s8275_s25  ;;  %v4284_v34 = vld [vmem:[#allocation26] sm:$0xff] }
0x50f1   :  { %3189 = vrot.lane.b32.xlu1 %v7618_v36, %s8273_s9  ;;  %v4285_v36 = vld [vmem:[#allocation26 + $0x8] sm:$0xff] }
0x515f   :  { %v3945_v39 = vpop.permute.xlu1 %3944 }
0x5160   :  { %6969 = vmatmul.mubr.msk.f32.vlgmr.msra.gmra.mrb[34].mxu1 %vm2361_vm5, %v3945_v39 }
0x5161   :  { %7290 = vmatpush3.bf16.msra.mxu1 %v7287_v9 }
0x5163   :  { %v3190_v3 = vpop.permute.xlu1 %3189 }
0x5164   :  { %v3192_v40 = vmul.f32 %v9181_v60, %v3190_v3 }
0x5166   :  { %3194 = vrot.lane.b32.xlu1 %v3192_v40, %s8274_s3 }
0x51d8   :  { %v3195_v18 = vpop.permute.xlu1 %3194 }
0x51d9   :  { %v3197_v4 = vadd.f32 %v3195_v18, %v3187_v42  ;;  %v9245_v18 = vpack.c.bf16 %v4285_v36, %v4284_v34 }
0x51db   :  { %7623 = vtanh.f32 %v3197_v4 }
0x51e5   :  { %v7624_v43 = vpop.eup %7623 }
0x51e6   :  { %3200 = vrot.lane.b32.xlu1 %v7624_v43, %s9675_s21 }
0x51ea   :  { %4052 = vrot.lane.b32.xlu1 %v9010_v46, %s8275_s25 }
0x51ee   :  { %4059 = vrot.lane.b32.xlu1 %v9023_v5, %s8275_s25 }
0x51f2   :  { %4074 = vrot.lane.b32.xlu1 %v9143_v14, %s8273_s9 }
0x51f6   :  { %4081 = vrot.lane.b32.xlu1 %v9130_v47, %s8273_s9 }
0x51fa   :  { %4069 = vrot.lane.b32.xlu1 %v9155_v37, %s8273_s9 }
0x51fe   :  { %4088 = vrot.lane.b32.xlu1 %v9117_v26, %s8273_s9  ;;  %v4027_v26 = vrot.slane %v3935_v25, 2 }
0x5202   :  { %4096 = vrot.lane.b32.xlu1 %v9096_v52, %s8273_s9 }
0x5233   :  { %v4014_v44 = vpop.f32.mrb[34].mxu1 }
0x5234   :  { %v4018_v46 = vadd.f32 %v4014_v44, %v8991_v10  ;;  %v6970_v45 = vpop.f32.mrb[35].mxu1  ;;  %v6392_v44 = vld [vmem:[#allocation28] ss:$0 sm:$0xff] }
0x5236   :  { %7625 = vtanh.f32 %v4018_v46  ;;  %v6391_v14 = vmul.f32 -1.442695, %v4018_v46  ;;  %v9270_v46 = vld [vmem:[%s9639_s20] ss:$0 sm:$0xff]  ;;  %s8276_s20 = smov 112  }
0x5238   :  { %7627 = vpow2.f32 %v6391_v14 }
0x5240   :  { %v7626_v5 = vpop.eup %7625 }
0x5241   :  { %4031 = vrot.lane.b32.xlu0 %v7626_v5, %s8273_s9 }
0x5242   :  { %v7628_v47 = vpop.eup %7627 }
0x5243   :  { %v4022_v28 = vadd.f32 1.0, %v7628_v47 }
0x5245   :  { %7629 = vrcp.f32 %v4022_v28 }
0x524f   :  { %v7630_v37 = vpop.eup %7629 }
0x5250   :  { %v4029_v52 = vmul.f32 %v7630_v37, %v4027_v26 }
0x5258   :  { %v3201_v7 = vpop.permute.xlu1 %3200 }
0x5259   :  { %v3203_v6 = vmul.f32 %v9181_v60, %v3201_v7 }
0x525c   :  { %v4053_v11 = vpop.permute.xlu1 %4052 }
0x5260   :  { %v4060_v16 = vpop.permute.xlu1 %4059 }
0x5264   :  { %v4075_v20 = vpop.permute.xlu1 %4074 }
0x5265   :  { %v4077_v39 = vsel %vm2361_vm5, %v9050_v50, %v4075_v20 }
0x5268   :  { %v4082_v22 = vpop.permute.xlu1 %4081 }
0x526c   :  { %v4070_v24 = vpop.permute.xlu1 %4069 }
0x5270   :  { %v4089_v27 = vpop.permute.xlu1 %4088 }
0x5274   :  { %v4097_v40 = vpop.permute.xlu1 %4096 }
0x52b3   :  { %v4032_v48 = vpop.permute.xlu0 %4031 }
0x52b4   :  { %v4034_v49 = vmul.f32 %v7630_v37, %v4032_v48 }
0x52b6   :  { %4036 = vrot.lane.b32.xlu0 %v4034_v49, %s8274_s3 }
0x5328   :  { %v4037_v17 = vpop.permute.xlu0 %4036 }
0x5329   :  { %v4039_v51 = vadd.f32 %v4037_v17, %v4029_v52 }
0x532b   :  { %7631 = vtanh.f32 %v4039_v51 }
0x5335   :  { %v7632_v10 = vpop.eup %7631 }
0x5336   :  { %4042 = vrot.lane.b32.xlu0 %v7632_v10, %s9675_s21 }
0x533a   :  { %4055 = vrot.lane.b32.xlu0 %v3941_v33, %s8273_s9 }
0x533e   :  { %4062 = vrot.lane.b32.xlu0 %v9167_v35, %s8273_s9  ;;  %v4108_v35 = vld [vmem:[#allocation25 + $0x10] sm:$0xff] }
0x533f   :  { %v7283_v62 = vpack.c.bf16 %v4109_v59, %v4108_v35 }
0x5341   :  { %7284 = vmatprep.subr.bf16.mxu0 %v7283_v62 }
0x5342   :  { %4078 = vrot.lane.b32.xlu0 %v9062_v12, %s8275_s25  ;;  %v4201_v12 = vld [vmem:[%s9637_s18 + $0x18] sm:$0xff]  ;;  %7286 = vmatpush3.bf16.msra.mxu0 %v7283_v62 }
0x5343   :  { %v7291_v63 = vpack.c.bf16 %v4201_v12, %v4200_v61  ;;  %7295 = vmatprep.subr.bf16.mxu0 %v8269_v0 }
0x5345   :  { %7292 = vmatprep.subr.bf16.mxu1 %v7291_v63 }
0x5346   :  { %4066 = vrot.lane.b32.xlu0 %v9036_v31, %s8275_s25  ;;  %7294 = vmatpush3.bf16.msra.mxu1 %v7291_v63 }
0x5347   :  { %7298 = vmatprep.subr.bf16.mxu1 %v8269_v0 }
0x534a   :  { %4085 = vrot.lane.b32.xlu0 %v9093_v53, %s8275_s25 }
0x53a8   :  { %v4043_v31 = vpop.permute.xlu0 %4042 }
0x53a9   :  { %v4045_v53 = vmul.f32 %v7630_v37, %v4043_v31 }
0x53ab   :  { %4048 = vrot.lane.b32.xlu0 %v4045_v53, %s8273_s9 }
0x53ac   :  { %v4056_v15 = vpop.permute.xlu0 %4055 }
0x53ad   :  { %v4058_v30 = vsel %vm2361_vm5, %v4053_v11, %v4056_v15 }
0x53af   :  { %4093 = vrot.lane.b32.xlu0 %v3203_v6, %s8275_s25 }
0x53b0   :  { %v4063_v19 = vpop.permute.xlu0 %4062 }
0x53b1   :  { %v4065_v13 = vsel %vm2361_vm5, %v4060_v16, %v4063_v19 }
0x53b4   :  { %v4079_v21 = vpop.permute.xlu0 %4078 }
0x53b5   :  { %v4084_v32 = vsel %vm2361_vm5, %v4079_v21, %v4082_v22 }
0x53b6   :  { %v4103_v41 = vsel %vm1212_vm2, %v4077_v39, %v4084_v32 }
0x53b8   :  { %v4067_v23 = vpop.permute.xlu0 %4066 }
0x53b9   :  { %v4072_v60 = vsel %vm2361_vm5, %v4067_v23, %v4070_v24 }
0x53bc   :  { %v4086_v25 = vpop.permute.xlu0 %4085 }
0x53bd   :  { %v4091_v2 = vsel %vm2361_vm5, %v4086_v25, %v4089_v27 }
0x53be   :  { %v4104_v4 = vsel %vm1214_vm3, %v4103_v41, %v4091_v2 }
0x541d   :  { %v4049_v8 = vpop.permute.xlu0 %4048 }
0x541e   :  { %v4051_v33 = vsel %vm2361_vm5, %v8998_v29, %v4049_v8 }
0x541f   :  { %v4100_v38 = vsel %vm1212_vm2, %v4051_v33, %v4058_v30 }
0x5420   :  { %v4101_v3 = vsel %vm1214_vm3, %v4100_v38, %v4065_v13 }
0x5421   :  { %v4094_v42 = vpop.permute.xlu0 %4093  ;;  %v4102_v29 = vsel %vm1216_vm4, %v4101_v3, %v4072_v60 }
0x5422   :  { %v4099_v43 = vsel %vm2361_vm5, %v4094_v42, %v4097_v40  ;;  %6979 = vmatprep.mubr.msk.f32.mxu0 %vm317_vm1, %v4102_v29  ;;  %6990 = vmatprep.mubr.msk.f32.mxu1 %vm317_vm1, %v4102_v29 }
0x5423   :  { %v4105_v50 = vsel %vm1216_vm4, %v4104_v4, %v4099_v43 }
0x5424   :  { %6980 = vmatmul.mubr.msk.f32.vlgmr.msra.gmra.mrb[36].mxu0 %vm317_vm1, %v4105_v50  ;;  %6991 = vmatmul.mubr.msk.f32.vlgmr.msra.gmra.mrb[36].mxu1 %vm317_vm1, %v4105_v50 }
0x5425   :  { %7297 = vmatpush3.bf16.msra.mxu0 %v9245_v18  ;;  %6997 = vmatprep.mubr.msk.f32.mxu0 %vm8270_vm0, %v8271_v1 }
0x5426   :  { %7300 = vmatpush3.bf16.msra.mxu1 %v9245_v18  ;;  %7004 = vmatprep.mubr.msk.f32.mxu1 %vm8270_vm0, %v8271_v1 }
0x5427   :  { %7301 = vmatprep.subr.bf16.mxu0 %v8269_v0  ;;  %7304 = vmatprep.subr.bf16.mxu1 %v8269_v0 }
0x5428   :  { %6998 = vmatmul.mubr.f32.vlgmr.msra.gmra.mrb[38].mxu0 %v8271_v1 }
0x5429   :  { %7303 = vmatpush3.bf16.msra.mxu0 %v9245_v18  ;;  %7011 = vmatprep.mubr.msk.f32.mxu0 %vm8270_vm0, %v8271_v1 }
0x542a   :  { %7307 = vmatprep.subr.bf16.mxu0 %v8269_v0 }
0x54f7   :  { %v6981_v45 = vpop.f32.mrb[36].mxu0  ;;  %v9272_v5 = vpop.f32.mrb[36].mxu1 }
0x54f8   :  { %v9274_v14 = vadd.f32 %v6981_v45, %v6392_v44  ;;  %v4189_v47 = vpop.f32.mrb[37].mxu0  ;;  %v4275_v28 = vpop.f32.mrb[37].mxu1 }
0x54f9   :  { %v9276_v37 = vadd.f32 %v6392_v44, %v4189_v47  ;;  %v9279_v48 = vadd.f32 %v9270_v46, %v4275_v28 }
0x54fb   :  { %v4352_v49 = vpop.f32.mrb[38].mxu0 }
0x54fc   :  { %v4356_v26 = vadd.f32 %v4352_v49, %v9276_v37  ;;  %v6999_v52 = vpop.f32.mrb[39].mxu0 }
0x54fe   :  { %7633 = vtanh.f32 %v4356_v26  ;;  %v6398_v51 = vmul.f32 -1.442695, %v4356_v26 }
0x5500   :  { %7635 = vpow2.f32 %v6398_v51 }
0x5508   :  { %v7634_v17 = vpop.eup %7633 }
0x5509   :  { %4366 = vrot.lane.b32.xlu0 %v7634_v17, %s8273_s9 }
0x550a   :  { %v7636_v10 = vpop.eup %7635 }
0x550b   :  { %v4360_v54 = vadd.f32 1.0, %v7636_v10 }
0x550d   :  { %7637 = vrcp.f32 %v4360_v54 }
0x5517   :  { %v7638_v55 = vpop.eup %7637 }
0x5518   :  { %v4364_v58 = vmul.f32 0.0, %v7638_v55 }
0x557b   :  { %v4367_v56 = vpop.permute.xlu0 %4366 }
0x557c   :  { %v4369_v57 = vmul.f32 %v7638_v55, %v4367_v56 }
0x557e   :  { %4371 = vrot.lane.b32.xlu1 %v4369_v57, %s8274_s3 }
0x55f0   :  { %v4372_v9 = vpop.permute.xlu1 %4371 }
0x55f1   :  { %v4374_v35 = vadd.f32 %v4372_v9, %v4364_v58 }
0x55f3   :  { %7639 = vtanh.f32 %v4374_v35  ;;  %v4468_v22 = vrot.slane %v4374_v35, 6 }
0x55fd   :  { %v7640_v59 = vpop.eup %7639 }
0x55fe   :  { %4377 = vrot.lane.b32.xlu0 %v7640_v59, %s9675_s21 }
0x5670   :  { %v4378_v61 = vpop.permute.xlu0 %4377 }
0x5671   :  { %v4380_v62 = vmul.f32 %v7638_v55, %v4378_v61 }
0x5673   :  { %4382 = vrot.lane.b32.xlu1 %v4380_v62, %s8275_s25 }
0x56e5   :  { %v9286_v12 = vpop.permute.xlu1 %4382 }
0x56e6   :  { %7005 = vmatmul.mubr.msk.f32.vlgmr.msra.gmra.mrb[38].mxu1 %vm2361_vm5, %v9286_v12 }
0x56e7   :  { %7306 = vmatpush3.bf16.msra.mxu1 %v9245_v18  ;;  %7018 = vmatprep.mubr.msk.f32.mxu1 %vm8270_vm0, %v8271_v1 }
0x56e8   :  { %7310 = vmatprep.subr.bf16.mxu1 %v8269_v0 }
0x57b9   :  { %v4452_v63 = vpop.f32.mrb[38].mxu1 }
0x57ba   :  { %v4457_v31 = vrot.slane %v4452_v63, 6  ;;  %v7006_v53 = vpop.f32.mrb[39].mxu1 }
0x57bc   :  { %v4459_v7 = vadd.f32 %v4457_v31, %v9276_v37 }
0x57be   :  { %7641 = vtanh.f32 %v4459_v7  ;;  %v6400_v11 = vmul.f32 -1.442695, %v4459_v7 }
0x57c0   :  { %7643 = vpow2.f32 %v6400_v11 }
0x57c8   :  { %v7642_v6 = vpop.eup %7641 }
0x57c9   :  { %4472 = vrot.lane.b32.xlu0 %v7642_v6, %s8273_s9 }
0x57ca   :  { %v7644_v15 = vpop.eup %7643 }
0x57cb   :  { %v4463_v16 = vadd.f32 1.0, %v7644_v15 }
0x57cd   :  { %7645 = vrcp.f32 %v4463_v16 }
0x57d7   :  { %v7646_v19 = vpop.eup %7645 }
0x57d8   :  { %v4470_v23 = vmul.f32 %v7646_v19, %v4468_v22 }
0x583b   :  { %v4473_v20 = vpop.permute.xlu0 %4472 }
0x583c   :  { %v4475_v21 = vmul.f32 %v7646_v19, %v4473_v20 }
0x583e   :  { %4477 = vrot.lane.b32.xlu1 %v4475_v21, %s8274_s3 }
0x58b0   :  { %v4478_v24 = vpop.permute.xlu1 %4477 }
0x58b1   :  { %v4480_v25 = vadd.f32 %v4478_v24, %v4470_v23 }
0x58b3   :  { %7647 = vtanh.f32 %v4480_v25  ;;  %v4575_v29 = vrot.slane %v4480_v25, 6 }
0x58bd   :  { %v7648_v27 = vpop.eup %7647 }
0x58be   :  { %4483 = vrot.lane.b32.xlu0 %v7648_v27, %s9675_s21 }
0x5930   :  { %v4484_v8 = vpop.permute.xlu0 %4483 }
0x5931   :  { %v9298_v30 = vmul.f32 %v7646_v19, %v4484_v8 }
0x5933   :  { %v4488_v32 = vrot.slane %v9298_v30, 2 }
0x5935   :  { %4489 = vrot.lane.b32.xlu1 %v4488_v32, %s8275_s25 }
0x59a7   :  { %v4490_v33 = vpop.permute.xlu1 %4489 }
0x59a8   :  { %7012 = vmatmul.mubr.msk.f32.vlgmr.msra.gmra.mrb[40].mxu0 %vm2361_vm5, %v4490_v33 }
0x59a9   :  { %7309 = vmatpush3.bf16.msra.mxu0 %v9245_v18  ;;  %7025 = vmatprep.mubr.msk.f32.mxu0 %vm8270_vm0, %v8271_v1 }
0x59aa   :  { %7313 = vmatprep.subr.bf16.mxu0 %v8269_v0 }
0x5a7b   :  { %v4559_v34 = vpop.f32.mrb[40].mxu0 }
0x5a7c   :  { %v4564_v36 = vrot.slane %v4559_v34, 4  ;;  %v7013_v13 = vpop.f32.mrb[41].mxu0 }
0x5a7e   :  { %v4566_v2 = vadd.f32 %v4564_v36, %v9276_v37 }
0x5a80   :  { %7649 = vtanh.f32 %v4566_v2  ;;  %v6402_v39 = vmul.f32 -1.442695, %v4566_v2 }
0x5a82   :  { %7651 = vpow2.f32 %v6402_v39 }
0x5a8a   :  { %v7650_v38 = vpop.eup %7649 }
0x5a8b   :  { %4579 = vrot.lane.b32.xlu0 %v7650_v38, %s8273_s9 }
0x5a8c   :  { %v7652_v60 = vpop.eup %7651 }
0x5a8d   :  { %v4570_v3 = vadd.f32 1.0, %v7652_v60 }
0x5a8f   :  { %7653 = vrcp.f32 %v4570_v3 }
0x5a99   :  { %v7654_v40 = vpop.eup %7653 }
0x5a9a   :  { %v4577_v4 = vmul.f32 %v7654_v40, %v4575_v29 }
0x5afd   :  { %v4580_v41 = vpop.permute.xlu0 %4579 }
0x5afe   :  { %v4582_v42 = vmul.f32 %v7654_v40, %v4580_v41 }
0x5b00   :  { %4584 = vrot.lane.b32.xlu1 %v4582_v42, %s8274_s3 }
0x5b72   :  { %v4585_v43 = vpop.permute.xlu1 %4584 }
0x5b73   :  { %v4587_v50 = vadd.f32 %v4585_v43, %v4577_v4 }
0x5b75   :  { %7655 = vtanh.f32 %v4587_v50  ;;  %v4682_v35 = vrot.slane %v4587_v50, 6 }
0x5b7f   :  { %v7656_v44 = vpop.eup %7655 }
0x5b80   :  { %4590 = vrot.lane.b32.xlu0 %v7656_v44, %s9675_s21 }
0x5bf2   :  { %v4591_v45 = vpop.permute.xlu0 %4590 }
0x5bf3   :  { %v9311_v47 = vmul.f32 %v7654_v40, %v4591_v45 }
0x5bf5   :  { %v4595_v28 = vrot.slane %v9311_v47, 4 }
0x5bf7   :  { %4596 = vrot.lane.b32.xlu1 %v4595_v28, %s8275_s25 }
0x5c69   :  { %v4597_v49 = vpop.permute.xlu1 %4596 }
0x5c6a   :  { %7019 = vmatmul.mubr.msk.f32.vlgmr.msra.gmra.mrb[40].mxu1 %vm2361_vm5, %v4597_v49 }
0x5c6b   :  { %7312 = vmatpush3.bf16.msra.mxu1 %v9245_v18  ;;  %7032 = vmatprep.mubr.msk.f32.mxu1 %vm8270_vm0, %v8271_v1 }
0x5c6c   :  { %7316 = vmatprep.subr.bf16.mxu1 %v8269_v0 }
0x5d3d   :  { %v4666_v26 = vpop.f32.mrb[40].mxu1 }
0x5d3e   :  { %v4671_v52 = vrot.slane %v4666_v26, 2  ;;  %v7020_v17 = vpop.f32.mrb[41].mxu1 }
0x5d3f   :  { %v5125_v17 = vld [vmem:[#allocation29] sm:$0xff] }
0x5d40   :  { %v4673_v51 = vadd.f32 %v4671_v52, %v9276_v37 }
0x5d42   :  { %7657 = vtanh.f32 %v4673_v51  ;;  %v6404_v54 = vmul.f32 -1.442695, %v4673_v51  ;;  %v5126_v51 = vld [vmem:[#allocation29 + $0x8] sm:$0xff] }
0x5d44   :  { %7659 = vpow2.f32 %v6404_v54 }
0x5d4c   :  { %v7658_v10 = vpop.eup %7657 }
0x5d4d   :  { %4686 = vrot.lane.b32.xlu0 %v7658_v10, %s8273_s9  ;;  %v9354_v10 = vpack.c.bf16 %v5126_v51, %v5125_v17 }
0x5d4e   :  { %v7660_v55 = vpop.eup %7659 }
0x5d4f   :  { %v4677_v56 = vadd.f32 1.0, %v7660_v55 }
0x5d51   :  { %7661 = vrcp.f32 %v4677_v56 }
0x5d5b   :  { %v7662_v57 = vpop.eup %7661 }
0x5d5c   :  { %v4684_v59 = vmul.f32 %v7662_v57, %v4682_v35  ;;  %v9369_v35 = vadd.f32 %v9272_v5, %v9270_v46 }
0x5dbf   :  { %v4687_v58 = vpop.permute.xlu0 %4686 }
0x5dc0   :  { %v4689_v9 = vmul.f32 %v7662_v57, %v4687_v58 }
0x5dc2   :  { %4691 = vrot.lane.b32.xlu1 %v4689_v9, %s8274_s3 }
0x5e34   :  { %v4692_v61 = vpop.permute.xlu1 %4691 }
0x5e35   :  { %v4694_v62 = vadd.f32 %v4692_v61, %v4684_v59 }
0x5e37   :  { %7663 = vtanh.f32 %v4694_v62  ;;  %v4786_v25 = vrot.slane %v4694_v62, 6 }
0x5e41   :  { %v7664_v37 = vpop.eup %7663 }
0x5e42   :  { %4697 = vrot.lane.b32.xlu0 %v7664_v37, %s9675_s21 }
0x5eb4   :  { %v4698_v63 = vpop.permute.xlu0 %4697 }
0x5eb5   :  { %v9324_v31 = vmul.f32 %v7662_v57, %v4698_v63 }
0x5eb7   :  { %v4702_v53 = vrot.slane %v9324_v31, 6 }
0x5eb9   :  { %4703 = vrot.lane.b32.xlu1 %v4702_v53, %s8275_s25 }
0x5f2b   :  { %v4704_v7 = vpop.permute.xlu1 %4703 }
0x5f2c   :  { %7026 = vmatmul.mubr.msk.f32.vlgmr.msra.gmra.mrb[42].mxu0 %vm2361_vm5, %v4704_v7 }
0x5f2d   :  { %7315 = vmatpush3.bf16.msra.mxu0 %v9245_v18  ;;  %7039 = vmatprep.mubr.msk.f32.mxu0 %vm8270_vm0, %v8271_v1 }
0x5f2e   :  { %7319 = vmatprep.subr.bf16.mxu0 %v8269_v0 }
0x5fff   :  { %v4773_v6 = vpop.f32.mrb[42].mxu0 }
0x6000   :  { %v4777_v11 = vadd.f32 %v4773_v6, %v9274_v14  ;;  %v7027_v15 = vpop.f32.mrb[43].mxu0 }
0x6002   :  { %7665 = vtanh.f32 %v4777_v11  ;;  %v6406_v19 = vmul.f32 -1.442695, %v4777_v11 }
0x6004   :  { %7667 = vpow2.f32 %v6406_v19 }
0x600c   :  { %v7666_v16 = vpop.eup %7665 }
0x600d   :  { %4790 = vrot.lane.b32.xlu0 %v7666_v16, %s8273_s9 }
0x600e   :  { %v7668_v20 = vpop.eup %7667 }
0x600f   :  { %v4781_v21 = vadd.f32 1.0, %v7668_v20 }
0x6011   :  { %7669 = vrcp.f32 %v4781_v21 }
0x601b   :  { %v7670_v22 = vpop.eup %7669 }
0x601c   :  { %v4788_v27 = vmul.f32 %v7670_v22, %v4786_v25 }
0x607f   :  { %v4791_v23 = vpop.permute.xlu0 %4790 }
0x6080   :  { %v4793_v24 = vmul.f32 %v7670_v22, %v4791_v23 }
0x6082   :  { %4795 = vrot.lane.b32.xlu1 %v4793_v24, %s8274_s3 }
0x60f4   :  { %v4796_v8 = vpop.permute.xlu1 %4795 }
0x60f5   :  { %v4798_v32 = vadd.f32 %v4796_v8, %v4788_v27 }
0x60f7   :  { %7671 = vtanh.f32 %v4798_v32  ;;  %v4892_v43 = vrot.slane %v4798_v32, 6 }
0x6101   :  { %v7672_v33 = vpop.eup %7671 }
0x6102   :  { %4801 = vrot.lane.b32.xlu0 %v7672_v33, %s9675_s21 }
0x6174   :  { %v4802_v34 = vpop.permute.xlu0 %4801 }
0x6175   :  { %v4804_v36 = vmul.f32 %v7670_v22, %v4802_v34 }
0x6177   :  { %4806 = vrot.lane.b32.xlu1 %v4804_v36, %s8275_s25 }
0x61e9   :  { %v9338_v13 = vpop.permute.xlu1 %4806 }
0x61ea   :  { %7033 = vmatmul.mubr.msk.f32.vlgmr.msra.gmra.mrb[42].mxu1 %vm2361_vm5, %v9338_v13 }
0x61eb   :  { %7318 = vmatpush3.bf16.msra.mxu1 %v9245_v18  ;;  %7046 = vmatprep.mubr.msk.f32.mxu1 %vm8270_vm0, %v8271_v1 }
0x61ec   :  { %7322 = vmatprep.subr.bf16.mxu1 %v8269_v0 }
0x62bd   :  { %v4876_v2 = vpop.f32.mrb[42].mxu1 }
0x62be   :  { %v4881_v38 = vrot.slane %v4876_v2, 6  ;;  %v7034_v39 = vpop.f32.mrb[43].mxu1 }
0x62c0   :  { %v4883_v60 = vadd.f32 %v4881_v38, %v9274_v14 }
0x62c2   :  { %7673 = vtanh.f32 %v4883_v60  ;;  %v6408_v40 = vmul.f32 -1.442695, %v4883_v60 }
0x62c4   :  { %7675 = vpow2.f32 %v6408_v40 }
0x62cc   :  { %v7674_v3 = vpop.eup %7673 }
0x62cd   :  { %4896 = vrot.lane.b32.xlu0 %v7674_v3, %s8273_s9 }
0x62ce   :  { %v7676_v41 = vpop.eup %7675 }
0x62cf   :  { %v4887_v42 = vadd.f32 1.0, %v7676_v41 }
0x62d1   :  { %7677 = vrcp.f32 %v4887_v42 }
0x62db   :  { %v7678_v18 = vpop.eup %7677 }
0x62dc   :  { %v4894_v50 = vmul.f32 %v7678_v18, %v4892_v43 }
0x633f   :  { %v4897_v29 = vpop.permute.xlu0 %4896 }
0x6340   :  { %v4899_v4 = vmul.f32 %v7678_v18, %v4897_v29 }
0x6342   :  { %4901 = vrot.lane.b32.xlu1 %v4899_v4, %s8274_s3 }
0x63b4   :  { %v4902_v44 = vpop.permute.xlu1 %4901 }
0x63b5   :  { %v4904_v45 = vadd.f32 %v4902_v44, %v4894_v50 }
0x63b7   :  { %7679 = vtanh.f32 %v4904_v45  ;;  %v4999_v23 = vrot.slane %v4904_v45, 6 }
0x63c1   :  { %v7680_v28 = vpop.eup %7679 }
0x63c2   :  { %4907 = vrot.lane.b32.xlu0 %v7680_v28, %s9675_s21 }
0x6434   :  { %v4908_v49 = vpop.permute.xlu0 %4907 }
0x6435   :  { %v9350_v26 = vmul.f32 %v7678_v18, %v4908_v49 }
0x6437   :  { %v4912_v52 = vrot.slane %v9350_v26, 2 }
0x6439   :  { %4913 = vrot.lane.b32.xlu1 %v4912_v52, %s8275_s25 }
0x64ab   :  { %v4914_v54 = vpop.permute.xlu1 %4913 }
0x64ac   :  { %7040 = vmatmul.mubr.msk.f32.vlgmr.msra.gmra.mrb[44].mxu0 %vm2361_vm5, %v4914_v54 }
0x64ad   :  { %7321 = vmatpush3.bf16.msra.mxu0 %v9354_v10  ;;  %7053 = vmatprep.mubr.msk.f32.mxu0 %vm8270_vm0, %v8271_v1 }
0x64ae   :  { %7325 = vmatprep.subr.bf16.mxu0 %v8269_v0 }
0x64b0   :  { %7054 = vmatmul.mubr.f32.vlgmr.msra.gmra.mrb[46].mxu0 %v8271_v1 }
0x64b1   :  { %7327 = vmatpush3.bf16.msra.mxu0 %v9354_v10  ;;  %7067 = vmatprep.mubr.msk.f32.mxu0 %vm8270_vm0, %v8271_v1 }
0x64b2   :  { %7331 = vmatprep.subr.bf16.mxu0 %v8269_v0 }
0x657f   :  { %v4983_v55 = vpop.f32.mrb[44].mxu0 }
0x6580   :  { %v4988_v56 = vrot.slane %v4983_v55, 4  ;;  %v7041_v57 = vpop.f32.mrb[45].mxu0 }
0x6582   :  { %v4990_v58 = vadd.f32 %v4988_v56, %v9274_v14 }
0x6583   :  { %v5193_v9 = vpop.f32.mrb[46].mxu0 }
0x6584   :  { %7681 = vtanh.f32 %v4990_v58  ;;  %v5198_v59 = vrot.slane %v5193_v9, 2  ;;  %v7055_v61 = vpop.f32.mrb[47].mxu0  ;;  %v6410_v53 = vmul.f32 -1.442695, %v4990_v58 }
0x6586   :  { %v5200_v62 = vadd.f32 %v5198_v59, %v9369_v35 }
0x6588   :  { %7683 = vtanh.f32 %v5200_v62  ;;  %v6413_v7 = vmul.f32 -1.442695, %v5200_v62 }
0x6589   :  { %7685 = vpow2.f32 %v6410_v53 }
0x658a   :  { %7687 = vpow2.f32 %v6413_v7 }
0x658e   :  { %v7682_v37 = vpop.eup %7681 }
0x658f   :  { %5003 = vrot.lane.b32.xlu0 %v7682_v37, %s8273_s9 }
0x6592   :  { %v7684_v63 = vpop.eup %7683 }
0x6593   :  { %5210 = vrot.lane.b32.xlu1 %v7684_v63, %s8273_s9  ;;  %v7686_v6 = vpop.eup %7685 }
0x6594   :  { %v4994_v11 = vadd.f32 1.0, %v7686_v6  ;;  %v7688_v46 = vpop.eup %7687 }
0x6595   :  { %v5204_v5 = vadd.f32 1.0, %v7688_v46 }
0x6596   :  { %7689 = vrcp.f32 %v4994_v11 }
0x6597   :  { %7691 = vrcp.f32 %v5204_v5 }
0x65a0   :  { %v7690_v15 = vpop.eup %7689 }
0x65a1   :  { %v7692_v20 = vpop.eup %7691  ;;  %v5001_v24 = vmul.f32 %v7690_v15, %v4999_v23 }
0x65a2   :  { %v5208_v8 = vmul.f32 0.0, %v7692_v20 }
0x6601   :  { %v5004_v16 = vpop.permute.xlu0 %5003 }
0x6602   :  { %v5006_v19 = vmul.f32 %v7690_v15, %v5004_v16 }
0x6604   :  { %5008 = vrot.lane.b32.xlu0 %v5006_v19, %s8274_s3 }
0x6605   :  { %v5211_v21 = vpop.permute.xlu1 %5210 }
0x6606   :  { %v5213_v22 = vmul.f32 %v7692_v20, %v5211_v21 }
0x6608   :  { %5215 = vrot.lane.b32.xlu1 %v5213_v22, %s8274_s3 }
0x6676   :  { %v5009_v25 = vpop.permute.xlu0 %5008 }
0x6677   :  { %v9376_v27 = vadd.f32 %v5009_v25, %v5001_v24 }
0x6679   :  { %7693 = vtanh.f32 %v9376_v27 }
0x667a   :  { %v5216_v32 = vpop.permute.xlu1 %5215 }
0x667b   :  { %v5218_v33 = vadd.f32 %v5216_v32, %v5208_v8 }
0x667d   :  { %7695 = vtanh.f32 %v5218_v33  ;;  %v5313_v55 = vrot.slane %v5218_v33, 2 }
0x6683   :  { %v7694_v34 = vpop.eup %7693 }
0x6684   :  { %5014 = vrot.lane.b32.xlu0 %v7694_v34, %s9675_s21 }
0x6687   :  { %v7696_v36 = vpop.eup %7695 }
0x6688   :  { %5221 = vrot.lane.b32.xlu1 %v7696_v36, %s9675_s21 }
0x66f6   :  { %v5015_v2 = vpop.permute.xlu0 %5014 }
0x66f7   :  { %v9381_v38 = vmul.f32 %v7690_v15, %v5015_v2 }
0x66f9   :  { %v5019_v39 = vrot.slane %v9381_v38, 4 }
0x66fa   :  { %v5222_v60 = vpop.permute.xlu1 %5221 }
0x66fb   :  { %v9384_v3 = vmul.f32 %v7692_v20, %v5222_v60  ;;  %5020 = vrot.lane.b32.xlu0 %v5019_v39, %s8275_s25 }
0x66fd   :  { %v5226_v40 = vrot.slane %v9384_v3, 6 }
0x66ff   :  { %5227 = vrot.lane.b32.xlu1 %v5226_v40, %s8275_s25 }
0x676d   :  { %v5021_v41 = vpop.permute.xlu0 %5020 }
0x676e   :  { %7047 = vmatmul.mubr.msk.f32.vlgmr.msra.gmra.mrb[44].mxu1 %vm2361_vm5, %v5021_v41 }
0x676f   :  { %7324 = vmatpush3.bf16.msra.mxu1 %v9354_v10  ;;  %7060 = vmatprep.mubr.msk.f32.mxu1 %vm8270_vm0, %v8271_v1 }
0x6770   :  { %7328 = vmatprep.subr.bf16.mxu1 %v8269_v0 }
0x6771   :  { %v5228_v42 = vpop.permute.xlu1 %5227 }
0x6772   :  { %7061 = vmatmul.mubr.msk.f32.vlgmr.msra.gmra.mrb[46].mxu1 %vm2361_vm5, %v5228_v42 }
0x6773   :  { %7330 = vmatpush3.bf16.msra.mxu1 %v9354_v10  ;;  %7074 = vmatprep.mubr.msk.f32.mxu1 %vm8270_vm0, %v8271_v1 }
0x6774   :  { %7334 = vmatprep.subr.bf16.mxu1 %v8269_v0 }
0x6841   :  { %v9399_v18 = vpop.f32.mrb[44].mxu1 }
0x6842   :  { %v7048_v29 = vpop.f32.mrb[45].mxu1 }
0x6845   :  { %v5297_v4 = vpop.f32.mrb[46].mxu1 }
0x6846   :  { %v5302_v43 = vrot.slane %v5297_v4, 4  ;;  %v7062_v50 = vpop.f32.mrb[47].mxu1 }
0x6848   :  { %v5304_v44 = vadd.f32 %v5302_v43, %v9369_v35 }
0x684a   :  { %7697 = vtanh.f32 %v5304_v44  ;;  %v6415_v28 = vmul.f32 -1.442695, %v5304_v44 }
0x684c   :  { %7699 = vpow2.f32 %v6415_v28 }
0x6854   :  { %v7698_v45 = vpop.eup %7697 }
0x6855   :  { %5317 = vrot.lane.b32.xlu0 %v7698_v45, %s8273_s9 }
0x6856   :  { %v7700_v49 = vpop.eup %7699 }
0x6857   :  { %v5308_v52 = vadd.f32 1.0, %v7700_v49 }
0x6859   :  { %7701 = vrcp.f32 %v5308_v52 }
0x6863   :  { %v7702_v17 = vpop.eup %7701 }
0x6864   :  { %v5315_v56 = vmul.f32 %v7702_v17, %v5313_v55 }
0x68c7   :  { %v5318_v51 = vpop.permute.xlu0 %5317 }
0x68c8   :  { %v5320_v54 = vmul.f32 %v7702_v17, %v5318_v51 }
0x68ca   :  { %5322 = vrot.lane.b32.xlu1 %v5320_v54, %s8274_s3 }
0x693c   :  { %v5323_v57 = vpop.permute.xlu1 %5322 }
0x693d   :  { %v5325_v58 = vadd.f32 %v5323_v57, %v5315_v56 }
0x693f   :  { %7703 = vtanh.f32 %v5325_v58  ;;  %v5420_v21 = vrot.slane %v5325_v58, 2 }
0x6949   :  { %v7704_v9 = vpop.eup %7703 }
0x694a   :  { %5328 = vrot.lane.b32.xlu0 %v7704_v9, %s9675_s21 }
0x69bc   :  { %v5329_v59 = vpop.permute.xlu0 %5328 }
0x69bd   :  { %v9405_v61 = vmul.f32 %v7702_v17, %v5329_v59 }
0x69bf   :  { %v5333_v62 = vrot.slane %v9405_v61, 4 }
0x69c1   :  { %5334 = vrot.lane.b32.xlu1 %v5333_v62, %s8275_s25 }
0x6a33   :  { %v5335_v37 = vpop.permute.xlu1 %5334 }
0x6a34   :  { %7068 = vmatmul.mubr.msk.f32.vlgmr.msra.gmra.mrb[48].mxu0 %vm2361_vm5, %v5335_v37 }
0x6a35   :  { %7333 = vmatpush3.bf16.msra.mxu0 %v9354_v10  ;;  %7081 = vmatprep.mubr.msk.f32.mxu0 %vm8270_vm0, %v8271_v1 }
0x6a36   :  { %7337 = vmatprep.subr.bf16.mxu0 %v8269_v0 }
0x6b07   :  { %v5404_v63 = vpop.f32.mrb[48].mxu0 }
0x6b08   :  { %v5409_v53 = vrot.slane %v5404_v63, 6  ;;  %v7069_v7 = vpop.f32.mrb[49].mxu0 }
0x6b0a   :  { %v5411_v6 = vadd.f32 %v5409_v53, %v9369_v35 }
0x6b0c   :  { %7705 = vtanh.f32 %v5411_v6  ;;  %v6417_v46 = vmul.f32 -1.442695, %v5411_v6 }
0x6b0e   :  { %7707 = vpow2.f32 %v6417_v46 }
0x6b16   :  { %v7706_v11 = vpop.eup %7705 }
0x6b17   :  { %5424 = vrot.lane.b32.xlu0 %v7706_v11, %s8273_s9 }
0x6b18   :  { %v7708_v5 = vpop.eup %7707 }
0x6b19   :  { %v5415_v15 = vadd.f32 1.0, %v7708_v5 }
0x6b1b   :  { %7709 = vrcp.f32 %v5415_v15 }
0x6b25   :  { %v7710_v16 = vpop.eup %7709 }
0x6b26   :  { %v5422_v22 = vmul.f32 %v7710_v16, %v5420_v21 }
0x6b89   :  { %v5425_v19 = vpop.permute.xlu0 %5424 }
0x6b8a   :  { %v5427_v20 = vmul.f32 %v7710_v16, %v5425_v19 }
0x6b8c   :  { %5429 = vrot.lane.b32.xlu1 %v5427_v20, %s8274_s3 }
0x6bfe   :  { %v5430_v23 = vpop.permute.xlu1 %5429 }
0x6bff   :  { %v5432_v24 = vadd.f32 %v5430_v23, %v5422_v22 }
0x6c01   :  { %7711 = vtanh.f32 %v5432_v24  ;;  %v5524_v50 = vrot.slane %v5432_v24, 2 }
0x6c0b   :  { %v7712_v25 = vpop.eup %7711 }
0x6c0c   :  { %5435 = vrot.lane.b32.xlu0 %v7712_v25, %s9675_s21 }
0x6c7e   :  { %v5436_v8 = vpop.permute.xlu0 %5435 }
0x6c7f   :  { %v9418_v32 = vmul.f32 %v7710_v16, %v5436_v8 }
0x6c81   :  { %v5440_v33 = vrot.slane %v9418_v32, 2 }
0x6c83   :  { %5441 = vrot.lane.b32.xlu1 %v5440_v33, %s8275_s25 }
0x6cf5   :  { %v5442_v34 = vpop.permute.xlu1 %5441 }
0x6cf6   :  { %7075 = vmatmul.mubr.msk.f32.vlgmr.msra.gmra.mrb[48].mxu1 %vm2361_vm5, %v5442_v34 }
0x6cf7   :  { %7336 = vmatpush3.bf16.msra.mxu1 %v9354_v10  ;;  %7088 = vmatprep.mubr.msk.f32.mxu1 %vm8270_vm0, %v8271_v1 }
0x6cf8   :  { %7340 = vmatprep.subr.bf16.mxu1 %v8269_v0 }
0x6dc9   :  { %v5511_v36 = vpop.f32.mrb[48].mxu1 }
0x6dca   :  { %v5515_v2 = vadd.f32 %v5511_v36, %v9369_v35  ;;  %v7076_v39 = vpop.f32.mrb[49].mxu1 }
0x6dcc   :  { %7713 = vtanh.f32 %v5515_v2  ;;  %v6419_v40 = vmul.f32 -1.442695, %v5515_v2 }
0x6dce   :  { %7715 = vpow2.f32 %v6419_v40 }
0x6dd6   :  { %v7714_v60 = vpop.eup %7713 }
0x6dd7   :  { %5528 = vrot.lane.b32.xlu0 %v7714_v60, %s8273_s9 }
0x6dd8   :  { %v7716_v41 = vpop.eup %7715 }
0x6dd9   :  { %v5519_v42 = vadd.f32 1.0, %v7716_v41 }
0x6ddb   :  { %7717 = vrcp.f32 %v5519_v42 }
0x6de5   :  { %v7718_v29 = vpop.eup %7717 }
0x6de6   :  { %v5526_v0 = vmul.f32 %v7718_v29, %v5524_v50 }
0x6e49   :  { %v5529_v4 = vpop.permute.xlu0 %5528 }
0x6e4a   :  { %v5531_v43 = vmul.f32 %v7718_v29, %v5529_v4 }
0x6e4c   :  { %5533 = vrot.lane.b32.xlu1 %v5531_v43, %s8274_s3 }
0x6ebe   :  { %v5534_v44 = vpop.permute.xlu1 %5533 }
0x6ebf   :  { %v5536_v45 = vadd.f32 %v5534_v44, %v5526_v0 }
0x6ec1   :  { %7719 = vtanh.f32 %v5536_v45  ;;  %v5630_v63 = vrot.slane %v5536_v45, 2 }
0x6ecb   :  { %v7720_v35 = vpop.eup %7719 }
0x6ecc   :  { %5539 = vrot.lane.b32.xlu0 %v7720_v35, %s9675_s21 }
0x6f3e   :  { %v5540_v28 = vpop.permute.xlu0 %5539 }
0x6f3f   :  { %v9431_v49 = vmul.f32 %v7718_v29, %v5540_v28 }
0x6f41   :  { %5544 = vrot.lane.b32.xlu1 %v9431_v49, %s8275_s25 }
0x6fb3   :  { %v5545_v52 = vpop.permute.xlu1 %5544 }
0x6fb4   :  { %7082 = vmatmul.mubr.msk.f32.vlgmr.msra.gmra.mrb[50].mxu0 %vm2361_vm5, %v5545_v52 }
0x6fb5   :  { %7339 = vmatpush3.bf16.msra.mxu0 %v9354_v10  ;;  %7095 = vmatprep.mubr.msk.f32.mxu0 %vm8270_vm0, %v8271_v1 }
0x7087   :  { %v5614_v17 = vpop.f32.mrb[50].mxu0 }
0x7088   :  { %v5619_v51 = vrot.slane %v5614_v17, 2  ;;  %v7083_v54 = vpop.f32.mrb[51].mxu0 }
0x708a   :  { %v5621_v55 = vadd.f32 %v5619_v51, %v9279_v48 }
0x708c   :  { %7721 = vtanh.f32 %v5621_v55  ;;  %v6421_v57 = vmul.f32 -1.442695, %v5621_v55  ;;  %v5095_v55 = vrot.slane %v9399_v18, 2 }
0x708e   :  { %7723 = vpow2.f32 %v6421_v57 }
0x7096   :  { %v7722_v56 = vpop.eup %7721 }
0x7097   :  { %5634 = vrot.lane.b32.xlu0 %v7722_v56, %s8273_s9 }
0x7098   :  { %v7724_v58 = vpop.eup %7723 }
0x7099   :  { %v5625_v9 = vadd.f32 1.0, %v7724_v58 }
0x709b   :  { %7725 = vrcp.f32 %v5625_v9  ;;  %v5097_v9 = vadd.f32 %v5095_v55, %v9274_v14  ;;  %v5106_v14 = vrot.slane %v9376_v27, 6 }
0x70a5   :  { %v7726_v59 = vpop.eup %7725 }
0x70a6   :  { %v5632_v53 = vmul.f32 %v7726_v59, %v5630_v63 }
0x7109   :  { %v5635_v62 = vpop.permute.xlu0 %5634 }
0x710a   :  { %v5637_v37 = vmul.f32 %v7726_v59, %v5635_v62 }
0x710c   :  { %5639 = vrot.lane.b32.xlu1 %v5637_v37, %s8274_s3  ;;  %v6412_v37 = vmul.f32 -1.442695, %v5097_v9 }
0x717e   :  { %v5640_v7 = vpop.permute.xlu1 %5639 }
0x717f   :  { %v5642_v6 = vadd.f32 %v5640_v7, %v5632_v53 }
0x7181   :  { %7727 = vtanh.f32 %v5642_v6 }
0x718b   :  { %v7728_v11 = vpop.eup %7727 }
0x718c   :  { %5645 = vrot.lane.b32.xlu0 %v7728_v11, %s9675_s21 }
0x71fe   :  { %v5646_v46 = vpop.permute.xlu0 %5645 }
0x71ff   :  { %v9443_v5 = vmul.f32 %v7726_v59, %v5646_v46 }
0x7201   :  { %v5650_v15 = vrot.slane %v9443_v5, 6 }
0x7203   :  { %5651 = vrot.lane.b32.xlu1 %v5650_v15, %s8275_s25 }
0x7275   :  { %v5652_v16 = vpop.permute.xlu1 %5651 }
0x7276   :  { %7089 = vmatmul.mubr.msk.f32.vlgmr.msra.gmra.mrb[50].mxu1 %vm2361_vm5, %v5652_v16 }
0x7277   :  { %7342 = vmatpush3.bf16.msra.mxu1 %v9354_v10  ;;  %7102 = vmatprep.mubr.msk.f32.mxu1 %vm8270_vm0, %v8271_v1  ;;  %v5737_v1 = vrot.slane %v5642_v6, 2 }
0x7349   :  { %v5721_v19 = vpop.f32.mrb[50].mxu1 }
0x734a   :  { %v5726_v20 = vrot.slane %v5721_v19, 4  ;;  %v7090_v21 = vpop.f32.mrb[51].mxu1 }
0x734c   :  { %v5728_v22 = vadd.f32 %v5726_v20, %v9279_v48 }
0x734e   :  { %7729 = vtanh.f32 %v5728_v22  ;;  %v6423_v24 = vmul.f32 -1.442695, %v5728_v22 }
0x7350   :  { %7731 = vpow2.f32 %v6423_v24 }
0x7358   :  { %v7730_v23 = vpop.eup %7729 }
0x7359   :  { %5741 = vrot.lane.b32.xlu0 %v7730_v23, %s8273_s9 }
0x735a   :  { %v7732_v25 = vpop.eup %7731 }
0x735b   :  { %v5732_v8 = vadd.f32 1.0, %v7732_v25 }
0x735d   :  { %7733 = vrcp.f32 %v5732_v8 }
0x7367   :  { %v7734_v33 = vpop.eup %7733 }
0x7368   :  { %v5739_v36 = vmul.f32 %v7734_v33, %v5737_v1 }
0x73cb   :  { %v5742_v34 = vpop.permute.xlu0 %5741 }
0x73cc   :  { %v5744_v10 = vmul.f32 %v7734_v33, %v5742_v34 }
0x73ce   :  { %5746 = vrot.lane.b32.xlu1 %v5744_v10, %s8274_s3 }
0x7440   :  { %v5747_v2 = vpop.permute.xlu1 %5746 }
0x7441   :  { %v5749_v39 = vadd.f32 %v5747_v2, %v5739_v36 }
0x7443   :  { %7735 = vtanh.f32 %v5749_v39  ;;  %v5844_v54 = vrot.slane %v5749_v39, 2  ;;  %v8277_v39 = vmov 1966171168  }
0x744d   :  { %v7736_v60 = vpop.eup %7735 }
0x744e   :  { %5752 = vrot.lane.b32.xlu0 %v7736_v60, %s9675_s21  ;;  %v6023_v60 = vunpack.c.l.s4 %v8277_v39 }
0x74c0   :  { %v5753_v40 = vpop.permute.xlu0 %5752 }
0x74c1   :  { %v9455_v41 = vmul.f32 %v7734_v33, %v5753_v40 }
0x74c3   :  { %v5757_v42 = vrot.slane %v9455_v41, 4 }
0x74c5   :  { %5758 = vrot.lane.b32.xlu1 %v5757_v42, %s8275_s25 }
0x7537   :  { %v5759_v29 = vpop.permute.xlu1 %5758 }
0x7538   :  { %7096 = vmatmul.mubr.msk.f32.vlgmr.msra.gmra.mrb[52].mxu0 %vm2361_vm5, %v5759_v29  ;;  %v6024_v29 = vunpack.c.0.s8 %v6023_v60 }
0x760b   :  { %v5828_v4 = vpop.f32.mrb[52].mxu0 }
0x760c   :  { %v5833_v43 = vrot.slane %v5828_v4, 6  ;;  %v7097_v50 = vpop.f32.mrb[53].mxu0 }
0x760e   :  { %v5835_v0 = vadd.f32 %v5833_v43, %v9279_v48 }
0x7610   :  { %7737 = vtanh.f32 %v5835_v0  ;;  %v6425_v45 = vmul.f32 -1.442695, %v5835_v0 }
0x7612   :  { %7739 = vpow2.f32 %v6425_v45 }
0x761a   :  { %v7738_v44 = vpop.eup %7737 }
0x761b   :  { %5848 = vrot.lane.b32.xlu0 %v7738_v44, %s8273_s9 }
0x761c   :  { %v7740_v35 = vpop.eup %7739 }
0x761d   :  { %v5839_v28 = vadd.f32 1.0, %v7740_v35 }
0x761f   :  { %7741 = vrcp.f32 %v5839_v28 }
0x7629   :  { %v7742_v52 = vpop.eup %7741 }
0x762a   :  { %v5846_v56 = vmul.f32 %v7742_v52, %v5844_v54 }
0x768d   :  { %v5849_v17 = vpop.permute.xlu0 %5848 }
0x768e   :  { %v5851_v51 = vmul.f32 %v7742_v52, %v5849_v17 }
0x7690   :  { %5853 = vrot.lane.b32.xlu1 %v5851_v51, %s8274_s3 }
0x7702   :  { %v5854_v57 = vpop.permute.xlu1 %5853 }
0x7703   :  { %v5856_v58 = vadd.f32 %v5854_v57, %v5846_v56 }
0x7705   :  { %7743 = vtanh.f32 %v5856_v58 }
0x7706   :  { %7745 = vtanh.f32 %v5097_v9 }
0x7707   :  { %7747 = vpow2.f32 %v6412_v37 }
0x770f   :  { %v7744_v59 = vpop.eup %7743 }
0x7710   :  { %5859 = vrot.lane.b32.xlu0 %v7744_v59, %s9675_s21  ;;  %v7746_v62 = vpop.eup %7745 }
0x7711   :  { %v7748_v63 = vpop.eup %7747 }
0x7712   :  { %v5101_v53 = vadd.f32 1.0, %v7748_v63 }
0x7714   :  { %5110 = vrot.lane.b32.xlu0 %v7746_v62, %s8273_s9  ;;  %7749 = vrcp.f32 %v5101_v53 }
0x771e   :  { %v7750_v11 = vpop.eup %7749 }
0x771f   :  { %v5108_v19 = vmul.f32 %v7750_v11, %v5106_v14 }
0x7782   :  { %v5860_v7 = vpop.permute.xlu0 %5859 }
0x7783   :  { %v5862_v18 = vmul.f32 %v7742_v52, %v5860_v7 }
0x7785   :  { %v5864_v6 = vrot.slane %v5862_v18, 2 }
0x7786   :  { %v5111_v46 = vpop.permute.xlu0 %5110 }
0x7787   :  { %v5113_v15 = vmul.f32 %v7750_v11, %v5111_v46  ;;  %5865 = vrot.lane.b32.xlu1 %v5864_v6, %s8275_s25 }
0x7789   :  { %5115 = vrot.lane.b32.xlu0 %v5113_v15, %s8274_s3 }
0x77f9   :  { %v5866_v16 = vpop.permute.xlu1 %5865 }
0x77fa   :  { %7103 = vmatmul.mubr.msk.f32.vlgmr.msra.gmra.mrb[52].mxu1 %vm2361_vm5, %v5866_v16 }
0x77fb   :  { %v5116_v20 = vpop.permute.xlu0 %5115 }
0x77fc   :  { %v5118_v21 = vadd.f32 %v5116_v20, %v5108_v19 }
0x77fe   :  { %7751 = vtanh.f32 %v5118_v21 }
0x7808   :  { %v7752_v22 = vpop.eup %7751 }
0x7809   :  { %5121 = vrot.lane.b32.xlu0 %v7752_v22, %s9675_s21 }
0x780d   :  { %5987 = vrot.lane.b32.xlu0 %v9324_v31, %s8275_s25 }
0x787b   :  { %v5122_v23 = vpop.permute.xlu0 %5121 }
0x787c   :  { %v5124_v24 = vmul.f32 %v7750_v11, %v5122_v23 }
0x787e   :  { %6014 = vrot.lane.b32.xlu0 %v5124_v24, %s8275_s25 }
0x7882   :  { %5973 = vrot.lane.b32.xlu0 %v9298_v30, %s8275_s25 }
0x7886   :  { %5980 = vrot.lane.b32.xlu0 %v9311_v47, %s8275_s25 }
0x788a   :  { %5999 = vrot.lane.b32.xlu0 %v9350_v26, %s8275_s25  ;;  %v5948_v26 = vrot.slane %v5856_v58, 2 }
0x788e   :  { %6006 = vrot.lane.b32.xlu0 %v9381_v38, %s8275_s25 }
0x78cd   :  { %v5935_v27 = vpop.f32.mrb[52].mxu1 }
0x78ce   :  { %v5939_v25 = vadd.f32 %v5935_v27, %v9279_v48  ;;  %v7104_v31 = vpop.f32.mrb[53].mxu1 }
0x78d0   :  { %7753 = vtanh.f32 %v5939_v25  ;;  %v6427_v33 = vmul.f32 -1.442695, %v5939_v25 }
0x78d2   :  { %7755 = vpow2.f32 %v6427_v33 }
0x78da   :  { %v7754_v8 = vpop.eup %7753 }
0x78db   :  { %5952 = vrot.lane.b32.xlu1 %v7754_v8, %s8273_s9 }
0x78dc   :  { %v7756_v30 = vpop.eup %7755 }
0x78dd   :  { %v5943_v34 = vadd.f32 1.0, %v7756_v30 }
0x78df   :  { %7757 = vrcp.f32 %v5943_v34 }
0x78e9   :  { %v7758_v47 = vpop.eup %7757 }
0x78ea   :  { %v5950_v38 = vmul.f32 %v7758_v47, %v5948_v26 }
0x794d   :  { %v5953_v10 = vpop.permute.xlu1 %5952 }
0x794e   :  { %v5955_v1 = vmul.f32 %v7758_v47, %v5953_v10 }
0x7950   :  { %5957 = vrot.lane.b32.xlu1 %v5955_v1, %s8274_s3 }
0x79c2   :  { %v5958_v36 = vpop.permute.xlu1 %5957 }
0x79c3   :  { %v9486_v2 = vadd.f32 %v5958_v36, %v5950_v38 }
0x79c5   :  { %7759 = vtanh.f32 %v9486_v2 }
0x79cf   :  { %v7760_v48 = vpop.eup %7759 }
0x79d0   :  { %5963 = vrot.lane.b32.xlu1 %v7760_v48, %s9675_s21  ;;  %s8278_s21 = smov [#allocation32]  }
0x79d1   :  { %s6284_s0 = sshll.u32 %s8278_s21, 4  ;;  %s6285_s0 = int_to_ptr.vmem [resolvable:$true] %s6284_s0 }
0x79d2   :  { %s8157_s19 = scalar_lea.vmem %s6285_s0, 32  ;;  %p8162_p5 = scmp.lt.s32.totalorder %s6285_s0, %s6285_s0 }
0x79d3   :  { %p8158_p4 = scmp.ne.s32.totalorder %s6285_s0, %s8157_s19  ;;  %p8163_p6 = scmp.lt.s32.totalorder %s8157_s19, %s8157_s19 }
0x79d4   :  { %5990 = vrot.lane.b32.xlu1 %v9443_v5, %s8273_s9  ;;  %v5988_v5 = vpop.permute.xlu0 %5987 }
0x79d5   :  { %p8164_p7 = por %p8163_p6, %p8162_p5 }
0x79d7   :  { %p8165_p8 = pnand %p8164_p7, %p8158_p4 }
0x79d8   :  { %6017 = vrot.lane.b32.xlu1 %v9384_v3, %s8273_s9  ;;  %v6025_v3 = vlaneseq  ;;  %v9503_v40 = vpop.permute.xlu0 %6014 }
0x79dc   :  { %5976 = vrot.lane.b32.xlu1 %v5862_v18, %s8273_s9  ;;  %v5974_v50 = vpop.permute.xlu0 %5973 }
0x79e0   :  { %5983 = vrot.lane.b32.xlu1 %v9455_v41, %s8273_s9  ;;  %v6026_v41 = vshrl.u32 %v6025_v3, 7  ;;  %v5981_v51 = vpop.permute.xlu0 %5980 }
0x79e4   :  { %6002 = vrot.lane.b32.xlu1 %v9418_v32, %s8273_s9  ;;  %v9506_v32 = vsub.s32 %v6024_v29, %v6026_v41  ;;  %v6000_v46 = vpop.permute.xlu0 %5999 }
0x79e8   :  { %6009 = vrot.lane.b32.xlu1 %v9405_v61, %s8273_s9  ;;  %v6007_v31 = vpop.permute.xlu0 %6006 }
0x79ec   :  { %5995 = vrot.lane.b32.xlu1 %v9431_v49, %s8273_s9 }
0x79f0   :  { %6258 = vrot.lane.b32.xlu1 %v5118_v21, %s8276_s20 }
0x7a42   :  { %v5964_v42 = vpop.permute.xlu1 %5963 }
0x7a43   :  { %v5966_v4 = vmul.f32 %v7758_v47, %v5964_v42  ;;  %v6262_v42 = vrot.slane %v9486_v2, 2 }
0x7a45   :  { %5969 = vrot.lane.b32.xlu0 %v5966_v4, %s8273_s9  ;;  %v6250_v43 = vrot.slane %v5966_v4, 2 }
0x7a46   :  { %v5991_v61 = vpop.permute.xlu1 %5990 }
0x7a47   :  { %v5993_v49 = vsel %vm2361_vm5, %v5988_v5, %v5991_v61 }
0x7a48   :  { %v6107_v0 = vcombine.high %v5993_v49, %v5993_v49 }
0x7a49   :  { %6251 = vrot.lane.b32.xlu0 %v6250_v43, %s8273_s9 }
0x7a4a   :  { %v6114_v44 = vrot.slane %v6107_v0, %v9506_v32  ;;  %v6018_v45 = vpop.permute.xlu1 %6017 }
0x7a4b   :  { %v6020_v35 = vsel %vm2361_vm5, %v9503_v40, %v6018_v45 }
0x7a4c   :  { %v6115_v28 = vcombine.high %v6114_v44, %v6114_v44  ;;  %v6122_v52 = vrot.slane %v6114_v44, %v9506_v32  ;;  %v6221_v17 = vcombine.high %v6020_v35, %v6020_v35 }
0x7a4e   :  { %v6129_v54 = vrot.slane %v6115_v28, %v9506_v32  ;;  %v6130_v55 = vcombine.high %v6122_v52, %v6122_v52  ;;  %v6228_v56 = vrot.slane %v6221_v17, %v9506_v32  ;;  %v5977_v57 = vpop.permute.xlu1 %5976 }
0x7a4f   :  { %v5979_v58 = vsel %vm2361_vm5, %v5974_v50, %v5977_v57 }
0x7a50   :  { %v6131_v9 = vcombine.high %v6129_v54, %v6129_v54  ;;  %6134 = vst.msk [vmem:[#allocation31 + $0x3] sm:$0x1] %vm6046_vm6, %v6130_v55  ;;  %v6229_v59 = vcombine.high %v6228_v56, %v6228_v56  ;;  %v6236_v62 = vrot.slane %v6228_v56, %v9506_v32  ;;  %v6056_v37 = vrot.slane %v5979_v58, %v9506_v32 }
0x7a52   :  { %6135 = vst.msk [vmem:[#allocation31 + $0xb] sm:$0x1] %vm6046_vm6, %v6131_v9  ;;  %v6243_v63 = vrot.slane %v6229_v59, %v9506_v32  ;;  %v6244_v53 = vcombine.high %v6236_v62, %v6236_v62  ;;  %v6057_v7 = vcombine.high %v6056_v37, %v6056_v37  ;;  %v6064_v18 = vrot.slane %v6056_v37, %v9506_v32  ;;  %v5984_v6 = vpop.permute.xlu1 %5983 }
0x7a53   :  { %v5986_v11 = vsel %vm2361_vm5, %v5981_v51, %v5984_v6 }
0x7a54   :  { %v6245_v15 = vcombine.high %v6243_v63, %v6243_v63  ;;  %6248 = vst.msk [vmem:[#allocation31 + $0x7] sm:$0x1] %vm6046_vm6, %v6244_v53  ;;  %v6071_v14 = vrot.slane %v6057_v7, %v9506_v32  ;;  %v6072_v16 = vcombine.high %v6064_v18, %v6064_v18  ;;  %v6079_v19 = vcombine.high %v5986_v11, %v5986_v11 }
0x7a56   :  { %6249 = vst.msk [vmem:[#allocation31 + $0xf] sm:$0x1] %vm6046_vm6, %v6245_v15  ;;  %v6073_v20 = vcombine.high %v6071_v14, %v6071_v14  ;;  %6076 = vst.msk [vmem:[#allocation31 + $0x1] sm:$0x1] %vm6046_vm6, %v6072_v16  ;;  %v6086_v21 = vrot.slane %v6079_v19, %v9506_v32  ;;  %v6003_v22 = vpop.permute.xlu1 %6002 }
0x7a57   :  { %v6005_v23 = vsel %vm2361_vm5, %v6000_v46, %v6003_v22 }
0x7a58   :  { %6077 = vst.msk [vmem:[#allocation31 + $0x9] sm:$0x1] %vm6046_vm6, %v6073_v20  ;;  %v6087_v24 = vcombine.high %v6086_v21, %v6086_v21  ;;  %v6094_v27 = vrot.slane %v6086_v21, %v9506_v32  ;;  %v6170_v25 = vrot.slane %v6005_v23, %v9506_v32 }
0x7a5a   :  { %v6101_v8 = vrot.slane %v6087_v24, %v9506_v32  ;;  %6104 = vst.msk [vmem:[#allocation31 + $0x2] sm:$0x1] %vm6046_vm6, %v6094_v27  ;;  %v6171_v33 = vcombine.high %v6170_v25, %v6170_v25  ;;  %v6178_v30 = vrot.slane %v6170_v25, %v9506_v32  ;;  %v6010_v34 = vpop.permute.xlu1 %6009 }
0x7a5b   :  { %v6012_v47 = vsel %vm2361_vm5, %v6007_v31, %v6010_v34 }
0x7a5c   :  { %6105 = vst.msk [vmem:[#allocation31 + $0xa] sm:$0x1] %vm6046_vm6, %v6101_v8  ;;  %v6185_v10 = vrot.slane %v6171_v33, %v9506_v32  ;;  %v6186_v1 = vcombine.high %v6178_v30, %v6178_v30  ;;  %v6193_v26 = vcombine.high %v6012_v47, %v6012_v47 }
0x7a5e   :  { %v6187_v38 = vcombine.high %v6185_v10, %v6185_v10  ;;  %6190 = vst.msk [vmem:[#allocation31 + $0x5] sm:$0x1] %vm6046_vm6, %v6186_v1  ;;  %v6200_v36 = vrot.slane %v6193_v26, %v9506_v32  ;;  %v5996_v48 = vpop.permute.xlu1 %5995 }
0x7a5f   :  { %v5998_v5 = vsel %vm2361_vm5, %v9338_v13, %v5996_v48 }
0x7a60   :  { %6191 = vst.msk [vmem:[#allocation31 + $0xd] sm:$0x1] %vm6046_vm6, %v6187_v38  ;;  %v6201_v39 = vcombine.high %v6200_v36, %v6200_v36  ;;  %v6208_v60 = vrot.slane %v6200_v36, %v9506_v32  ;;  %v6143_v3 = vrot.slane %v5998_v5, %v9506_v32 }
0x7a62   :  { %v6215_v29 = vrot.slane %v6201_v39, %v9506_v32  ;;  %6218 = vst.msk [vmem:[#allocation31 + $0x6] sm:$0x1] %vm6046_vm6, %v6208_v60  ;;  %v6144_v41 = vcombine.high %v6143_v3, %v6143_v3  ;;  %v6151_v4 = vrot.slane %v6143_v3, %v9506_v32  ;;  %v6259_v61 = vpop.permute.xlu1 %6258 }
0x7a63   :  { %v6264_v13 = vsel %vm2361_vm5, %v6259_v61, %v6262_v42 }
0x7a64   :  { %6219 = vst.msk [vmem:[#allocation31 + $0xe] sm:$0x1] %vm6046_vm6, %v6215_v29  ;;  %v6158_v43 = vrot.slane %v6144_v41, %v9506_v32  ;;  %6161 = vst.msk [vmem:[#allocation31 + $0x4] sm:$0x1] %vm6046_vm6, %v6151_v4 }
0x7a65   :  { %6265 = vst.msk [vmem:[#allocation34 - $0x6] sm:$0xc0] %vm6255_vm7, %v6264_v13 }
0x7a66   :  { %6162 = vst.msk [vmem:[#allocation31 + $0xc] sm:$0x1] %vm6046_vm6, %v6158_v43 }
0x7ab7   :  { %v5970_v2 = vpop.permute.xlu0 %5969 }
0x7ab8   :  { %v5972_v49 = vsel %vm2361_vm5, %v9286_v12, %v5970_v2 }
0x7ab9   :  { %v6028_v50 = vrot.slane %v5972_v49, %v9506_v32 }
0x7abb   :  { %v6029_v0 = vcombine.high %v6028_v50, %v6028_v50  ;;  %v6036_v44 = vrot.slane %v6028_v50, %v9506_v32  ;;  %v6252_v45 = vpop.permute.xlu0 %6251 }
0x7abc   :  { %v6254_v35 = vsel %vm2361_vm5, %v9503_v40, %v6252_v45 }
0x7abd   :  { %v6043_v12 = vrot.slane %v6029_v0, %v9506_v32  ;;  %6047 = vst.msk [vmem:[#allocation31] sm:$0x1] %vm6046_vm6, %v6036_v44 }
0x7abe   :  { %6256 = vst.msk [vmem:[#allocation32 - $0x6] sm:$0xc0] %vm6255_vm7, %v6254_v35 }
0x7abf   :  { %8168 = shalt.err (!%p8165_p8)
}
0x7ac0   :  { %s9678_s29 = sld [smem:[#allocation56_spill]] }
0x7ac6   :  { %s8169_s1 = scalar_lea.hbm %s9678_s29, 32 }
0x7ac7   :  { %p8170_p9 = scmp.ne.s32.totalorder %s9678_s29, %s8169_s1  ;;  %p8173_p10 = scmp.lt.u32.totalorder %s8169_s1, %s9678_s29 }
0x7ac9   :  { %p8175_p11 = pnand %p8173_p10, %p8170_p9 }
0x7acb   :  { %8178 = shalt.err (!%p8175_p11)
}
0x7acc   :  { %6287 = dma.vmem_to_hbm [thread:$0]  %s6285_s0, 32, %s9678_s29, [#allocation33]   ;;  %6048 = vst.msk [vmem:[#allocation31 + $0x8] sm:$0x1] %vm6046_vm6, %v6043_v12 }
0x7acd   :  { %s8179_s25 = scalar_lea.vmem %s9562_s24, 32  ;;  %p8184_p13 = scmp.lt.s32.totalorder %s9562_s24, %s9562_s24 }
0x7ace   :  { %p8180_p12 = scmp.ne.s32.totalorder %s9562_s24, %s8179_s25  ;;  %p8185_p0 = scmp.lt.s32.totalorder %s8179_s25, %s8179_s25 }
0x7ad0   :  { %p8186_p1 = por %p8185_p0, %p8184_p13 }
0x7ad2   :  { %p8187_p2 = pnand %p8186_p1, %p8180_p12 }
0x7ad4   :  { %8190 = shalt.err (!%p8187_p2)
}
0x7ad5   :  { %s9679_s14 = sld [smem:[#allocation57_spill]] }
0x7adb   :  { %s8191_s6 = scalar_lea.hbm %s9679_s14, 32 }
0x7adc   :  { %p8192_p3 = scmp.ne.s32.totalorder %s9679_s14, %s8191_s6  ;;  %p8195_p4 = scmp.lt.u32.totalorder %s8191_s6, %s9679_s14 }
0x7ade   :  { %p8197_p5 = pnand %p8195_p4, %p8192_p3 }
0x7ae0   :  { %8200 = shalt.err (!%p8197_p5)
}
0x7ae1   :  { %6297 = dma.vmem_to_hbm [thread:$0]  %s9562_s24, 32, %s9679_s14, [#allocation33]  }
0x7ae2   :  { %s8201_s20 = scalar_lea.vmem %s9567_s22, 256  ;;  %p8206_p7 = scmp.lt.s32.totalorder %s9567_s22, %s9567_s22 }
0x7ae3   :  { %p8202_p6 = scmp.ne.s32.totalorder %s9567_s22, %s8201_s20  ;;  %p8207_p8 = scmp.lt.s32.totalorder %s8201_s20, %s8201_s20 }
0x7ae5   :  { %p8208_p9 = por %p8207_p8, %p8206_p7 }
0x7ae7   :  { %p8209_p10 = pnand %p8208_p9, %p8202_p6 }
0x7ae9   :  { %8212 = shalt.err (!%p8209_p10)
}
0x7aea   :  { %s9680_s13 = sld [smem:[#allocation55_spill]] }
0x7af0   :  { %s8213_s17 = scalar_lea.hbm %s9680_s13, 256 }
0x7af1   :  { %p8214_p11 = scmp.ne.s32.totalorder %s9680_s13, %s8213_s17  ;;  %p8217_p12 = scmp.lt.u32.totalorder %s8213_s17, %s9680_s13 }
0x7af3   :  { %p8219_p13 = pnand %p8217_p12, %p8214_p11 }
0x7af5   :  { %8222 = shalt.err (!%p8219_p13)
}
0x7af6   :  { %6277 = dma.vmem_to_hbm [thread:$0]  %s9567_s22, 256, %s9680_s13, [#allocation4], %s8251_s30, %s8251_s30, %s8252_s5  }
0x7af7   :  { %8243 = dma.done.wait [#allocation4], 256  }
0x7af8   :  { %8244 = vsyncadd [#allocation4], 4294967040 }
0x7af9   :  { %8245 = dma.done.wait [#allocation33], 64  }
0x7afa   :  { %8246 = vsyncadd [#allocation33], 4294967232 }
0x7afb   :  { %6307 = vsyncpa [#allocation3], 1 }
0x7afc   :  { %6308 = vsyncpa [#allocation6], 1 }
0x7afd   :  { %6309 = vsyncpa [#allocation9], 1 }
0x7afe   :  { %6310 = vsyncpa [#allocation12], 1 }
0x7aff   :  { %6311 = vsyncpa [#allocation15], 1 }
0x7b00   :  { %6312 = vsyncpa [#allocation18], 1 }
0x7b01   :  { %6313 = vsyncpa [#allocation21], 1 }
0x7b02   :  { %6314 = vsyncpa [#allocation24], 1 }
0x7b03   :  { %6315 = vsyncpa [#allocation27], 1 }
0x7b04   :  { %6316 = vsyncpa [#allocation30], 1 }
0x7b05   :  { %6317 = vsyncpa [#allocation4], 1 }
0x7b06   :  { %6318 = vsyncpa [#allocation33], 1 }

</bundles_post_ra>
